<compile_context>
chip_gen: v6e
topology: v6e:2x2x1
jax: 0.10.0
libtpu: 0.0.40
codegen_flags: <defaults>
</compile_context>

<pallas_src>
import functools

import jax
import jax.numpy as jnp
from jax import lax
from jax.experimental import pallas as pl
from jax.experimental.pallas import tpu as pltpu

H = 100          # model hidden / embedding size (fixed by the module)
HP = 128         # lane-padded hidden size
G4 = 4 * HP      # padded gate width: each gate owns one 128-lane block
NCP = 128        # lane-padded number of classes (lane-dense output store)


def _lstm_proj_kernel(x_ref, wcat_ref, b_ref, wproj_ref, bproj_ref,
                      out_ref, h_scr, c_scr, *, tc, t_total, bp):
    t_blk = pl.program_id(0)

    @pl.when(t_blk == 0)
    def _():
        h_scr[...] = jnp.zeros_like(h_scr)
        c_scr[...] = jnp.zeros_like(c_scr)

    # Hoist the bias broadcast out of the recurrence (JAX does not CSE broadcasts).
    bias = jnp.broadcast_to(b_ref[...], (bp, G4))
    base = t_blk * tc
    need_mask = (t_total % tc) != 0      # only then can a chunk contain padded steps

    def step(i, carry):
        h, c = carry
        # One K=256 MXU call per step: [h | x_t] @ [W_hh^T ; W_ih^T].
        # wcat_ref is read here (not hoisted) so the (256,512) weight never becomes a
        # loop-carried vreg live range.
        xh = jnp.concatenate([h, x_ref[i]], axis=-1)                 # (BP, 2*HP)
        gates = jnp.dot(xh, wcat_ref[...],
                        preferred_element_type=jnp.float32) + bias   # (BP, 4*HP)
        # PyTorch gate order i, f, g, o; each gate is a 128-lane-aligned block.
        # sigmoid(z) = 0.5*tanh(0.5*z) + 0.5  -> one EUP push per gate.
        i_g = 0.5 * jnp.tanh(0.5 * gates[:, 0 * HP:1 * HP]) + 0.5
        f_g = 0.5 * jnp.tanh(0.5 * gates[:, 1 * HP:2 * HP]) + 0.5
        g_g = jnp.tanh(gates[:, 2 * HP:3 * HP])
        o_g = 0.5 * jnp.tanh(0.5 * gates[:, 3 * HP:4 * HP]) + 0.5
        c_new = f_g * c + i_g * g_g
        h_new = o_g * jnp.tanh(c_new)
        if need_mask:
            valid = (base + i) < t_total
            h_new = jnp.where(valid, h_new, h)
            c_new = jnp.where(valid, c_new, c)
        return h_new, c_new
        # Padded gate lanes see 0 pre-activation -> g=tanh(0)=0, so padded h/c lanes stay 0.

    unroll = tc if tc <= 32 else 8
    h, c = lax.fori_loop(0, tc, step, (h_scr[...], c_scr[...]), unroll=unroll)
    h_scr[...] = h
    c_scr[...] = c

    # Final projection + lane-dense store happen exactly once, on the last chunk.
    @pl.when(t_blk == pl.num_programs(0) - 1)
    def _():
        out_ref[...] = (jnp.dot(h, wproj_ref[...],
                                preferred_element_type=jnp.float32)
                        + bproj_ref[...])


def pack_params(params):
    """One-time repacking of PyTorch-shaped parameters into the TPU-friendly layout.

    Hoisted out of the forward path: call once per parameter set.
    """
    emb_w, w_ih, w_hh, b_ih, b_hh, w_proj, b_proj = params
    ncls = w_proj.shape[0]
    vsize = emb_w.shape[0]

    # Embedding table padded to 128 lanes so the gather yields lane-padded activations.
    emb_pad = jnp.zeros((vsize, HP), jnp.float32).at[:, :H].set(
        emb_w.astype(jnp.float32))

    # W_cat = [W_hh^T ; W_ih^T]: rows 0:128 contract with h, rows 128:256 with x_t.
    # Each gate occupies its own 128-lane block; padded rows/cols are zero.
    wcat = jnp.zeros((2 * HP, G4), jnp.float32)
    b_full = b_ih + b_hh
    b_pad = jnp.zeros((1, G4), jnp.float32)
    for g in range(4):
        wcat = wcat.at[:H, g * HP:g * HP + H].set(w_hh[g * H:(g + 1) * H, :].T)
        wcat = wcat.at[HP:HP + H, g * HP:g * HP + H].set(w_ih[g * H:(g + 1) * H, :].T)
        b_pad = b_pad.at[0, g * HP:g * HP + H].set(b_full[g * H:(g + 1) * H])

    wproj_pad = jnp.zeros((HP, NCP), jnp.float32).at[:H, :ncls].set(w_proj.T)
    bproj_pad = jnp.zeros((1, NCP), jnp.float32).at[0, :ncls].set(b_proj)
    return dict(emb=emb_pad, wcat=wcat, b=b_pad, wproj=wproj_pad,
                bproj=bproj_pad, ncls=ncls)


def model_forward(input_ids, packed, *, time_chunk=64):
    """input_ids: [T, B] int32.  Returns [B, ncls] float32."""
    T, B = input_ids.shape
    ncls = packed["ncls"]
    BP = max(8, ((B + 7) // 8) * 8)          # pad batch to the sublane granule
    tc = min(T, time_chunk)                  # time-chunk length
    nt = pl.cdiv(T, tc)
    T_pad = nt * tc

    # Pad ids (pad token 0; padded steps masked in-kernel, padded rows sliced off) and
    # gather from the 128-lane-padded table: the gather directly yields x_pad.
    ids_pad = jnp.zeros((T_pad, BP), input_ids.dtype).at[:T, :B].set(input_ids)
    x = jnp.take(packed["emb"], ids_pad, axis=0)             # (T_pad, BP, HP)

    kernel = functools.partial(_lstm_proj_kernel, tc=tc, t_total=T, bp=BP)

    # VMEM is bounded by two x-chunks + resident weights + h/c + output, independent of T.
    block_bytes = (tc * BP * HP * 4              # one x chunk
                   + 2 * HP * G4 * 4             # W_cat
                   + G4 * 4 + NCP * 4            # biases
                   + HP * NCP * 4                # W_proj
                   + BP * NCP * 4                # output
                   + 2 * BP * HP * 4)            # h/c scratch
    vmem_limit = min(32 * 1024 * 1024, max(4 * block_bytes, 8 * 1024 * 1024))

    # TODO(synk): for B >= 16 add a leading "parallel" batch grid axis so v7x's two
    # TensorCores each take an independent batch slice.
    grid_spec = pltpu.PrefetchScalarGridSpec(
        num_scalar_prefetch=0,
        grid=(nt,),
        in_specs=[
            pl.BlockSpec((tc, BP, HP), lambda t: (t, 0, 0)),    # x, time-chunked/pipelined
            pl.BlockSpec((2 * HP, G4), lambda t: (0, 0)),       # W_cat (resident)
            pl.BlockSpec((1, G4), lambda t: (0, 0)),            # gate bias
            pl.BlockSpec((HP, NCP), lambda t: (0, 0)),          # proj weight
            pl.BlockSpec((1, NCP), lambda t: (0, 0)),           # proj bias
        ],
        out_specs=pl.BlockSpec((BP, NCP), lambda t: (0, 0)),
        scratch_shapes=[pltpu.VMEM((BP, HP), jnp.float32),      # h carry
                        pltpu.VMEM((BP, HP), jnp.float32)],     # c carry
    )
    out_pad = pl.pallas_call(
        kernel,
        out_shape=jax.ShapeDtypeStruct((BP, NCP), jnp.float32),
        grid_spec=grid_spec,
        compiler_params=pltpu.CompilerParams(
            dimension_semantics=("arbitrary",),   # time chunks carry h/c -> sequential
            vmem_limit_bytes=vmem_limit),
    )(x, packed["wcat"], packed["b"], packed["wproj"], packed["bproj"])

    return out_pad[:B, :ncls]


def reference_forward(input_ids, params):
    """Pure-JAX reference of the PyTorch forward pass."""
    emb_w, w_ih, w_hh, b_ih, b_hh, w_proj, b_proj = params
    x = emb_w[input_ids]                      # (T, B, H)
    T, B = input_ids.shape
    h = jnp.zeros((B, H), jnp.float32)
    c = jnp.zeros((B, H), jnp.float32)
    for t in range(T):
        gates = x[t] @ w_ih.T + b_ih + h @ w_hh.T + b_hh
        i_g = jax.nn.sigmoid(gates[:, 0 * H:1 * H])
        f_g = jax.nn.sigmoid(gates[:, 1 * H:2 * H])
        g_g = jnp.tanh(gates[:, 2 * H:3 * H])
        o_g = jax.nn.sigmoid(gates[:, 3 * H:4 * H])
        c = f_g * c + i_g * g_g
        h = o_g * jnp.tanh(c)
    return h @ w_proj.T + b_proj


def init_params(key, vsize, ncls):
    """Deterministic synthetic init matching the PyTorch module's shapes."""
    ks = jax.random.split(key, 7)
    bound = 1.0 / jnp.sqrt(H)
    emb_w = jax.random.normal(ks[0], (vsize, H), jnp.float32)
    w_ih = jax.random.uniform(ks[1], (4 * H, H), jnp.float32, -bound, bound)
    w_hh = jax.random.uniform(ks[2], (4 * H, H), jnp.float32, -bound, bound)
    b_ih = jax.random.uniform(ks[3], (4 * H,), jnp.float32, -bound, bound)
    b_hh = jax.random.uniform(ks[4], (4 * H,), jnp.float32, -bound, bound)
    w_proj = jax.random.uniform(ks[5], (ncls, H), jnp.float32, -bound, bound)
    b_proj = jax.random.uniform(ks[6], (ncls,), jnp.float32, -bound, bound)
    return (emb_w, w_ih, w_hh, b_ih, b_hh, w_proj, b_proj)


if __name__ == "__main__":
    VSIZE, NCLS = 50, 5
    key = jax.random.PRNGKey(0)
    pkey, dkey1, dkey2 = jax.random.split(key, 3)
    params = init_params(pkey, VSIZE, NCLS)
    packed = pack_params(params)              # one-time weight repacking

    # Case 1: small shapes (T=8, B=2) — single time chunk, fully unrolled recurrence.
    ids1 = jax.random.randint(dkey1, (8, 2), 0, VSIZE, dtype=jnp.int32)
    out1 = jax.block_until_ready(model_forward(ids1, packed))
    ref1 = reference_forward(ids1, params)
    assert out1.shape == (2, NCLS), out1.shape
    assert jnp.allclose(out1, ref1, atol=1e-4, rtol=1e-4), (out1, ref1)

    # Case 2: T=80, B=3 — batch not a sublane multiple, multi-chunk time axis with a
    # ragged last chunk (exercises the pipelined + masked path).
    ids2 = jax.random.randint(dkey2, (80, 3), 0, VSIZE, dtype=jnp.int32)
    out2 = jax.block_until_ready(model_forward(ids2, packed, time_chunk=32))
    ref2 = reference_forward(ids2, params)
    assert out2.shape == (3, NCLS), out2.shape
    assert jnp.allclose(out2, ref2, atol=1e-4, rtol=1e-4), (out2, ref2)

    print("KERNEL_OK")
</pallas_src>

<mosaic_0001>
module attributes {stable_mosaic.version = 11 : i64} {
  func.func @_lstm_proj_kernel(%arg0: i32, %arg1: memref<8x8x128xf32, #tpu.memory_space<vmem>>, %arg2: memref<256x512xf32, #tpu.memory_space<vmem>>, %arg3: memref<1x512xf32, #tpu.memory_space<vmem>>, %arg4: memref<128x128xf32, #tpu.memory_space<vmem>>, %arg5: memref<1x128xf32, #tpu.memory_space<vmem>>, %arg6: memref<8x128xf32, #tpu.memory_space<vmem>>, %arg7: memref<8x128xf32, #tpu.memory_space<vmem>>, %arg8: memref<8x128xf32, #tpu.memory_space<vmem>>) attributes {dimension_semantics = [#tpu.dimension_semantics<arbitrary>], iteration_bounds = array<i64: 1>, scalar_prefetch = 0 : i64, scratch_operands = 2 : i64, tpu.core_type = #tpu.core_type<tc>, window_params = [{transform_indices = @transform_0, window_bounds = array<i64: 8, 8, 128>}, {pipeline_mode = #tpu.pipeline_mode<synchronous>, transform_indices = @transform_1, window_bounds = array<i64: 256, 512>}, {pipeline_mode = #tpu.pipeline_mode<synchronous>, transform_indices = @transform_2, window_bounds = array<i64: 1, 512>}, {pipeline_mode = #tpu.pipeline_mode<synchronous>, transform_indices = @transform_3, window_bounds = array<i64: 128, 128>}, {pipeline_mode = #tpu.pipeline_mode<synchronous>, transform_indices = @transform_4, window_bounds = array<i64: 1, 128>}, {pipeline_mode = #tpu.pipeline_mode<synchronous>, transform_indices = @transform_5, window_bounds = array<i64: 8, 128>}]} {
    %c0_i32 = arith.constant 0 : i32
    %0 = arith.cmpi eq, %arg0, %c0_i32 : i32
    %1 = arith.extui %0 : i1 to i32
    %c0_i32_0 = arith.constant 0 : i32
    %2 = arith.cmpi ne, %1, %c0_i32_0 : i32
    scf.if %2 {
      %cst_124 = arith.constant 0.000000e+00 : f32
      %317 = vector.broadcast %cst_124 : f32 to vector<8x128xf32>
      %c0_125 = arith.constant 0 : index
      %c0_126 = arith.constant 0 : index
      %318 = vector.load %arg7[%c0_125, %c0_126] : memref<8x128xf32, #tpu.memory_space<vmem>>, vector<8x128xf32>
      tpu.vector_store %arg7[%c0_125, %c0_126], %317 {strides = array<i32>} : memref<8x128xf32, #tpu.memory_space<vmem>>, vector<8x128xf32>,
      %cst_127 = arith.constant 0.000000e+00 : f32
      %319 = vector.broadcast %cst_127 : f32 to vector<8x128xf32>
      %c0_128 = arith.constant 0 : index
      %c0_129 = arith.constant 0 : index
      %320 = vector.load %arg8[%c0_128, %c0_129] : memref<8x128xf32, #tpu.memory_space<vmem>>, vector<8x128xf32>
      tpu.vector_store %arg8[%c0_128, %c0_129], %319 {strides = array<i32>} : memref<8x128xf32, #tpu.memory_space<vmem>>, vector<8x128xf32>,
    } else {
    }
    %c0 = arith.constant 0 : index
    %c0_1 = arith.constant 0 : index
    %3 = vector.load %arg3[%c0, %c0_1] : memref<1x512xf32, #tpu.memory_space<vmem>>, vector<1x512xf32>
    %4 = vector.shape_cast %3 : vector<1x512xf32> to vector<1x512xf32>
    %5 = vector.broadcast %4 : vector<1x512xf32> to vector<8x512xf32>
    %c0_2 = arith.constant 0 : index
    %c0_3 = arith.constant 0 : index
    %6 = vector.load %arg7[%c0_2, %c0_3] : memref<8x128xf32, #tpu.memory_space<vmem>>, vector<8x128xf32>
    %c0_4 = arith.constant 0 : index
    %c0_5 = arith.constant 0 : index
    %7 = vector.load %arg8[%c0_4, %c0_5] : memref<8x128xf32, #tpu.memory_space<vmem>>, vector<8x128xf32>
    %c0_i32_6 = arith.constant 0 : i32
    %8 = arith.index_cast %c0_i32_6 : i32 to index
    %c0_7 = arith.constant 0 : index
    %c0_8 = arith.constant 0 : index
    %9 = vector.load %arg1[%8, %c0_7, %c0_8] : memref<8x8x128xf32, #tpu.memory_space<vmem>>, vector<1x8x128xf32>
    %10 = vector.shape_cast %9 : vector<1x8x128xf32> to vector<8x128xf32>
    %11 = tpu.concatenate %6, %10 in 1 : vector<8x128xf32>, vector<8x128xf32> -> vector<8x256xf32>
    %c0_9 = arith.constant 0 : index
    %c0_10 = arith.constant 0 : index
    %12 = vector.load %arg2[%c0_9, %c0_10] : memref<256x512xf32, #tpu.memory_space<vmem>>, vector<256x512xf32>
    %cst = arith.constant dense<0.000000e+00> : vector<8x512xf32>
    %13 = tpu.matmul %11, %12, %cst {dimension_numbers = #tpu.dot_dimension_numbers<[1], [0], [0], [1], [0, 0, 1, 1], [], []>} : vector<8x256xf32>, vector<256x512xf32>, vector<8x512xf32> -> vector<8x512xf32>
    %14 = arith.addf %13, %5 : vector<8x512xf32>
    %15 = vector.extract_strided_slice %14 {offsets = [0, 0], sizes = [8, 128], strides = [1, 1]} : vector<8x512xf32> to vector<8x128xf32>
    %cst_11 = arith.constant 5.000000e-01 : f32
    %16 = vector.broadcast %cst_11 : f32 to vector<8x128xf32>
    %17 = arith.mulf %16, %15 : vector<8x128xf32>
    %18 = math.tanh %17 : vector<8x128xf32>
    %cst_12 = arith.constant 5.000000e-01 : f32
    %19 = vector.broadcast %cst_12 : f32 to vector<8x128xf32>
    %20 = arith.mulf %19, %18 : vector<8x128xf32>
    %cst_13 = arith.constant 5.000000e-01 : f32
    %21 = vector.broadcast %cst_13 : f32 to vector<8x128xf32>
    %22 = arith.addf %20, %21 : vector<8x128xf32>
    %23 = vector.extract_strided_slice %14 {offsets = [0, 128], sizes = [8, 128], strides = [1, 1]} : vector<8x512xf32> to vector<8x128xf32>
    %cst_14 = arith.constant 5.000000e-01 : f32
    %24 = vector.broadcast %cst_14 : f32 to vector<8x128xf32>
    %25 = arith.mulf %24, %23 : vector<8x128xf32>
    %26 = math.tanh %25 : vector<8x128xf32>
    %cst_15 = arith.constant 5.000000e-01 : f32
    %27 = vector.broadcast %cst_15 : f32 to vector<8x128xf32>
    %28 = arith.mulf %27, %26 : vector<8x128xf32>
    %cst_16 = arith.constant 5.000000e-01 : f32
    %29 = vector.broadcast %cst_16 : f32 to vector<8x128xf32>
    %30 = arith.addf %28, %29 : vector<8x128xf32>
    %31 = vector.extract_strided_slice %14 {offsets = [0, 256], sizes = [8, 128], strides = [1, 1]} : vector<8x512xf32> to vector<8x128xf32>
    %32 = math.tanh %31 : vector<8x128xf32>
    %33 = vector.extract_strided_slice %14 {offsets = [0, 384], sizes = [8, 128], strides = [1, 1]} : vector<8x512xf32> to vector<8x128xf32>
    %cst_17 = arith.constant 5.000000e-01 : f32
    %34 = vector.broadcast %cst_17 : f32 to vector<8x128xf32>
    %35 = arith.mulf %34, %33 : vector<8x128xf32>
    %36 = math.tanh %35 : vector<8x128xf32>
    %cst_18 = arith.constant 5.000000e-01 : f32
    %37 = vector.broadcast %cst_18 : f32 to vector<8x128xf32>
    %38 = arith.mulf %37, %36 : vector<8x128xf32>
    %cst_19 = arith.constant 5.000000e-01 : f32
    %39 = vector.broadcast %cst_19 : f32 to vector<8x128xf32>
    %40 = arith.addf %38, %39 : vector<8x128xf32>
    %41 = arith.mulf %30, %7 : vector<8x128xf32>
    %42 = arith.mulf %22, %32 : vector<8x128xf32>
    %43 = arith.addf %41, %42 : vector<8x128xf32>
    %44 = math.tanh %43 : vector<8x128xf32>
    %45 = arith.mulf %40, %44 : vector<8x128xf32>
    %c1_i32 = arith.constant 1 : i32
    %46 = arith.index_cast %c1_i32 : i32 to index
    %c0_20 = arith.constant 0 : index
    %c0_21 = arith.constant 0 : index
    %47 = vector.load %arg1[%46, %c0_20, %c0_21] : memref<8x8x128xf32, #tpu.memory_space<vmem>>, vector<1x8x128xf32>
    %48 = vector.shape_cast %47 : vector<1x8x128xf32> to vector<8x128xf32>
    %49 = tpu.concatenate %45, %48 in 1 : vector<8x128xf32>, vector<8x128xf32> -> vector<8x256xf32>
    %c0_22 = arith.constant 0 : index
    %c0_23 = arith.constant 0 : index
    %50 = vector.load %arg2[%c0_22, %c0_23] : memref<256x512xf32, #tpu.memory_space<vmem>>, vector<256x512xf32>
    %cst_24 = arith.constant dense<0.000000e+00> : vector<8x512xf32>
    %51 = tpu.matmul %49, %50, %cst_24 {dimension_numbers = #tpu.dot_dimension_numbers<[1], [0], [0], [1], [0, 0, 1, 1], [], []>} : vector<8x256xf32>, vector<256x512xf32>, vector<8x512xf32> -> vector<8x512xf32>
    %52 = arith.addf %51, %5 : vector<8x512xf32>
    %53 = vector.extract_strided_slice %52 {offsets = [0, 0], sizes = [8, 128], strides = [1, 1]} : vector<8x512xf32> to vector<8x128xf32>
    %cst_25 = arith.constant 5.000000e-01 : f32
    %54 = vector.broadcast %cst_25 : f32 to vector<8x128xf32>
    %55 = arith.mulf %54, %53 : vector<8x128xf32>
    %56 = math.tanh %55 : vector<8x128xf32>
    %cst_26 = arith.constant 5.000000e-01 : f32
    %57 = vector.broadcast %cst_26 : f32 to vector<8x128xf32>
    %58 = arith.mulf %57, %56 : vector<8x128xf32>
    %cst_27 = arith.constant 5.000000e-01 : f32
    %59 = vector.broadcast %cst_27 : f32 to vector<8x128xf32>
    %60 = arith.addf %58, %59 : vector<8x128xf32>
    %61 = vector.extract_strided_slice %52 {offsets = [0, 128], sizes = [8, 128], strides = [1, 1]} : vector<8x512xf32> to vector<8x128xf32>
    %cst_28 = arith.constant 5.000000e-01 : f32
    %62 = vector.broadcast %cst_28 : f32 to vector<8x128xf32>
    %63 = arith.mulf %62, %61 : vector<8x128xf32>
    %64 = math.tanh %63 : vector<8x128xf32>
    %cst_29 = arith.constant 5.000000e-01 : f32
    %65 = vector.broadcast %cst_29 : f32 to vector<8x128xf32>
    %66 = arith.mulf %65, %64 : vector<8x128xf32>
    %cst_30 = arith.constant 5.000000e-01 : f32
    %67 = vector.broadcast %cst_30 : f32 to vector<8x128xf32>
    %68 = arith.addf %66, %67 : vector<8x128xf32>
    %69 = vector.extract_strided_slice %52 {offsets = [0, 256], sizes = [8, 128], strides = [1, 1]} : vector<8x512xf32> to vector<8x128xf32>
    %70 = math.tanh %69 : vector<8x128xf32>
    %71 = vector.extract_strided_slice %52 {offsets = [0, 384], sizes = [8, 128], strides = [1, 1]} : vector<8x512xf32> to vector<8x128xf32>
    %cst_31 = arith.constant 5.000000e-01 : f32
    %72 = vector.broadcast %cst_31 : f32 to vector<8x128xf32>
    %73 = arith.mulf %72, %71 : vector<8x128xf32>
    %74 = math.tanh %73 : vector<8x128xf32>
    %cst_32 = arith.constant 5.000000e-01 : f32
    %75 = vector.broadcast %cst_32 : f32 to vector<8x128xf32>
    %76 = arith.mulf %75, %74 : vector<8x128xf32>
    %cst_33 = arith.constant 5.000000e-01 : f32
    %77 = vector.broadcast %cst_33 : f32 to vector<8x128xf32>
    %78 = arith.addf %76, %77 : vector<8x128xf32>
    %79 = arith.mulf %68, %43 : vector<8x128xf32>
    %80 = arith.mulf %60, %70 : vector<8x128xf32>
    %81 = arith.addf %79, %80 : vector<8x128xf32>
    %82 = math.tanh %81 : vector<8x128xf32>
    %83 = arith.mulf %78, %82 : vector<8x128xf32>
    %c2_i32 = arith.constant 2 : i32
    %84 = arith.index_cast %c2_i32 : i32 to index
    %c0_34 = arith.constant 0 : index
    %c0_35 = arith.constant 0 : index
    %85 = vector.load %arg1[%84, %c0_34, %c0_35] : memref<8x8x128xf32, #tpu.memory_space<vmem>>, vector<1x8x128xf32>
    %86 = vector.shape_cast %85 : vector<1x8x128xf32> to vector<8x128xf32>
    %87 = tpu.concatenate %83, %86 in 1 : vector<8x128xf32>, vector<8x128xf32> -> vector<8x256xf32>
    %c0_36 = arith.constant 0 : index
    %c0_37 = arith.constant 0 : index
    %88 = vector.load %arg2[%c0_36, %c0_37] : memref<256x512xf32, #tpu.memory_space<vmem>>, vector<256x512xf32>
    %cst_38 = arith.constant dense<0.000000e+00> : vector<8x512xf32>
    %89 = tpu.matmul %87, %88, %cst_38 {dimension_numbers = #tpu.dot_dimension_numbers<[1], [0], [0], [1], [0, 0, 1, 1], [], []>} : vector<8x256xf32>, vector<256x512xf32>, vector<8x512xf32> -> vector<8x512xf32>
    %90 = arith.addf %89, %5 : vector<8x512xf32>
    %91 = vector.extract_strided_slice %90 {offsets = [0, 0], sizes = [8, 128], strides = [1, 1]} : vector<8x512xf32> to vector<8x128xf32>
    %cst_39 = arith.constant 5.000000e-01 : f32
    %92 = vector.broadcast %cst_39 : f32 to vector<8x128xf32>
    %93 = arith.mulf %92, %91 : vector<8x128xf32>
    %94 = math.tanh %93 : vector<8x128xf32>
    %cst_40 = arith.constant 5.000000e-01 : f32
    %95 = vector.broadcast %cst_40 : f32 to vector<8x128xf32>
    %96 = arith.mulf %95, %94 : vector<8x128xf32>
    %cst_41 = arith.constant 5.000000e-01 : f32
    %97 = vector.broadcast %cst_41 : f32 to vector<8x128xf32>
    %98 = arith.addf %96, %97 : vector<8x128xf32>
    %99 = vector.extract_strided_slice %90 {offsets = [0, 128], sizes = [8, 128], strides = [1, 1]} : vector<8x512xf32> to vector<8x128xf32>
    %cst_42 = arith.constant 5.000000e-01 : f32
    %100 = vector.broadcast %cst_42 : f32 to vector<8x128xf32>
    %101 = arith.mulf %100, %99 : vector<8x128xf32>
    %102 = math.tanh %101 : vector<8x128xf32>
    %cst_43 = arith.constant 5.000000e-01 : f32
    %103 = vector.broadcast %cst_43 : f32 to vector<8x128xf32>
    %104 = arith.mulf %103, %102 : vector<8x128xf32>
    %cst_44 = arith.constant 5.000000e-01 : f32
    %105 = vector.broadcast %cst_44 : f32 to vector<8x128xf32>
    %106 = arith.addf %104, %105 : vector<8x128xf32>
    %107 = vector.extract_strided_slice %90 {offsets = [0, 256], sizes = [8, 128], strides = [1, 1]} : vector<8x512xf32> to vector<8x128xf32>
    %108 = math.tanh %107 : vector<8x128xf32>
    %109 = vector.extract_strided_slice %90 {offsets = [0, 384], sizes = [8, 128], strides = [1, 1]} : vector<8x512xf32> to vector<8x128xf32>
    %cst_45 = arith.constant 5.000000e-01 : f32
    %110 = vector.broadcast %cst_45 : f32 to vector<8x128xf32>
    %111 = arith.mulf %110, %109 : vector<8x128xf32>
    %112 = math.tanh %111 : vector<8x128xf32>
    %cst_46 = arith.constant 5.000000e-01 : f32
    %113 = vector.broadcast %cst_46 : f32 to vector<8x128xf32>
    %114 = arith.mulf %113, %112 : vector<8x128xf32>
    %cst_47 = arith.constant 5.000000e-01 : f32
    %115 = vector.broadcast %cst_47 : f32 to vector<8x128xf32>
    %116 = arith.addf %114, %115 : vector<8x128xf32>
    %117 = arith.mulf %106, %81 : vector<8x128xf32>
    %118 = arith.mulf %98, %108 : vector<8x128xf32>
    %119 = arith.addf %117, %118 : vector<8x128xf32>
    %120 = math.tanh %119 : vector<8x128xf32>
    %121 = arith.mulf %116, %120 : vector<8x128xf32>
    %c3_i32 = arith.constant 3 : i32
    %122 = arith.index_cast %c3_i32 : i32 to index
    %c0_48 = arith.constant 0 : index
    %c0_49 = arith.constant 0 : index
    %123 = vector.load %arg1[%122, %c0_48, %c0_49] : memref<8x8x128xf32, #tpu.memory_space<vmem>>, vector<1x8x128xf32>
    %124 = vector.shape_cast %123 : vector<1x8x128xf32> to vector<8x128xf32>
    %125 = tpu.concatenate %121, %124 in 1 : vector<8x128xf32>, vector<8x128xf32> -> vector<8x256xf32>
    %c0_50 = arith.constant 0 : index
    %c0_51 = arith.constant 0 : index
    %126 = vector.load %arg2[%c0_50, %c0_51] : memref<256x512xf32, #tpu.memory_space<vmem>>, vector<256x512xf32>
    %cst_52 = arith.constant dense<0.000000e+00> : vector<8x512xf32>
    %127 = tpu.matmul %125, %126, %cst_52 {dimension_numbers = #tpu.dot_dimension_numbers<[1], [0], [0], [1], [0, 0, 1, 1], [], []>} : vector<8x256xf32>, vector<256x512xf32>, vector<8x512xf32> -> vector<8x512xf32>
    %128 = arith.addf %127, %5 : vector<8x512xf32>
    %129 = vector.extract_strided_slice %128 {offsets = [0, 0], sizes = [8, 128], strides = [1, 1]} : vector<8x512xf32> to vector<8x128xf32>
    %cst_53 = arith.constant 5.000000e-01 : f32
    %130 = vector.broadcast %cst_53 : f32 to vector<8x128xf32>
    %131 = arith.mulf %130, %129 : vector<8x128xf32>
    %132 = math.tanh %131 : vector<8x128xf32>
    %cst_54 = arith.constant 5.000000e-01 : f32
    %133 = vector.broadcast %cst_54 : f32 to vector<8x128xf32>
    %134 = arith.mulf %133, %132 : vector<8x128xf32>
    %cst_55 = arith.constant 5.000000e-01 : f32
    %135 = vector.broadcast %cst_55 : f32 to vector<8x128xf32>
    %136 = arith.addf %134, %135 : vector<8x128xf32>
    %137 = vector.extract_strided_slice %128 {offsets = [0, 128], sizes = [8, 128], strides = [1, 1]} : vector<8x512xf32> to vector<8x128xf32>
    %cst_56 = arith.constant 5.000000e-01 : f32
    %138 = vector.broadcast %cst_56 : f32 to vector<8x128xf32>
    %139 = arith.mulf %138, %137 : vector<8x128xf32>
    %140 = math.tanh %139 : vector<8x128xf32>
    %cst_57 = arith.constant 5.000000e-01 : f32
    %141 = vector.broadcast %cst_57 : f32 to vector<8x128xf32>
    %142 = arith.mulf %141, %140 : vector<8x128xf32>
    %cst_58 = arith.constant 5.000000e-01 : f32
    %143 = vector.broadcast %cst_58 : f32 to vector<8x128xf32>
    %144 = arith.addf %142, %143 : vector<8x128xf32>
    %145 = vector.extract_strided_slice %128 {offsets = [0, 256], sizes = [8, 128], strides = [1, 1]} : vector<8x512xf32> to vector<8x128xf32>
    %146 = math.tanh %145 : vector<8x128xf32>
    %147 = vector.extract_strided_slice %128 {offsets = [0, 384], sizes = [8, 128], strides = [1, 1]} : vector<8x512xf32> to vector<8x128xf32>
    %cst_59 = arith.constant 5.000000e-01 : f32
    %148 = vector.broadcast %cst_59 : f32 to vector<8x128xf32>
    %149 = arith.mulf %148, %147 : vector<8x128xf32>
    %150 = math.tanh %149 : vector<8x128xf32>
    %cst_60 = arith.constant 5.000000e-01 : f32
    %151 = vector.broadcast %cst_60 : f32 to vector<8x128xf32>
    %152 = arith.mulf %151, %150 : vector<8x128xf32>
    %cst_61 = arith.constant 5.000000e-01 : f32
    %153 = vector.broadcast %cst_61 : f32 to vector<8x128xf32>
    %154 = arith.addf %152, %153 : vector<8x128xf32>
    %155 = arith.mulf %144, %119 : vector<8x128xf32>
    %156 = arith.mulf %136, %146 : vector<8x128xf32>
    %157 = arith.addf %155, %156 : vector<8x128xf32>
    %158 = math.tanh %157 : vector<8x128xf32>
    %159 = arith.mulf %154, %158 : vector<8x128xf32>
    %c4_i32 = arith.constant 4 : i32
    %160 = arith.index_cast %c4_i32 : i32 to index
    %c0_62 = arith.constant 0 : index
    %c0_63 = arith.constant 0 : index
    %161 = vector.load %arg1[%160, %c0_62, %c0_63] : memref<8x8x128xf32, #tpu.memory_space<vmem>>, vector<1x8x128xf32>
    %162 = vector.shape_cast %161 : vector<1x8x128xf32> to vector<8x128xf32>
    %163 = tpu.concatenate %159, %162 in 1 : vector<8x128xf32>, vector<8x128xf32> -> vector<8x256xf32>
    %c0_64 = arith.constant 0 : index
    %c0_65 = arith.constant 0 : index
    %164 = vector.load %arg2[%c0_64, %c0_65] : memref<256x512xf32, #tpu.memory_space<vmem>>, vector<256x512xf32>
    %cst_66 = arith.constant dense<0.000000e+00> : vector<8x512xf32>
    %165 = tpu.matmul %163, %164, %cst_66 {dimension_numbers = #tpu.dot_dimension_numbers<[1], [0], [0], [1], [0, 0, 1, 1], [], []>} : vector<8x256xf32>, vector<256x512xf32>, vector<8x512xf32> -> vector<8x512xf32>
    %166 = arith.addf %165, %5 : vector<8x512xf32>
    %167 = vector.extract_strided_slice %166 {offsets = [0, 0], sizes = [8, 128], strides = [1, 1]} : vector<8x512xf32> to vector<8x128xf32>
    %cst_67 = arith.constant 5.000000e-01 : f32
    %168 = vector.broadcast %cst_67 : f32 to vector<8x128xf32>
    %169 = arith.mulf %168, %167 : vector<8x128xf32>
    %170 = math.tanh %169 : vector<8x128xf32>
    %cst_68 = arith.constant 5.000000e-01 : f32
    %171 = vector.broadcast %cst_68 : f32 to vector<8x128xf32>
    %172 = arith.mulf %171, %170 : vector<8x128xf32>
    %cst_69 = arith.constant 5.000000e-01 : f32
    %173 = vector.broadcast %cst_69 : f32 to vector<8x128xf32>
    %174 = arith.addf %172, %173 : vector<8x128xf32>
    %175 = vector.extract_strided_slice %166 {offsets = [0, 128], sizes = [8, 128], strides = [1, 1]} : vector<8x512xf32> to vector<8x128xf32>
    %cst_70 = arith.constant 5.000000e-01 : f32
    %176 = vector.broadcast %cst_70 : f32 to vector<8x128xf32>
    %177 = arith.mulf %176, %175 : vector<8x128xf32>
    %178 = math.tanh %177 : vector<8x128xf32>
    %cst_71 = arith.constant 5.000000e-01 : f32
    %179 = vector.broadcast %cst_71 : f32 to vector<8x128xf32>
    %180 = arith.mulf %179, %178 : vector<8x128xf32>
    %cst_72 = arith.constant 5.000000e-01 : f32
    %181 = vector.broadcast %cst_72 : f32 to vector<8x128xf32>
    %182 = arith.addf %180, %181 : vector<8x128xf32>
    %183 = vector.extract_strided_slice %166 {offsets = [0, 256], sizes = [8, 128], strides = [1, 1]} : vector<8x512xf32> to vector<8x128xf32>
    %184 = math.tanh %183 : vector<8x128xf32>
    %185 = vector.extract_strided_slice %166 {offsets = [0, 384], sizes = [8, 128], strides = [1, 1]} : vector<8x512xf32> to vector<8x128xf32>
    %cst_73 = arith.constant 5.000000e-01 : f32
    %186 = vector.broadcast %cst_73 : f32 to vector<8x128xf32>
    %187 = arith.mulf %186, %185 : vector<8x128xf32>
    %188 = math.tanh %187 : vector<8x128xf32>
    %cst_74 = arith.constant 5.000000e-01 : f32
    %189 = vector.broadcast %cst_74 : f32 to vector<8x128xf32>
    %190 = arith.mulf %189, %188 : vector<8x128xf32>
    %cst_75 = arith.constant 5.000000e-01 : f32
    %191 = vector.broadcast %cst_75 : f32 to vector<8x128xf32>
    %192 = arith.addf %190, %191 : vector<8x128xf32>
    %193 = arith.mulf %182, %157 : vector<8x128xf32>
    %194 = arith.mulf %174, %184 : vector<8x128xf32>
    %195 = arith.addf %193, %194 : vector<8x128xf32>
    %196 = math.tanh %195 : vector<8x128xf32>
    %197 = arith.mulf %192, %196 : vector<8x128xf32>
    %c5_i32 = arith.constant 5 : i32
    %198 = arith.index_cast %c5_i32 : i32 to index
    %c0_76 = arith.constant 0 : index
    %c0_77 = arith.constant 0 : index
    %199 = vector.load %arg1[%198, %c0_76, %c0_77] : memref<8x8x128xf32, #tpu.memory_space<vmem>>, vector<1x8x128xf32>
    %200 = vector.shape_cast %199 : vector<1x8x128xf32> to vector<8x128xf32>
    %201 = tpu.concatenate %197, %200 in 1 : vector<8x128xf32>, vector<8x128xf32> -> vector<8x256xf32>
    %c0_78 = arith.constant 0 : index
    %c0_79 = arith.constant 0 : index
    %202 = vector.load %arg2[%c0_78, %c0_79] : memref<256x512xf32, #tpu.memory_space<vmem>>, vector<256x512xf32>
    %cst_80 = arith.constant dense<0.000000e+00> : vector<8x512xf32>
    %203 = tpu.matmul %201, %202, %cst_80 {dimension_numbers = #tpu.dot_dimension_numbers<[1], [0], [0], [1], [0, 0, 1, 1], [], []>} : vector<8x256xf32>, vector<256x512xf32>, vector<8x512xf32> -> vector<8x512xf32>
    %204 = arith.addf %203, %5 : vector<8x512xf32>
    %205 = vector.extract_strided_slice %204 {offsets = [0, 0], sizes = [8, 128], strides = [1, 1]} : vector<8x512xf32> to vector<8x128xf32>
    %cst_81 = arith.constant 5.000000e-01 : f32
    %206 = vector.broadcast %cst_81 : f32 to vector<8x128xf32>
    %207 = arith.mulf %206, %205 : vector<8x128xf32>
    %208 = math.tanh %207 : vector<8x128xf32>
    %cst_82 = arith.constant 5.000000e-01 : f32
    %209 = vector.broadcast %cst_82 : f32 to vector<8x128xf32>
    %210 = arith.mulf %209, %208 : vector<8x128xf32>
    %cst_83 = arith.constant 5.000000e-01 : f32
    %211 = vector.broadcast %cst_83 : f32 to vector<8x128xf32>
    %212 = arith.addf %210, %211 : vector<8x128xf32>
    %213 = vector.extract_strided_slice %204 {offsets = [0, 128], sizes = [8, 128], strides = [1, 1]} : vector<8x512xf32> to vector<8x128xf32>
    %cst_84 = arith.constant 5.000000e-01 : f32
    %214 = vector.broadcast %cst_84 : f32 to vector<8x128xf32>
    %215 = arith.mulf %214, %213 : vector<8x128xf32>
    %216 = math.tanh %215 : vector<8x128xf32>
    %cst_85 = arith.constant 5.000000e-01 : f32
    %217 = vector.broadcast %cst_85 : f32 to vector<8x128xf32>
    %218 = arith.mulf %217, %216 : vector<8x128xf32>
    %cst_86 = arith.constant 5.000000e-01 : f32
    %219 = vector.broadcast %cst_86 : f32 to vector<8x128xf32>
    %220 = arith.addf %218, %219 : vector<8x128xf32>
    %221 = vector.extract_strided_slice %204 {offsets = [0, 256], sizes = [8, 128], strides = [1, 1]} : vector<8x512xf32> to vector<8x128xf32>
    %222 = math.tanh %221 : vector<8x128xf32>
    %223 = vector.extract_strided_slice %204 {offsets = [0, 384], sizes = [8, 128], strides = [1, 1]} : vector<8x512xf32> to vector<8x128xf32>
    %cst_87 = arith.constant 5.000000e-01 : f32
    %224 = vector.broadcast %cst_87 : f32 to vector<8x128xf32>
    %225 = arith.mulf %224, %223 : vector<8x128xf32>
    %226 = math.tanh %225 : vector<8x128xf32>
    %cst_88 = arith.constant 5.000000e-01 : f32
    %227 = vector.broadcast %cst_88 : f32 to vector<8x128xf32>
    %228 = arith.mulf %227, %226 : vector<8x128xf32>
    %cst_89 = arith.constant 5.000000e-01 : f32
    %229 = vector.broadcast %cst_89 : f32 to vector<8x128xf32>
    %230 = arith.addf %228, %229 : vector<8x128xf32>
    %231 = arith.mulf %220, %195 : vector<8x128xf32>
    %232 = arith.mulf %212, %222 : vector<8x128xf32>
    %233 = arith.addf %231, %232 : vector<8x128xf32>
    %234 = math.tanh %233 : vector<8x128xf32>
    %235 = arith.mulf %230, %234 : vector<8x128xf32>
    %c6_i32 = arith.constant 6 : i32
    %236 = arith.index_cast %c6_i32 : i32 to index
    %c0_90 = arith.constant 0 : index
    %c0_91 = arith.constant 0 : index
    %237 = vector.load %arg1[%236, %c0_90, %c0_91] : memref<8x8x128xf32, #tpu.memory_space<vmem>>, vector<1x8x128xf32>
    %238 = vector.shape_cast %237 : vector<1x8x128xf32> to vector<8x128xf32>
    %239 = tpu.concatenate %235, %238 in 1 : vector<8x128xf32>, vector<8x128xf32> -> vector<8x256xf32>
    %c0_92 = arith.constant 0 : index
    %c0_93 = arith.constant 0 : index
    %240 = vector.load %arg2[%c0_92, %c0_93] : memref<256x512xf32, #tpu.memory_space<vmem>>, vector<256x512xf32>
    %cst_94 = arith.constant dense<0.000000e+00> : vector<8x512xf32>
    %241 = tpu.matmul %239, %240, %cst_94 {dimension_numbers = #tpu.dot_dimension_numbers<[1], [0], [0], [1], [0, 0, 1, 1], [], []>} : vector<8x256xf32>, vector<256x512xf32>, vector<8x512xf32> -> vector<8x512xf32>
    %242 = arith.addf %241, %5 : vector<8x512xf32>
    %243 = vector.extract_strided_slice %242 {offsets = [0, 0], sizes = [8, 128], strides = [1, 1]} : vector<8x512xf32> to vector<8x128xf32>
    %cst_95 = arith.constant 5.000000e-01 : f32
    %244 = vector.broadcast %cst_95 : f32 to vector<8x128xf32>
    %245 = arith.mulf %244, %243 : vector<8x128xf32>
    %246 = math.tanh %245 : vector<8x128xf32>
    %cst_96 = arith.constant 5.000000e-01 : f32
    %247 = vector.broadcast %cst_96 : f32 to vector<8x128xf32>
    %248 = arith.mulf %247, %246 : vector<8x128xf32>
    %cst_97 = arith.constant 5.000000e-01 : f32
    %249 = vector.broadcast %cst_97 : f32 to vector<8x128xf32>
    %250 = arith.addf %248, %249 : vector<8x128xf32>
    %251 = vector.extract_strided_slice %242 {offsets = [0, 128], sizes = [8, 128], strides = [1, 1]} : vector<8x512xf32> to vector<8x128xf32>
    %cst_98 = arith.constant 5.000000e-01 : f32
    %252 = vector.broadcast %cst_98 : f32 to vector<8x128xf32>
    %253 = arith.mulf %252, %251 : vector<8x128xf32>
    %254 = math.tanh %253 : vector<8x128xf32>
    %cst_99 = arith.constant 5.000000e-01 : f32
    %255 = vector.broadcast %cst_99 : f32 to vector<8x128xf32>
    %256 = arith.mulf %255, %254 : vector<8x128xf32>
    %cst_100 = arith.constant 5.000000e-01 : f32
    %257 = vector.broadcast %cst_100 : f32 to vector<8x128xf32>
    %258 = arith.addf %256, %257 : vector<8x128xf32>
    %259 = vector.extract_strided_slice %242 {offsets = [0, 256], sizes = [8, 128], strides = [1, 1]} : vector<8x512xf32> to vector<8x128xf32>
    %260 = math.tanh %259 : vector<8x128xf32>
    %261 = vector.extract_strided_slice %242 {offsets = [0, 384], sizes = [8, 128], strides = [1, 1]} : vector<8x512xf32> to vector<8x128xf32>
    %cst_101 = arith.constant 5.000000e-01 : f32
    %262 = vector.broadcast %cst_101 : f32 to vector<8x128xf32>
    %263 = arith.mulf %262, %261 : vector<8x128xf32>
    %264 = math.tanh %263 : vector<8x128xf32>
    %cst_102 = arith.constant 5.000000e-01 : f32
    %265 = vector.broadcast %cst_102 : f32 to vector<8x128xf32>
    %266 = arith.mulf %265, %264 : vector<8x128xf32>
    %cst_103 = arith.constant 5.000000e-01 : f32
    %267 = vector.broadcast %cst_103 : f32 to vector<8x128xf32>
    %268 = arith.addf %266, %267 : vector<8x128xf32>
    %269 = arith.mulf %258, %233 : vector<8x128xf32>
    %270 = arith.mulf %250, %260 : vector<8x128xf32>
    %271 = arith.addf %269, %270 : vector<8x128xf32>
    %272 = math.tanh %271 : vector<8x128xf32>
    %273 = arith.mulf %268, %272 : vector<8x128xf32>
    %c7_i32 = arith.constant 7 : i32
    %274 = arith.index_cast %c7_i32 : i32 to index
    %c0_104 = arith.constant 0 : index
    %c0_105 = arith.constant 0 : index
    %275 = vector.load %arg1[%274, %c0_104, %c0_105] : memref<8x8x128xf32, #tpu.memory_space<vmem>>, vector<1x8x128xf32>
    %276 = vector.shape_cast %275 : vector<1x8x128xf32> to vector<8x128xf32>
    %277 = tpu.concatenate %273, %276 in 1 : vector<8x128xf32>, vector<8x128xf32> -> vector<8x256xf32>
    %c0_106 = arith.constant 0 : index
    %c0_107 = arith.constant 0 : index
    %278 = vector.load %arg2[%c0_106, %c0_107] : memref<256x512xf32, #tpu.memory_space<vmem>>, vector<256x512xf32>
    %cst_108 = arith.constant dense<0.000000e+00> : vector<8x512xf32>
    %279 = tpu.matmul %277, %278, %cst_108 {dimension_numbers = #tpu.dot_dimension_numbers<[1], [0], [0], [1], [0, 0, 1, 1], [], []>} : vector<8x256xf32>, vector<256x512xf32>, vector<8x512xf32> -> vector<8x512xf32>
    %280 = arith.addf %279, %5 : vector<8x512xf32>
    %281 = vector.extract_strided_slice %280 {offsets = [0, 0], sizes = [8, 128], strides = [1, 1]} : vector<8x512xf32> to vector<8x128xf32>
    %cst_109 = arith.constant 5.000000e-01 : f32
    %282 = vector.broadcast %cst_109 : f32 to vector<8x128xf32>
    %283 = arith.mulf %282, %281 : vector<8x128xf32>
    %284 = math.tanh %283 : vector<8x128xf32>
    %cst_110 = arith.constant 5.000000e-01 : f32
    %285 = vector.broadcast %cst_110 : f32 to vector<8x128xf32>
    %286 = arith.mulf %285, %284 : vector<8x128xf32>
    %cst_111 = arith.constant 5.000000e-01 : f32
    %287 = vector.broadcast %cst_111 : f32 to vector<8x128xf32>
    %288 = arith.addf %286, %287 : vector<8x128xf32>
    %289 = vector.extract_strided_slice %280 {offsets = [0, 128], sizes = [8, 128], strides = [1, 1]} : vector<8x512xf32> to vector<8x128xf32>
    %cst_112 = arith.constant 5.000000e-01 : f32
    %290 = vector.broadcast %cst_112 : f32 to vector<8x128xf32>
    %291 = arith.mulf %290, %289 : vector<8x128xf32>
    %292 = math.tanh %291 : vector<8x128xf32>
    %cst_113 = arith.constant 5.000000e-01 : f32
    %293 = vector.broadcast %cst_113 : f32 to vector<8x128xf32>
    %294 = arith.mulf %293, %292 : vector<8x128xf32>
    %cst_114 = arith.constant 5.000000e-01 : f32
    %295 = vector.broadcast %cst_114 : f32 to vector<8x128xf32>
    %296 = arith.addf %294, %295 : vector<8x128xf32>
    %297 = vector.extract_strided_slice %280 {offsets = [0, 256], sizes = [8, 128], strides = [1, 1]} : vector<8x512xf32> to vector<8x128xf32>
    %298 = math.tanh %297 : vector<8x128xf32>
    %299 = vector.extract_strided_slice %280 {offsets = [0, 384], sizes = [8, 128], strides = [1, 1]} : vector<8x512xf32> to vector<8x128xf32>
    %cst_115 = arith.constant 5.000000e-01 : f32
    %300 = vector.broadcast %cst_115 : f32 to vector<8x128xf32>
    %301 = arith.mulf %300, %299 : vector<8x128xf32>
    %302 = math.tanh %301 : vector<8x128xf32>
    %cst_116 = arith.constant 5.000000e-01 : f32
    %303 = vector.broadcast %cst_116 : f32 to vector<8x128xf32>
    %304 = arith.mulf %303, %302 : vector<8x128xf32>
    %cst_117 = arith.constant 5.000000e-01 : f32
    %305 = vector.broadcast %cst_117 : f32 to vector<8x128xf32>
    %306 = arith.addf %304, %305 : vector<8x128xf32>
    %307 = arith.mulf %296, %271 : vector<8x128xf32>
    %308 = arith.mulf %288, %298 : vector<8x128xf32>
    %309 = arith.addf %307, %308 : vector<8x128xf32>
    %310 = math.tanh %309 : vector<8x128xf32>
    %311 = arith.mulf %306, %310 : vector<8x128xf32>
    %c8_i32 = arith.constant 8 : i32
    %c0_118 = arith.constant 0 : index
    %c0_119 = arith.constant 0 : index
    %312 = vector.load %arg7[%c0_118, %c0_119] : memref<8x128xf32, #tpu.memory_space<vmem>>, vector<8x128xf32>
    tpu.vector_store %arg7[%c0_118, %c0_119], %311 {strides = array<i32>} : memref<8x128xf32, #tpu.memory_space<vmem>>, vector<8x128xf32>,
    %c0_120 = arith.constant 0 : index
    %c0_121 = arith.constant 0 : index
    %313 = vector.load %arg8[%c0_120, %c0_121] : memref<8x128xf32, #tpu.memory_space<vmem>>, vector<8x128xf32>
    tpu.vector_store %arg8[%c0_120, %c0_121], %309 {strides = array<i32>} : memref<8x128xf32, #tpu.memory_space<vmem>>, vector<8x128xf32>,
    %c0_i32_122 = arith.constant 0 : i32
    %314 = arith.cmpi eq, %arg0, %c0_i32_122 : i32
    %315 = arith.extui %314 : i1 to i32
    %c0_i32_123 = arith.constant 0 : i32
    %316 = arith.cmpi ne, %315, %c0_i32_123 : i32
    scf.if %316 {
      %c0_124 = arith.constant 0 : index
      %c0_125 = arith.constant 0 : index
      %317 = vector.load %arg4[%c0_124, %c0_125] : memref<128x128xf32, #tpu.memory_space<vmem>>, vector<128x128xf32>
      %cst_126 = arith.constant dense<0.000000e+00> : vector<8x128xf32>
      %318 = tpu.matmul %311, %317, %cst_126 {dimension_numbers = #tpu.dot_dimension_numbers<[1], [0], [0], [1], [0, 0, 1, 1], [], []>} : vector<8x128xf32>, vector<128x128xf32>, vector<8x128xf32> -> vector<8x128xf32>
      %c0_127 = arith.constant 0 : index
      %c0_128 = arith.constant 0 : index
      %319 = vector.load %arg5[%c0_127, %c0_128] : memref<1x128xf32, #tpu.memory_space<vmem>>, vector<1x128xf32>
      %320 = vector.broadcast %319 : vector<1x128xf32> to vector<8x128xf32>
      %321 = arith.addf %318, %320 : vector<8x128xf32>
      %c0_129 = arith.constant 0 : index
      %c0_130 = arith.constant 0 : index
      %322 = vector.load %arg6[%c0_129, %c0_130] : memref<8x128xf32, #tpu.memory_space<vmem>>, vector<8x128xf32>
      tpu.vector_store %arg6[%c0_129, %c0_130], %321 {strides = array<i32>} : memref<8x128xf32, #tpu.memory_space<vmem>>, vector<8x128xf32>,
    } else {
    }
    return
  }
  func.func @transform_0(%arg0: i32) -> (i32, i32, i32) {
    %c0_i32 = arith.constant 0 : i32
    %c0_i32_0 = arith.constant 0 : i32
    %c0_i32_1 = arith.constant 0 : i32
    return %arg0, %c0_i32, %c0_i32_0 : i32, i32, i32
  }
  func.func @transform_1(%arg0: i32) -> (i32, i32) {
    %c0_i32 = arith.constant 0 : i32
    %c0_i32_0 = arith.constant 0 : i32
    %c0_i32_1 = arith.constant 0 : i32
    return %c0_i32, %c0_i32_0 : i32, i32
  }
  func.func @transform_2(%arg0: i32) -> (i32, i32) {
    %c0_i32 = arith.constant 0 : i32
    %c0_i32_0 = arith.constant 0 : i32
    %c0_i32_1 = arith.constant 0 : i32
    return %c0_i32, %c0_i32_0 : i32, i32
  }
  func.func @transform_3(%arg0: i32) -> (i32, i32) {
    %c0_i32 = arith.constant 0 : i32
    %c0_i32_0 = arith.constant 0 : i32
    %c0_i32_1 = arith.constant 0 : i32
    return %c0_i32, %c0_i32_0 : i32, i32
  }
  func.func @transform_4(%arg0: i32) -> (i32, i32) {
    %c0_i32 = arith.constant 0 : i32
    %c0_i32_0 = arith.constant 0 : i32
    %c0_i32_1 = arith.constant 0 : i32
    return %c0_i32, %c0_i32_0 : i32, i32
  }
  func.func @transform_5(%arg0: i32) -> (i32, i32) {
    %c0_i32 = arith.constant 0 : i32
    %c0_i32_0 = arith.constant 0 : i32
    %c0_i32_1 = arith.constant 0 : i32
    return %c0_i32, %c0_i32_0 : i32, i32
  }
}

</mosaic_0001>

<bundles_post_ra>
// kernel: tpu_custom_call.1
= control target key start
LH: loop header
LB: loop body
LE: loop exit
PB: predicated region body
PF: predicated region fallthrough
CT: control target
= control target key end

     0   :  { %10 = vsyncpa [#allocation5], 0  ;;  %s3705_s0 = inlined_call_operand.hbm [shape: f32[8,8,128], index: 0, kind: input, shape index: {}]   ;;  %s3706_s1 = inlined_call_operand.hbm [shape: f32[256,512], index: 1, kind: input, shape index: {}]   ;;  %s3707_s2 = inlined_call_operand.hbm [shape: f32[1,512], index: 2, kind: input, shape index: {}]   ;;  %s3708_s3 = inlined_call_operand.hbm [shape: f32[128,128], index: 3, kind: input, shape index: {}]   ;;  %s3709_s4 = inlined_call_operand.vmem [shape: f32[1,128], index: 4, kind: input, shape index: {}]   ;;  %s3710_s5 = inlined_call_operand.hbm [shape: f32[8,128], index: 5, kind: output, shape index: {}]  }
   0x1   :  { %11 = vsyncpa [#allocation8], 0 }
   0x2   :  { %12 = vsyncpa [#allocation11], 0 }
   0x3   :  { %13 = vsyncpa [#allocation6], 0  ;;  %s2118_s18 = smov [#allocation7]  }
   0x4   :  { %s31_s19 = sshll.u32 %s2118_s18, 4  ;;  %s32_s19 = int_to_ptr.vmem [resolvable:$true] %s31_s19 }
   0x5   :  { %s2018_s20 = scalar_lea.vmem %s32_s19, 16384  ;;  %p2023_p1 = scmp.lt.s32.totalorder %s32_s19, %s32_s19 }
   0x6   :  { %p2019_p0 = scmp.ne.s32.totalorder %s32_s19, %s2018_s20  ;;  %p2024_p2 = scmp.lt.s32.totalorder %s2018_s20, %s2018_s20 }
   0x8   :  { %p2025_p3 = por %p2024_p2, %p2023_p1 }
   0xa   :  { %p2026_p4 = pnand %p2025_p3, %p2019_p0 }
   0xc   :  { %2029 = shalt.err (!%p2026_p4)
}
   0xd   :  { %s2119_s21 = smov 512   ;;  %s2120_s22 = smov 32  }
   0xe   :  { %37 = dma.hbm_to_vmem [thread:$0]  %s3706_s1, 16384, %s32_s19, [#allocation8], %s2119_s21, %s2119_s21, %s2120_s22  }
   0xf   :  { %s2121_s25 = smov [#allocation4]  }
  0x10   :  { %s19_s26 = sshll.u32 %s2121_s25, 4  ;;  %s20_s26 = int_to_ptr.vmem [resolvable:$true] %s19_s26 }
  0x11   :  { %s2038_s27 = scalar_lea.vmem %s20_s26, 1024  ;;  %p2043_p6 = scmp.lt.s32.totalorder %s20_s26, %s20_s26 }
  0x12   :  { %p2039_p5 = scmp.ne.s32.totalorder %s20_s26, %s2038_s27  ;;  %p2044_p7 = scmp.lt.s32.totalorder %s2038_s27, %s2038_s27 }
  0x14   :  { %p2045_p8 = por %p2044_p7, %p2043_p6 }
  0x16   :  { %p2046_p9 = pnand %p2045_p8, %p2039_p5 }
  0x18   :  { %2049 = shalt.err (!%p2046_p9)
}
  0x19   :  { %s2122_s28 = smov 128   ;;  %s2123_s29 = smov 8  }
  0x1a   :  { %25 = dma.hbm_to_vmem [thread:$0]  %s3705_s0, 1024, %s20_s26, [#allocation5], %s2122_s28, %s2122_s28, %s2123_s29  }
  0x1b   :  { %s2124_s7 = smov [#allocation9]   ;;  %s2125_s9 = smov [#allocation10]  }
  0x1c   :  { %s44_s8 = sshll.u32 %s2124_s7, 4  ;;  %s53_s1 = sshll.u32 %s2125_s9, 4  ;;  %s45_s8 = int_to_ptr.vmem [resolvable:$true] %s44_s8  ;;  %s54_s1 = int_to_ptr.vmem [resolvable:$true] %s53_s1 }
  0x1d   :  { %s2058_s10 = scalar_lea.vmem %s45_s8, 64  ;;  %p2063_p11 = scmp.lt.s32.totalorder %s45_s8, %s45_s8 }
  0x1e   :  { %p2059_p10 = scmp.ne.s32.totalorder %s45_s8, %s2058_s10  ;;  %p2064_p12 = scmp.lt.s32.totalorder %s2058_s10, %s2058_s10 }
  0x20   :  { %p2065_p13 = por %p2064_p12, %p2063_p11 }
  0x22   :  { %p2066_p0 = pnand %p2065_p13, %p2059_p10 }
  0x24   :  { %2069 = shalt.err (!%p2066_p0)
}
  0x25   :  { %47 = dma.hbm_to_vmem [thread:$0]  %s3707_s2, 64, %s45_s8, [#allocation8]  }
  0x26   :  { %s2078_s13 = scalar_lea.vmem %s54_s1, 2048  ;;  %p2083_p2 = scmp.lt.s32.totalorder %s54_s1, %s54_s1 }
  0x27   :  { %p2079_p1 = scmp.ne.s32.totalorder %s54_s1, %s2078_s13  ;;  %p2084_p3 = scmp.lt.s32.totalorder %s2078_s13, %s2078_s13 }
  0x29   :  { %p2085_p4 = por %p2084_p3, %p2083_p2 }
  0x2b   :  { %p2086_p5 = pnand %p2085_p4, %p2079_p1 }
  0x2d   :  { %2089 = shalt.err (!%p2086_p5)
}
  0x2e   :  { %59 = dma.hbm_to_vmem [thread:$0]  %s3708_s3, 2048, %s54_s1, [#allocation11], %s2122_s28, %s2122_s28, %s2123_s29  }
  0x2f   :  { %2110 = dma.done.wait [#allocation5], 1024  }
  0x30   :  { %2111 = vsyncadd [#allocation5], 4294966272 }
  0x31   :  { %2112 = dma.done.wait [#allocation8], 16448  }
  0x32   :  { %2113 = vsyncadd [#allocation8], 4294950848 }
  0x33   :  { %2114 = dma.done.wait [#allocation11], 2048  }
  0x34   :  { %2115 = vsyncadd [#allocation11], 4294965248  ;;  %v2171_v0 = vld [vmem:[#allocation7 + $0x1e8] sm:$0xff]  ;;  %v2173_v1 = vld [vmem:[#allocation7 + $0x1e0] sm:$0xff]  ;;  %vm2127_vm0 = vmmov 0   ;;  %s2128_s15 = smov [#allocation12]  }
  0x35   :  { %v2175_v2 = vld [vmem:[#allocation7 + $0x1c8] sm:$0xff]  ;;  %233 = vmatprep.subr.mxu0 %v2171_v0  ;;  %v2178_v3 = vld [vmem:[#allocation7 + $0x1c0] sm:$0xff]  ;;  %v2183_v5 = vld [vmem:[#allocation7 + $0x1f8] sm:$0xff]  ;;  %s1632_s16 = sshll.u32 %s2128_s15, 4  ;;  %s1633_s16 = int_to_ptr.vmem [resolvable:$true] %s1632_s16 }
  0x36   :  { %234 = vmatpush1.msra.mxu0 %v2173_v1  ;;  %v2181_v4 = vld [vmem:[#allocation7 + $0x1a8] sm:$0xff]  ;;  %v2186_v6 = vld [vmem:[#allocation7 + $0x1a0] sm:$0xff]  ;;  %304 = vmatprep.subr.mxu1 %v2183_v5  ;;  %v2189_v7 = vld [vmem:[#allocation7 + $0x1f0] sm:$0xff]  ;;  %s2090_s17 = scalar_lea.vmem %s1633_s16, 128  ;;  %p2095_p7 = scmp.lt.s32.totalorder %s1633_s16, %s1633_s16 }
  0x37   :  { %235 = vmatprep.subr.mxu0 %v2175_v2  ;;  %v2191_v8 = vld [vmem:[#allocation7 + $0x1d8] sm:$0xff]  ;;  %v2194_v9 = vld [vmem:[#allocation7 + $0x188] sm:$0xff]  ;;  %305 = vmatpush1.msra.mxu1 %v2189_v7  ;;  %v2197_v10 = vld [vmem:[#allocation7 + $0x1d0] sm:$0xff]  ;;  %p2091_p6 = scmp.ne.s32.totalorder %s1633_s16, %s2090_s17  ;;  %p2096_p8 = scmp.lt.s32.totalorder %s2090_s17, %s2090_s17 }
  0x38   :  { %236 = vmatpush1.msra.mxu0 %v2178_v3  ;;  %v2200_v11 = vld [vmem:[#allocation7 + $0x180] sm:$0xff]  ;;  %306 = vmatprep.subr.mxu1 %v2191_v8  ;;  %v2203_v12 = vld [vmem:[#allocation7 + $0x1b8] sm:$0xff]  ;;  %v2205_v13 = vld [vmem:[#allocation7 + $0x1b0] sm:$0xff] }
  0x39   :  { %237 = vmatprep.subr.mxu0 %v2181_v4  ;;  %v2208_v14 = vld [vmem:[#allocation7 + $0x168] sm:$0xff]  ;;  %307 = vmatpush1.msra.mxu1 %v2197_v10  ;;  %v2211_v15 = vld [vmem:[#allocation7 + $0x198] sm:$0xff]  ;;  %v2214_v16 = vld [vmem:[#allocation7 + $0x160] sm:$0xff]  ;;  %p2097_p9 = por %p2096_p8, %p2095_p7 }
  0x3a   :  { %238 = vmatpush1.msra.mxu0 %v2186_v6  ;;  %308 = vmatprep.subr.mxu1 %v2203_v12  ;;  %v2217_v17 = vld [vmem:[#allocation7 + $0x190] sm:$0xff]  ;;  %v2220_v18 = vld [vmem:[#allocation7 + $0x148] sm:$0xff]  ;;  %v2223_v19 = vld [vmem:[#allocation7 + $0x178] sm:$0xff] }
  0x3b   :  { %239 = vmatprep.subr.mxu0 %v2194_v9  ;;  %309 = vmatpush1.msra.mxu1 %v2205_v13  ;;  %v2226_v20 = vld [vmem:[#allocation7 + $0x140] sm:$0xff]  ;;  %v2229_v21 = vld [vmem:[#allocation7 + $0x170] sm:$0xff]  ;;  %v2232_v22 = vld [vmem:[#allocation7 + $0x128] sm:$0xff]  ;;  %p2098_p10 = pnand %p2097_p9, %p2091_p6 }
  0x3c   :  { %240 = vmatpush1.msra.mxu0 %v2200_v11  ;;  %310 = vmatprep.subr.mxu1 %v2211_v15  ;;  %v2235_v23 = vld [vmem:[#allocation7 + $0x158] sm:$0xff]  ;;  %v2238_v24 = vld [vmem:[#allocation7 + $0x120] sm:$0xff]  ;;  %v2241_v25 = vld [vmem:[#allocation7 + $0x150] sm:$0xff] }
  0x3d   :  { %241 = vmatprep.subr.mxu0 %v2208_v14  ;;  %311 = vmatpush1.msra.mxu1 %v2217_v17  ;;  %v2244_v26 = vld [vmem:[#allocation7 + $0x108] sm:$0xff]  ;;  %v2247_v27 = vld [vmem:[#allocation7 + $0x138] sm:$0xff]  ;;  %v2250_v28 = vld [vmem:[#allocation7 + $0x100] sm:$0xff] }
  0x3e   :  { %242 = vmatpush1.msra.mxu0 %v2214_v16  ;;  %312 = vmatprep.subr.mxu1 %v2223_v19  ;;  %v2253_v29 = vld [vmem:[#allocation7 + $0x130] sm:$0xff]  ;;  %v2256_v30 = vld [vmem:[#allocation7 + $0xe8] sm:$0xff]  ;;  %v2259_v31 = vld [vmem:[#allocation7 + $0x118] sm:$0xff] }
  0x3f   :  { %243 = vmatprep.subr.mxu0 %v2220_v18  ;;  %313 = vmatpush1.msra.mxu1 %v2229_v21  ;;  %v2262_v32 = vld [vmem:[#allocation7 + $0xe0] sm:$0xff]  ;;  %v2265_v33 = vld [vmem:[#allocation7 + $0x110] sm:$0xff]  ;;  %v2268_v34 = vld [vmem:[#allocation7 + $0xc8] sm:$0xff] }
  0x40   :  { %244 = vmatpush1.msra.mxu0 %v2226_v20  ;;  %314 = vmatprep.subr.mxu1 %v2235_v23  ;;  %v2271_v35 = vld [vmem:[#allocation7 + $0xf8] sm:$0xff]  ;;  %v2274_v36 = vld [vmem:[#allocation7 + $0xc0] sm:$0xff]  ;;  %v2277_v37 = vld [vmem:[#allocation7 + $0xf0] sm:$0xff] }
  0x41   :  { %245 = vmatprep.subr.mxu0 %v2232_v22  ;;  %315 = vmatpush1.msra.mxu1 %v2241_v25  ;;  %v2280_v38 = vld [vmem:[#allocation7 + $0xa8] sm:$0xff]  ;;  %v2283_v39 = vld [vmem:[#allocation7 + $0xd8] sm:$0xff]  ;;  %v2286_v40 = vld [vmem:[#allocation7 + $0xa0] sm:$0xff] }
  0x42   :  { %246 = vmatpush1.msra.mxu0 %v2238_v24  ;;  %316 = vmatprep.subr.mxu1 %v2247_v27  ;;  %v2289_v41 = vld [vmem:[#allocation7 + $0xd0] sm:$0xff]  ;;  %v2292_v42 = vld [vmem:[#allocation7 + $0x88] sm:$0xff]  ;;  %v2295_v43 = vld [vmem:[#allocation7 + $0xb8] sm:$0xff] }
  0x43   :  { %247 = vmatprep.subr.mxu0 %v2244_v26  ;;  %317 = vmatpush1.msra.mxu1 %v2253_v29  ;;  %4099 = vst [vmem:[#allocation17_spill] sm:$0xff] %v2292_v42  ;;  %v2298_v44 = vld [vmem:[#allocation7 + $0x80] sm:$0xff]  ;;  %v2301_v45 = vld [vmem:[#allocation7 + $0xb0] sm:$0xff]  ;;  %v2304_v46 = vld [vmem:[#allocation7 + $0x68] sm:$0xff] }
  0x44   :  { %248 = vmatpush1.msra.mxu0 %v2250_v28  ;;  %318 = vmatprep.subr.mxu1 %v2259_v31  ;;  %4100 = vst [vmem:[#allocation18_spill] sm:$0xff] %v2298_v44  ;;  %4101 = vst [vmem:[#allocation19_spill] sm:$0xff] %v2304_v46  ;;  %v2307_v47 = vld [vmem:[#allocation7 + $0x98] sm:$0xff]  ;;  %v2310_v48 = vld [vmem:[#allocation7 + $0x60] sm:$0xff] }
  0x45   :  { %249 = vmatprep.subr.mxu0 %v2256_v30  ;;  %319 = vmatpush1.msra.mxu1 %v2265_v33  ;;  %4102 = vst [vmem:[#allocation20_spill] sm:$0xff] %v2307_v47  ;;  %4103 = vst [vmem:[#allocation21_spill] sm:$0xff] %v2310_v48  ;;  %v2313_v49 = vld [vmem:[#allocation7 + $0x90] sm:$0xff]  ;;  %v2316_v50 = vld [vmem:[#allocation7 + $0x48] sm:$0xff] }
  0x46   :  { %250 = vmatpush1.msra.mxu0 %v2262_v32  ;;  %320 = vmatprep.subr.mxu1 %v2271_v35  ;;  %4104 = vst [vmem:[#allocation22_spill] sm:$0xff] %v2313_v49  ;;  %4105 = vst [vmem:[#allocation23_spill] sm:$0xff] %v2316_v50  ;;  %v2319_v51 = vld [vmem:[#allocation7 + $0x78] sm:$0xff]  ;;  %v2322_v52 = vld [vmem:[#allocation7 + $0x40] sm:$0xff] }
  0x47   :  { %251 = vmatprep.subr.mxu0 %v2268_v34  ;;  %321 = vmatpush1.msra.mxu1 %v2277_v37  ;;  %4106 = vst [vmem:[#allocation24_spill] sm:$0xff] %v2319_v51  ;;  %4107 = vst [vmem:[#allocation25_spill] sm:$0xff] %v2322_v52  ;;  %v2325_v53 = vld [vmem:[#allocation7 + $0x70] sm:$0xff]  ;;  %v2328_v54 = vld [vmem:[#allocation7 + $0x28] sm:$0xff] }
  0x48   :  { %252 = vmatpush1.msra.mxu0 %v2274_v36  ;;  %322 = vmatprep.subr.mxu1 %v2283_v39  ;;  %4108 = vst [vmem:[#allocation26_spill] sm:$0xff] %v2325_v53  ;;  %4109 = vst [vmem:[#allocation27_spill] sm:$0xff] %v2328_v54  ;;  %v2331_v55 = vld [vmem:[#allocation7 + $0x58] sm:$0xff]  ;;  %v2334_v56 = vld [vmem:[#allocation7 + $0x20] sm:$0xff] }
  0x49   :  { %253 = vmatprep.subr.mxu0 %v2280_v38  ;;  %323 = vmatpush1.msra.mxu1 %v2289_v41  ;;  %4110 = vst [vmem:[#allocation28_spill] sm:$0xff] %v2331_v55  ;;  %4111 = vst [vmem:[#allocation29_spill] sm:$0xff] %v2334_v56  ;;  %v2337_v57 = vld [vmem:[#allocation7 + $0x50] sm:$0xff]  ;;  %v2340_v58 = vld [vmem:[#allocation7 + $0x8] sm:$0xff] }
  0x4a   :  { %254 = vmatpush1.msra.mxu0 %v2286_v40  ;;  %324 = vmatprep.subr.mxu1 %v2295_v43  ;;  %4112 = vst [vmem:[#allocation30_spill] sm:$0xff] %v2337_v57  ;;  %4113 = vst [vmem:[#allocation31_spill] sm:$0xff] %v2340_v58  ;;  %v2343_v59 = vld [vmem:[#allocation7 + $0x38] sm:$0xff]  ;;  %v2346_v60 = vld [vmem:[#allocation7] sm:$0xff] }
  0x4b   :  { %255 = vmatprep.subr.mxu0 %v2292_v42  ;;  %325 = vmatpush1.msra.mxu1 %v2301_v45  ;;  %4114 = vst [vmem:[#allocation32_spill] sm:$0xff] %v2343_v59  ;;  %4115 = vst [vmem:[#allocation33_spill] sm:$0xff] %v2346_v60  ;;  %v2349_v61 = vld [vmem:[#allocation7 + $0x30] sm:$0xff]  ;;  %v2352_v62 = vld [vmem:[#allocation7 + $0x3e8] sm:$0xff] }
  0x4c   :  { %256 = vmatpush1.msra.mxu0 %v2298_v44  ;;  %326 = vmatprep.subr.mxu1 %v2307_v47  ;;  %4116 = vst [vmem:[#allocation34_spill] sm:$0xff] %v2349_v61  ;;  %4117 = vst [vmem:[#allocation35_spill] sm:$0xff] %v2352_v62  ;;  %v2355_v63 = vld [vmem:[#allocation7 + $0x18] sm:$0xff] }
  0x4d   :  { %257 = vmatprep.subr.mxu0 %v2304_v46  ;;  %327 = vmatpush1.msra.mxu1 %v2313_v49  ;;  %4118 = vst [vmem:[#allocation36_spill] sm:$0xff] %v2355_v63 }
  0x4e   :  { %258 = vmatpush1.msra.mxu0 %v2310_v48  ;;  %328 = vmatprep.subr.mxu1 %v2319_v51 }
  0x4f   :  { %259 = vmatprep.subr.mxu0 %v2316_v50  ;;  %329 = vmatpush1.msra.mxu1 %v2325_v53 }
  0x50   :  { %260 = vmatpush1.msra.mxu0 %v2322_v52  ;;  %330 = vmatprep.subr.mxu1 %v2331_v55  ;;  %v2358_v52 = vld [vmem:[#allocation7 + $0x3e0] sm:$0xff]  ;;  %v2364_v55 = vld [vmem:[#allocation7 + $0x3c8] sm:$0xff] }
  0x51   :  { %261 = vmatprep.subr.mxu0 %v2328_v54  ;;  %331 = vmatpush1.msra.mxu1 %v2337_v57  ;;  %4119 = vst [vmem:[#allocation37_spill] sm:$0xff] %v2358_v52  ;;  %v2361_v54 = vld [vmem:[#allocation7 + $0x10] sm:$0xff]  ;;  %4121 = vst [vmem:[#allocation39_spill] sm:$0xff] %v2364_v55  ;;  %v2370_v57 = vld [vmem:[#allocation7 + $0x3c0] sm:$0xff] }
  0x52   :  { %262 = vmatpush1.msra.mxu0 %v2334_v56  ;;  %332 = vmatprep.subr.mxu1 %v2343_v59  ;;  %4120 = vst [vmem:[#allocation38_spill] sm:$0xff] %v2361_v54  ;;  %v2367_v56 = vld [vmem:[#allocation7 + $0x3f8] sm:$0xff]  ;;  %4123 = vst [vmem:[#allocation41_spill] sm:$0xff] %v2370_v57  ;;  %v2376_v59 = vld [vmem:[#allocation7 + $0x3a8] sm:$0xff] }
  0x53   :  { %263 = vmatprep.subr.mxu0 %v2340_v58  ;;  %333 = vmatpush1.msra.mxu1 %v2349_v61  ;;  %4122 = vst [vmem:[#allocation40_spill] sm:$0xff] %v2367_v56  ;;  %v2373_v58 = vld [vmem:[#allocation7 + $0x3f0] sm:$0xff]  ;;  %4125 = vst [vmem:[#allocation43_spill] sm:$0xff] %v2376_v59  ;;  %v2382_v61 = vld [vmem:[#allocation7 + $0x3a0] sm:$0xff] }
  0x54   :  { %264 = vmatpush1.msra.mxu0 %v2346_v60  ;;  %334 = vmatprep.subr.mxu1 %v2355_v63  ;;  %4124 = vst [vmem:[#allocation42_spill] sm:$0xff] %v2373_v58  ;;  %v2379_v60 = vld [vmem:[#allocation7 + $0x3d8] sm:$0xff]  ;;  %4127 = vst [vmem:[#allocation45_spill] sm:$0xff] %v2382_v61  ;;  %v2388_v63 = vld [vmem:[#allocation7 + $0x388] sm:$0xff] }
  0x55   :  { %265 = vmatprep.subr.mxu0 %v2352_v62  ;;  %335 = vmatpush1.msra.mxu1 %v2361_v54  ;;  %4126 = vst [vmem:[#allocation44_spill] sm:$0xff] %v2379_v60  ;;  %v2385_v62 = vld [vmem:[#allocation7 + $0x3d0] sm:$0xff]  ;;  %4129 = vst [vmem:[#allocation47_spill] sm:$0xff] %v2388_v63  ;;  %v2394_v54 = vld [vmem:[#allocation7 + $0x380] sm:$0xff] }
  0x56   :  { %266 = vmatpush2.msra.mxu0 %v2358_v52  ;;  %336 = vmatprep.subr.mxu1 %v2367_v56  ;;  %4128 = vst [vmem:[#allocation46_spill] sm:$0xff] %v2385_v62  ;;  %v2391_v52 = vld [vmem:[#allocation7 + $0x3b8] sm:$0xff]  ;;  %4131 = vst [vmem:[#allocation49_spill] sm:$0xff] %v2394_v54  ;;  %v2400_v56 = vld [vmem:[#allocation7 + $0x368] sm:$0xff] }
  0x57   :  { %267 = vmatprep.subr.mxu0 %v2364_v55  ;;  %337 = vmatpush2.msra.mxu1 %v2373_v58  ;;  %4130 = vst [vmem:[#allocation48_spill] sm:$0xff] %v2391_v52  ;;  %v2397_v55 = vld [vmem:[#allocation7 + $0x3b0] sm:$0xff]  ;;  %4133 = vst [vmem:[#allocation51_spill] sm:$0xff] %v2400_v56  ;;  %v2406_v58 = vld [vmem:[#allocation7 + $0x360] sm:$0xff] }
  0x58   :  { %268 = vmatpush2.msra.mxu0 %v2370_v57  ;;  %338 = vmatprep.subr.mxu1 %v2379_v60  ;;  %4132 = vst [vmem:[#allocation50_spill] sm:$0xff] %v2397_v55  ;;  %v2403_v57 = vld [vmem:[#allocation7 + $0x398] sm:$0xff]  ;;  %4135 = vst [vmem:[#allocation53_spill] sm:$0xff] %v2406_v58  ;;  %v2412_v60 = vld [vmem:[#allocation7 + $0x348] sm:$0xff] }
  0x59   :  { %269 = vmatprep.subr.mxu0 %v2376_v59  ;;  %339 = vmatpush2.msra.mxu1 %v2385_v62  ;;  %4134 = vst [vmem:[#allocation52_spill] sm:$0xff] %v2403_v57  ;;  %v2409_v59 = vld [vmem:[#allocation7 + $0x390] sm:$0xff]  ;;  %4137 = vst [vmem:[#allocation55_spill] sm:$0xff] %v2412_v60  ;;  %v2418_v62 = vld [vmem:[#allocation7 + $0x340] sm:$0xff] }
  0x5a   :  { %270 = vmatpush2.msra.mxu0 %v2382_v61  ;;  %340 = vmatprep.subr.mxu1 %v2391_v52  ;;  %4136 = vst [vmem:[#allocation54_spill] sm:$0xff] %v2409_v59  ;;  %v2415_v61 = vld [vmem:[#allocation7 + $0x378] sm:$0xff]  ;;  %4139 = vst [vmem:[#allocation57_spill] sm:$0xff] %v2418_v62  ;;  %v2424_v52 = vld [vmem:[#allocation7 + $0x328] sm:$0xff] }
  0x5b   :  { %271 = vmatprep.subr.mxu0 %v2388_v63  ;;  %341 = vmatpush2.msra.mxu1 %v2397_v55  ;;  %4138 = vst [vmem:[#allocation56_spill] sm:$0xff] %v2415_v61  ;;  %v2421_v63 = vld [vmem:[#allocation7 + $0x370] sm:$0xff]  ;;  %4141 = vst [vmem:[#allocation59_spill] sm:$0xff] %v2424_v52  ;;  %v2430_v55 = vld [vmem:[#allocation7 + $0x320] sm:$0xff] }
  0x5c   :  { %272 = vmatpush2.msra.mxu0 %v2394_v54  ;;  %342 = vmatprep.subr.mxu1 %v2403_v57  ;;  %4140 = vst [vmem:[#allocation58_spill] sm:$0xff] %v2421_v63  ;;  %v2427_v54 = vld [vmem:[#allocation7 + $0x358] sm:$0xff]  ;;  %4143 = vst [vmem:[#allocation61_spill] sm:$0xff] %v2430_v55  ;;  %v2436_v57 = vld [vmem:[#allocation7 + $0x308] sm:$0xff] }
  0x5d   :  { %273 = vmatprep.subr.mxu0 %v2400_v56  ;;  %343 = vmatpush2.msra.mxu1 %v2409_v59  ;;  %4142 = vst [vmem:[#allocation60_spill] sm:$0xff] %v2427_v54  ;;  %v2433_v56 = vld [vmem:[#allocation7 + $0x350] sm:$0xff]  ;;  %4145 = vst [vmem:[#allocation63_spill] sm:$0xff] %v2436_v57  ;;  %v2442_v59 = vld [vmem:[#allocation7 + $0x300] sm:$0xff] }
  0x5e   :  { %274 = vmatpush2.msra.mxu0 %v2406_v58  ;;  %344 = vmatprep.subr.mxu1 %v2415_v61  ;;  %4144 = vst [vmem:[#allocation62_spill] sm:$0xff] %v2433_v56  ;;  %v2439_v58 = vld [vmem:[#allocation7 + $0x338] sm:$0xff]  ;;  %4147 = vst [vmem:[#allocation65_spill] sm:$0xff] %v2442_v59  ;;  %v2448_v61 = vld [vmem:[#allocation7 + $0x2e8] sm:$0xff] }
  0x5f   :  { %275 = vmatprep.subr.mxu0 %v2412_v60  ;;  %345 = vmatpush2.msra.mxu1 %v2421_v63  ;;  %4146 = vst [vmem:[#allocation64_spill] sm:$0xff] %v2439_v58  ;;  %v2445_v60 = vld [vmem:[#allocation7 + $0x330] sm:$0xff]  ;;  %4149 = vst [vmem:[#allocation67_spill] sm:$0xff] %v2448_v61  ;;  %v2454_v63 = vld [vmem:[#allocation7 + $0x2e0] sm:$0xff] }
  0x60   :  { %276 = vmatpush2.msra.mxu0 %v2418_v62  ;;  %346 = vmatprep.subr.mxu1 %v2427_v54  ;;  %4148 = vst [vmem:[#allocation66_spill] sm:$0xff] %v2445_v60  ;;  %v2451_v62 = vld [vmem:[#allocation7 + $0x318] sm:$0xff]  ;;  %4151 = vst [vmem:[#allocation69_spill] sm:$0xff] %v2454_v63  ;;  %v2460_v54 = vld [vmem:[#allocation7 + $0x2c8] sm:$0xff] }
  0x61   :  { %277 = vmatprep.subr.mxu0 %v2424_v52  ;;  %347 = vmatpush2.msra.mxu1 %v2433_v56  ;;  %4150 = vst [vmem:[#allocation68_spill] sm:$0xff] %v2451_v62  ;;  %v2457_v52 = vld [vmem:[#allocation7 + $0x310] sm:$0xff]  ;;  %4153 = vst [vmem:[#allocation71_spill] sm:$0xff] %v2460_v54  ;;  %v2466_v56 = vld [vmem:[#allocation7 + $0x2c0] sm:$0xff] }
  0x62   :  { %278 = vmatpush2.msra.mxu0 %v2430_v55  ;;  %348 = vmatprep.subr.mxu1 %v2439_v58  ;;  %4152 = vst [vmem:[#allocation70_spill] sm:$0xff] %v2457_v52  ;;  %v2463_v55 = vld [vmem:[#allocation7 + $0x2f8] sm:$0xff]  ;;  %4155 = vst [vmem:[#allocation73_spill] sm:$0xff] %v2466_v56  ;;  %v2472_v58 = vld [vmem:[#allocation7 + $0x2a8] sm:$0xff] }
  0x63   :  { %279 = vmatprep.subr.mxu0 %v2436_v57  ;;  %349 = vmatpush2.msra.mxu1 %v2445_v60  ;;  %4154 = vst [vmem:[#allocation72_spill] sm:$0xff] %v2463_v55  ;;  %v2469_v57 = vld [vmem:[#allocation7 + $0x2f0] sm:$0xff]  ;;  %4157 = vst [vmem:[#allocation75_spill] sm:$0xff] %v2472_v58  ;;  %v2478_v60 = vld [vmem:[#allocation7 + $0x2a0] sm:$0xff] }
  0x64   :  { %280 = vmatpush2.msra.mxu0 %v2442_v59  ;;  %350 = vmatprep.subr.mxu1 %v2451_v62  ;;  %4156 = vst [vmem:[#allocation74_spill] sm:$0xff] %v2469_v57  ;;  %v2475_v59 = vld [vmem:[#allocation7 + $0x2d8] sm:$0xff]  ;;  %4159 = vst [vmem:[#allocation77_spill] sm:$0xff] %v2478_v60  ;;  %v2484_v62 = vld [vmem:[#allocation7 + $0x288] sm:$0xff] }
  0x65   :  { %281 = vmatprep.subr.mxu0 %v2448_v61  ;;  %351 = vmatpush2.msra.mxu1 %v2457_v52  ;;  %4158 = vst [vmem:[#allocation76_spill] sm:$0xff] %v2475_v59  ;;  %v2481_v61 = vld [vmem:[#allocation7 + $0x2d0] sm:$0xff]  ;;  %4161 = vst [vmem:[#allocation79_spill] sm:$0xff] %v2484_v62  ;;  %v2490_v52 = vld [vmem:[#allocation7 + $0x280] sm:$0xff] }
  0x66   :  { %282 = vmatpush2.msra.mxu0 %v2454_v63  ;;  %352 = vmatprep.subr.mxu1 %v2463_v55  ;;  %4160 = vst [vmem:[#allocation78_spill] sm:$0xff] %v2481_v61  ;;  %v2487_v63 = vld [vmem:[#allocation7 + $0x2b8] sm:$0xff]  ;;  %4163 = vst [vmem:[#allocation81_spill] sm:$0xff] %v2490_v52  ;;  %v2496_v55 = vld [vmem:[#allocation7 + $0x268] sm:$0xff] }
  0x67   :  { %283 = vmatprep.subr.mxu0 %v2460_v54  ;;  %353 = vmatpush2.msra.mxu1 %v2469_v57  ;;  %4162 = vst [vmem:[#allocation80_spill] sm:$0xff] %v2487_v63  ;;  %v2493_v54 = vld [vmem:[#allocation7 + $0x2b0] sm:$0xff]  ;;  %4165 = vst [vmem:[#allocation83_spill] sm:$0xff] %v2496_v55  ;;  %v2502_v57 = vld [vmem:[#allocation7 + $0x260] sm:$0xff] }
  0x68   :  { %284 = vmatpush2.msra.mxu0 %v2466_v56  ;;  %354 = vmatprep.subr.mxu1 %v2475_v59  ;;  %4164 = vst [vmem:[#allocation82_spill] sm:$0xff] %v2493_v54  ;;  %v2499_v56 = vld [vmem:[#allocation7 + $0x298] sm:$0xff]  ;;  %4167 = vst [vmem:[#allocation85_spill] sm:$0xff] %v2502_v57  ;;  %v2508_v59 = vld [vmem:[#allocation7 + $0x248] sm:$0xff] }
  0x69   :  { %285 = vmatprep.subr.mxu0 %v2472_v58  ;;  %355 = vmatpush2.msra.mxu1 %v2481_v61  ;;  %4166 = vst [vmem:[#allocation84_spill] sm:$0xff] %v2499_v56  ;;  %v2505_v58 = vld [vmem:[#allocation7 + $0x290] sm:$0xff]  ;;  %4169 = vst [vmem:[#allocation87_spill] sm:$0xff] %v2508_v59  ;;  %v2514_v61 = vld [vmem:[#allocation7 + $0x240] sm:$0xff] }
  0x6a   :  { %286 = vmatpush2.msra.mxu0 %v2478_v60  ;;  %356 = vmatprep.subr.mxu1 %v2487_v63  ;;  %4168 = vst [vmem:[#allocation86_spill] sm:$0xff] %v2505_v58  ;;  %v2511_v60 = vld [vmem:[#allocation7 + $0x278] sm:$0xff]  ;;  %4171 = vst [vmem:[#allocation89_spill] sm:$0xff] %v2514_v61  ;;  %v2518_v63 = vld [vmem:[#allocation7 + $0x228] sm:$0xff] }
  0x6b   :  { %287 = vmatprep.subr.mxu0 %v2484_v62  ;;  %357 = vmatpush2.msra.mxu1 %v2493_v54  ;;  %4170 = vst [vmem:[#allocation88_spill] sm:$0xff] %v2511_v60  ;;  %v104_v62 = vld [vmem:[#allocation4] sm:$0xff]  ;;  %4172 = vst [vmem:[#allocation90_spill] sm:$0xff] %v2518_v63 }
  0x6c   :  { %288 = vmatpush2.msra.mxu0 %v2490_v52  ;;  %358 = vmatprep.subr.mxu1 %v2499_v56  ;;  %v2521_v52 = vld [vmem:[#allocation7 + $0x270] sm:$0xff]  ;;  %v2524_v54 = vld [vmem:[#allocation7 + $0x220] sm:$0xff]  ;;  %v2530_v56 = vld [vmem:[#allocation7 + $0x208] sm:$0xff] }
  0x6d   :  { %289 = vmatprep.subr.mxu0 %v2496_v55  ;;  %359 = vmatpush2.msra.mxu1 %v2505_v58  ;;  %4173 = vst [vmem:[#allocation91_spill] sm:$0xff] %v2521_v52  ;;  %4174 = vst [vmem:[#allocation92_spill] sm:$0xff] %v2524_v54  ;;  %v2527_v55 = vld [vmem:[#allocation7 + $0x258] sm:$0xff]  ;;  %v2535_v58 = vld [vmem:[#allocation7 + $0x200] sm:$0xff] }
  0x6e   :  { %290 = vmatpush2.msra.mxu0 %v2502_v57  ;;  %360 = vmatprep.subr.mxu1 %v2511_v60  ;;  %4175 = vst [vmem:[#allocation93_spill] sm:$0xff] %v2527_v55  ;;  %4176 = vst [vmem:[#allocation94_spill] sm:$0xff] %v2530_v56  ;;  %v2532_v57 = vld [vmem:[#allocation7 + $0x250] sm:$0xff] }
  0x6f   :  { %291 = vmatprep.subr.mxu0 %v2508_v59  ;;  %297 = vmatprep.mubr.f32.mxu0 %v104_v62  ;;  %4177 = vst [vmem:[#allocation95_spill] sm:$0xff] %v2532_v57  ;;  %4178 = vst [vmem:[#allocation96_spill] sm:$0xff] %v2535_v58  ;;  %v2538_v59 = vld [vmem:[#allocation7 + $0x238] sm:$0xff]  ;;  %v2542_v60 = vld [vmem:[#allocation7 + $0x230] sm:$0xff] }
  0x70   :  { %292 = vmatpush2.msra.mxu0 %v2514_v61  ;;  %361 = vmatpush2.msra.mxu1 %v2521_v52  ;;  %4179 = vst [vmem:[#allocation97_spill] sm:$0xff] %v2538_v59  ;;  %4180 = vst [vmem:[#allocation98_spill] sm:$0xff] %v2542_v60  ;;  %v2546_v61 = vld [vmem:[#allocation7 + $0x218] sm:$0xff]  ;;  %v3843_v52 = vmov 0.0  }
  0x71   :  { %293 = vmatprep.subr.mxu0 %v2518_v63  ;;  %362 = vmatprep.subr.mxu1 %v2527_v55  ;;  %4181 = vst [vmem:[#allocation99_spill] sm:$0xff] %v2546_v61  ;;  %v2550_v63 = vld [vmem:[#allocation7 + $0x210] sm:$0xff] }
  0x72   :  { %294 = vmatpush2.msra.mxu0 %v2524_v54  ;;  %363 = vmatpush2.msra.mxu1 %v2532_v57  ;;  %4182 = vst [vmem:[#allocation100_spill] sm:$0xff] %v2550_v63 }
  0x73   :  { %295 = vmatprep.subr.mxu0 %v2530_v56  ;;  %364 = vmatprep.subr.mxu1 %v2538_v59 }
  0x74   :  { %296 = vmatpush2.msra.mxu0 %v2535_v58  ;;  %365 = vmatpush2.msra.mxu1 %v2542_v60 }
  0x75   :  { %298 = vmatmul.mubr.f32.vlgmr.msra.gmra.mxu0 %v3843_v52  ;;  %366 = vmatprep.subr.mxu1 %v2546_v61 }
  0x76   :  { %368 = vmatprep.mubr.f32.mxu1 %v104_v62  ;;  %367 = vmatpush2.msra.mxu1 %v2550_v63  ;;  %v4183_v62 = vld [vmem:[#allocation28_spill] sm:$0xff] }
  0x77   :  { %395 = vmatprep.subr.mxu0 %v2171_v0  ;;  %369 = vmatmul.mubr.f32.vlgmr.msra.gmra.mxu1 %v3843_v52  ;;  %v4184_v52 = vld [vmem:[#allocation25_spill] sm:$0xff] }
  0x78   :  { %466 = vmatprep.subr.mxu1 %v2183_v5  ;;  %396 = vmatpush1.msra.mxu0 %v2173_v1 }
  0x79   :  { %467 = vmatpush1.msra.mxu1 %v2189_v7  ;;  %397 = vmatprep.subr.mxu0 %v2175_v2 }
  0x7a   :  { %468 = vmatprep.subr.mxu1 %v2191_v8  ;;  %398 = vmatpush1.msra.mxu0 %v2178_v3 }
  0x7b   :  { %469 = vmatpush1.msra.mxu1 %v2197_v10  ;;  %399 = vmatprep.subr.mxu0 %v2181_v4 }
  0x7c   :  { %470 = vmatprep.subr.mxu1 %v2203_v12  ;;  %400 = vmatpush1.msra.mxu0 %v2186_v6 }
  0x7d   :  { %471 = vmatpush1.msra.mxu1 %v2205_v13  ;;  %401 = vmatprep.subr.mxu0 %v2194_v9 }
  0x7e   :  { %472 = vmatprep.subr.mxu1 %v2211_v15  ;;  %402 = vmatpush1.msra.mxu0 %v2200_v11 }
  0x7f   :  { %473 = vmatpush1.msra.mxu1 %v2217_v17  ;;  %403 = vmatprep.subr.mxu0 %v2208_v14 }
  0x80   :  { %474 = vmatprep.subr.mxu1 %v2223_v19  ;;  %404 = vmatpush1.msra.mxu0 %v2214_v16 }
  0x81   :  { %475 = vmatpush1.msra.mxu1 %v2229_v21  ;;  %405 = vmatprep.subr.mxu0 %v2220_v18 }
  0x82   :  { %476 = vmatprep.subr.mxu1 %v2235_v23  ;;  %406 = vmatpush1.msra.mxu0 %v2226_v20 }
  0x83   :  { %477 = vmatpush1.msra.mxu1 %v2241_v25  ;;  %407 = vmatprep.subr.mxu0 %v2232_v22 }
  0x84   :  { %478 = vmatprep.subr.mxu1 %v2247_v27  ;;  %408 = vmatpush1.msra.mxu0 %v2238_v24 }
  0x85   :  { %479 = vmatpush1.msra.mxu1 %v2253_v29  ;;  %409 = vmatprep.subr.mxu0 %v2244_v26 }
  0x86   :  { %480 = vmatprep.subr.mxu1 %v2259_v31  ;;  %410 = vmatpush1.msra.mxu0 %v2250_v28 }
  0x87   :  { %481 = vmatpush1.msra.mxu1 %v2265_v33  ;;  %411 = vmatprep.subr.mxu0 %v2256_v30 }
  0x88   :  { %482 = vmatprep.subr.mxu1 %v2271_v35  ;;  %412 = vmatpush1.msra.mxu0 %v2262_v32 }
  0x89   :  { %483 = vmatpush1.msra.mxu1 %v2277_v37  ;;  %413 = vmatprep.subr.mxu0 %v2268_v34 }
  0x8a   :  { %484 = vmatprep.subr.mxu1 %v2283_v39  ;;  %414 = vmatpush1.msra.mxu0 %v2274_v36 }
  0x8b   :  { %485 = vmatpush1.msra.mxu1 %v2289_v41  ;;  %415 = vmatprep.subr.mxu0 %v2280_v38 }
  0x8c   :  { %486 = vmatprep.subr.mxu1 %v2295_v43  ;;  %416 = vmatpush1.msra.mxu0 %v2286_v40 }
  0x8d   :  { %487 = vmatpush1.msra.mxu1 %v2301_v45  ;;  %417 = vmatprep.subr.mxu0 %v2292_v42  ;;  %v4185_v42 = vld [vmem:[#allocation30_spill] sm:$0xff] }
  0x8e   :  { %488 = vmatprep.subr.mxu1 %v2307_v47  ;;  %418 = vmatpush1.msra.mxu0 %v2298_v44  ;;  %v4186_v47 = vld [vmem:[#allocation27_spill] sm:$0xff]  ;;  %v4187_v44 = vld [vmem:[#allocation32_spill] sm:$0xff] }
  0x8f   :  { %489 = vmatpush1.msra.mxu1 %v2313_v49  ;;  %419 = vmatprep.subr.mxu0 %v2304_v46  ;;  %v4188_v49 = vld [vmem:[#allocation29_spill] sm:$0xff]  ;;  %v4189_v46 = vld [vmem:[#allocation34_spill] sm:$0xff] }
  0x90   :  { %490 = vmatprep.subr.mxu1 %v2319_v51  ;;  %420 = vmatpush1.msra.mxu0 %v2310_v48  ;;  %v4190_v51 = vld [vmem:[#allocation31_spill] sm:$0xff]  ;;  %v4191_v48 = vld [vmem:[#allocation36_spill] sm:$0xff] }
  0x91   :  { %491 = vmatpush1.msra.mxu1 %v2325_v53  ;;  %421 = vmatprep.subr.mxu0 %v2316_v50  ;;  %v4192_v53 = vld [vmem:[#allocation33_spill] sm:$0xff]  ;;  %v4193_v50 = vld [vmem:[#allocation38_spill] sm:$0xff] }
  0x92   :  { %492 = vmatprep.subr.mxu1 %v4183_v62  ;;  %422 = vmatpush1.msra.mxu0 %v4184_v52  ;;  %v4194_v62 = vld [vmem:[#allocation35_spill] sm:$0xff]  ;;  %v4195_v52 = vld [vmem:[#allocation40_spill] sm:$0xff] }
  0x93   :  { %493 = vmatpush1.msra.mxu1 %v4185_v42  ;;  %423 = vmatprep.subr.mxu0 %v4186_v47  ;;  %v4196_v42 = vld [vmem:[#allocation37_spill] sm:$0xff]  ;;  %v4197_v47 = vld [vmem:[#allocation42_spill] sm:$0xff] }
  0x94   :  { %494 = vmatprep.subr.mxu1 %v4187_v44  ;;  %424 = vmatpush1.msra.mxu0 %v4188_v49  ;;  %v4198_v44 = vld [vmem:[#allocation39_spill] sm:$0xff]  ;;  %v4199_v49 = vld [vmem:[#allocation44_spill] sm:$0xff] }
  0x95   :  { %495 = vmatpush1.msra.mxu1 %v4189_v46  ;;  %425 = vmatprep.subr.mxu0 %v4190_v51  ;;  %v4200_v46 = vld [vmem:[#allocation41_spill] sm:$0xff]  ;;  %v4201_v51 = vld [vmem:[#allocation46_spill] sm:$0xff] }
  0x96   :  { %496 = vmatprep.subr.mxu1 %v4191_v48  ;;  %426 = vmatpush1.msra.mxu0 %v4192_v53  ;;  %v4202_v48 = vld [vmem:[#allocation43_spill] sm:$0xff]  ;;  %v4203_v53 = vld [vmem:[#allocation48_spill] sm:$0xff] }
  0x97   :  { %497 = vmatpush1.msra.mxu1 %v4193_v50  ;;  %427 = vmatprep.subr.mxu0 %v4194_v62  ;;  %v4204_v50 = vld [vmem:[#allocation45_spill] sm:$0xff]  ;;  %v4205_v62 = vld [vmem:[#allocation50_spill] sm:$0xff] }
  0x98   :  { %498 = vmatprep.subr.mxu1 %v4195_v52  ;;  %428 = vmatpush2.msra.mxu0 %v4196_v42  ;;  %v4206_v52 = vld [vmem:[#allocation47_spill] sm:$0xff]  ;;  %v4207_v42 = vld [vmem:[#allocation52_spill] sm:$0xff] }
  0x99   :  { %499 = vmatpush2.msra.mxu1 %v4197_v47  ;;  %429 = vmatprep.subr.mxu0 %v4198_v44  ;;  %v4208_v47 = vld [vmem:[#allocation49_spill] sm:$0xff]  ;;  %v4209_v44 = vld [vmem:[#allocation54_spill] sm:$0xff] }
  0x9a   :  { %500 = vmatprep.subr.mxu1 %v4199_v49  ;;  %430 = vmatpush2.msra.mxu0 %v4200_v46  ;;  %v4210_v49 = vld [vmem:[#allocation51_spill] sm:$0xff]  ;;  %v4211_v46 = vld [vmem:[#allocation56_spill] sm:$0xff] }
  0x9b   :  { %501 = vmatpush2.msra.mxu1 %v4201_v51  ;;  %431 = vmatprep.subr.mxu0 %v4202_v48  ;;  %v4212_v51 = vld [vmem:[#allocation53_spill] sm:$0xff]  ;;  %v4213_v48 = vld [vmem:[#allocation58_spill] sm:$0xff] }
  0x9c   :  { %502 = vmatprep.subr.mxu1 %v4203_v53  ;;  %432 = vmatpush2.msra.mxu0 %v4204_v50  ;;  %v4214_v53 = vld [vmem:[#allocation55_spill] sm:$0xff]  ;;  %v4215_v50 = vld [vmem:[#allocation60_spill] sm:$0xff] }
  0x9d   :  { %503 = vmatpush2.msra.mxu1 %v4205_v62  ;;  %433 = vmatprep.subr.mxu0 %v4206_v52  ;;  %v4216_v62 = vld [vmem:[#allocation57_spill] sm:$0xff]  ;;  %v4217_v52 = vld [vmem:[#allocation62_spill] sm:$0xff] }
  0x9e   :  { %504 = vmatprep.subr.mxu1 %v4207_v42  ;;  %434 = vmatpush2.msra.mxu0 %v4208_v47  ;;  %v4218_v42 = vld [vmem:[#allocation59_spill] sm:$0xff]  ;;  %v4219_v47 = vld [vmem:[#allocation64_spill] sm:$0xff] }
  0x9f   :  { %505 = vmatpush2.msra.mxu1 %v4209_v44  ;;  %435 = vmatprep.subr.mxu0 %v4210_v49  ;;  %v4220_v44 = vld [vmem:[#allocation61_spill] sm:$0xff]  ;;  %v4221_v49 = vld [vmem:[#allocation66_spill] sm:$0xff] }
  0xa0   :  { %506 = vmatprep.subr.mxu1 %v4211_v46  ;;  %436 = vmatpush2.msra.mxu0 %v4212_v51  ;;  %v4222_v46 = vld [vmem:[#allocation63_spill] sm:$0xff]  ;;  %v4223_v51 = vld [vmem:[#allocation68_spill] sm:$0xff] }
  0xa1   :  { %507 = vmatpush2.msra.mxu1 %v4213_v48  ;;  %437 = vmatprep.subr.mxu0 %v4214_v53  ;;  %v4224_v48 = vld [vmem:[#allocation65_spill] sm:$0xff]  ;;  %v4225_v53 = vld [vmem:[#allocation70_spill] sm:$0xff] }
  0xa2   :  { %508 = vmatprep.subr.mxu1 %v4215_v50  ;;  %438 = vmatpush2.msra.mxu0 %v4216_v62  ;;  %v4226_v50 = vld [vmem:[#allocation67_spill] sm:$0xff]  ;;  %v4227_v62 = vld [vmem:[#allocation72_spill] sm:$0xff] }
  0xa3   :  { %509 = vmatpush2.msra.mxu1 %v4217_v52  ;;  %439 = vmatprep.subr.mxu0 %v4218_v42  ;;  %v4228_v52 = vld [vmem:[#allocation69_spill] sm:$0xff]  ;;  %v4229_v42 = vld [vmem:[#allocation74_spill] sm:$0xff] }
  0xa4   :  { %510 = vmatprep.subr.mxu1 %v4219_v47  ;;  %440 = vmatpush2.msra.mxu0 %v4220_v44  ;;  %v4230_v47 = vld [vmem:[#allocation71_spill] sm:$0xff]  ;;  %v4231_v44 = vld [vmem:[#allocation76_spill] sm:$0xff] }
  0xa5   :  { %511 = vmatpush2.msra.mxu1 %v4221_v49  ;;  %441 = vmatprep.subr.mxu0 %v4222_v46  ;;  %v4232_v49 = vld [vmem:[#allocation73_spill] sm:$0xff]  ;;  %v4233_v46 = vld [vmem:[#allocation78_spill] sm:$0xff] }
  0xa6   :  { %512 = vmatprep.subr.mxu1 %v4223_v51  ;;  %442 = vmatpush2.msra.mxu0 %v4224_v48  ;;  %v4234_v51 = vld [vmem:[#allocation75_spill] sm:$0xff]  ;;  %v4235_v48 = vld [vmem:[#allocation80_spill] sm:$0xff] }
  0xa7   :  { %513 = vmatpush2.msra.mxu1 %v4225_v53  ;;  %443 = vmatprep.subr.mxu0 %v4226_v50  ;;  %v4236_v53 = vld [vmem:[#allocation77_spill] sm:$0xff]  ;;  %v4237_v50 = vld [vmem:[#allocation82_spill] sm:$0xff] }
  0xa8   :  { %514 = vmatprep.subr.mxu1 %v4227_v62  ;;  %444 = vmatpush2.msra.mxu0 %v4228_v52  ;;  %v4238_v62 = vld [vmem:[#allocation79_spill] sm:$0xff]  ;;  %v4239_v52 = vld [vmem:[#allocation84_spill] sm:$0xff] }
  0xa9   :  { %515 = vmatpush2.msra.mxu1 %v4229_v42  ;;  %445 = vmatprep.subr.mxu0 %v4230_v47  ;;  %v4240_v42 = vld [vmem:[#allocation81_spill] sm:$0xff]  ;;  %v4241_v47 = vld [vmem:[#allocation86_spill] sm:$0xff] }
  0xaa   :  { %516 = vmatprep.subr.mxu1 %v4231_v44  ;;  %446 = vmatpush2.msra.mxu0 %v4232_v49  ;;  %v4242_v44 = vld [vmem:[#allocation83_spill] sm:$0xff]  ;;  %v4243_v49 = vld [vmem:[#allocation88_spill] sm:$0xff] }
  0xab   :  { %517 = vmatpush2.msra.mxu1 %v4233_v46  ;;  %447 = vmatprep.subr.mxu0 %v4234_v51  ;;  %v4244_v46 = vld [vmem:[#allocation85_spill] sm:$0xff]  ;;  %v4245_v51 = vld [vmem:[#allocation91_spill] sm:$0xff] }
  0xac   :  { %518 = vmatprep.subr.mxu1 %v4235_v48  ;;  %448 = vmatpush2.msra.mxu0 %v4236_v53  ;;  %v4246_v48 = vld [vmem:[#allocation87_spill] sm:$0xff] }
  0xad   :  { %519 = vmatpush2.msra.mxu1 %v4237_v50  ;;  %449 = vmatprep.subr.mxu0 %v4238_v62  ;;  %v4247_v50 = vld [vmem:[#allocation89_spill] sm:$0xff] }
  0xae   :  { %520 = vmatprep.subr.mxu1 %v4239_v52  ;;  %450 = vmatpush2.msra.mxu0 %v4240_v42  ;;  %v4248_v52 = vld [vmem:[#allocation90_spill] sm:$0xff] }
  0xaf   :  { %521 = vmatpush2.msra.mxu1 %v4241_v47  ;;  %451 = vmatprep.subr.mxu0 %v4242_v44 }
  0xb0   :  { %522 = vmatprep.subr.mxu1 %v4243_v49  ;;  %452 = vmatpush2.msra.mxu0 %v4244_v46 }
  0xb1   :  { %523 = vmatpush2.msra.mxu1 %v4245_v51  ;;  %453 = vmatprep.subr.mxu0 %v4246_v48 }
  0xb2   :  { %524 = vmatprep.subr.mxu1 %v2527_v55  ;;  %454 = vmatpush2.msra.mxu0 %v4247_v50  ;;  %v80_v50 = vld [vmem:[#allocation9] sm:$0xf] }
  0xb3   :  { %525 = vmatpush2.msra.mxu1 %v2532_v57  ;;  %455 = vmatprep.subr.mxu0 %v4248_v52  ;;  %v394_v57 = vld [vmem:[#allocation4 + $0x8] sm:$0xff] }
  0xb4   :  { %526 = vmatprep.subr.mxu1 %v2538_v59  ;;  %456 = vmatpush2.msra.mxu0 %v2524_v54  ;;  %v82_v59 = vlaneseq }
  0xb5   :  { %527 = vmatpush2.msra.mxu1 %v2542_v60  ;;  %457 = vmatprep.subr.mxu0 %v2530_v56 }
  0xb6   :  { %528 = vmatprep.subr.mxu1 %v2546_v61  ;;  %458 = vmatpush2.msra.mxu0 %v2535_v58  ;;  %v83_v52 = vshrl.u32 %v82_v59, 7 }
  0xb7   :  { %529 = vmatpush2.msra.mxu1 %v2550_v63  ;;  %557 = vmatprep.subr.mxu0 %v2171_v0 }
  0xb8   :  { %628 = vmatprep.subr.mxu1 %v2183_v5  ;;  %459 = vmatprep.mubr.f32.mxu0 %v394_v57  ;;  %v84_v54 = vsub.s32 0, %v83_v52  ;;  %v88_v60 = vsub.s32 1, %v83_v52  ;;  %v92_v56 = vsub.s32 2, %v83_v52  ;;  %v96_v49 = vsub.s32 3, %v83_v52 }
  0xb9   :  { %530 = vmatprep.mubr.f32.mxu1 %v394_v57 }
  0xba   :  { %v2687_v55 = vrot.slane %v80_v50, %v84_v54  ;;  %v2689_v61 = vrot.slane %v80_v50, %v88_v60  ;;  %v2692_v48 = vrot.slane %v80_v50, %v92_v56  ;;  %v2696_v54 = vrot.slane %v80_v50, %v96_v49 }
  0xbc   :  { %4249 = vst [vmem:[#allocation77_spill] sm:$0xff] %v2687_v55  ;;  %4250 = vst [vmem:[#allocation79_spill] sm:$0xff] %v2689_v61 }
 0x135   :  { %v299_v58 = vpop.f32.mrf.mxu0 }
 0x136   :  { %v300_v63 = vadd.f32 %v299_v58, %v2687_v55 }
 0x137   :  { %v301_v0 = vpop.f32.mrf.mxu0  ;;  %v370_v57 = vpop.f32.mrf.mxu1 }
 0x138   :  { %v375_v5 = vmul.f32 0.5, %v300_v63  ;;  %v302_v51 = vadd.f32 %v301_v0, %v2689_v61  ;;  %v371_v46 = vadd.f32 %v370_v57, %v2692_v48 }
 0x139   :  { %v372_v60 = vpop.f32.mrf.mxu1 }
 0x13a   :  { %1707 = vtanh.f32 %v375_v5  ;;  %v379_v59 = vmul.f32 0.5, %v302_v51  ;;  %v373_v44 = vadd.f32 %v372_v60, %v2696_v54  ;;  %v4298_v60 = vld [vmem:[#allocation66_spill] sm:$0xff] }
 0x13c   :  { %1709 = vtanh.f32 %v379_v59  ;;  %v384_v58 = vmul.f32 0.5, %v373_v44  ;;  %v4293_v44 = vld [vmem:[#allocation57_spill] sm:$0xff] }
 0x13d   :  { %1711 = vtanh.f32 %v371_v46 }
 0x13e   :  { %1713 = vtanh.f32 %v384_v58  ;;  %v4299_v58 = vld [vmem:[#allocation63_spill] sm:$0xff] }
 0x147   :  { %v1708_v56 = vpop.eup %1707 }
 0x148   :  { %v377_v55 = vmul.f32 0.5, %v1708_v56  ;;  %v4300_v56 = vld [vmem:[#allocation68_spill] sm:$0xff] }
 0x149   :  { %v1710_v47 = vpop.eup %1709 }
 0x14a   :  { %v378_v63 = vadd.f32 0.5, %v377_v55  ;;  %v381_v42 = vmul.f32 0.5, %v1710_v47  ;;  %v1712_v0 = vpop.eup %1711  ;;  %v4295_v47 = vld [vmem:[#allocation59_spill] sm:$0xff]  ;;  %v4296_v55 = vld [vmem:[#allocation64_spill] sm:$0xff] }
 0x14b   :  { %v1714_v46 = vpop.eup %1713 }
 0x14c   :  { %v382_v5 = vadd.f32 0.5, %v381_v42  ;;  %v389_v61 = vmul.f32 %v1712_v0, %v378_v63  ;;  %v386_v49 = vmul.f32 0.5, %v1714_v46  ;;  %v4291_v42 = vld [vmem:[#allocation55_spill] sm:$0xff]  ;;  %v4301_v63 = vld [vmem:[#allocation65_spill] sm:$0xff]  ;;  %v4302_v0 = vld [vmem:[#allocation70_spill] sm:$0xff] }
 0x14d   :  { %v4305_v46 = vld [vmem:[#allocation69_spill] sm:$0xff] }
 0x14e   :  { %v388_v51 = vmul.f32 0.0, %v382_v5  ;;  %v387_v50 = vadd.f32 0.5, %v386_v49  ;;  %v4303_v5 = vld [vmem:[#allocation67_spill] sm:$0xff]  ;;  %v4306_v49 = vld [vmem:[#allocation74_spill] sm:$0xff] }
 0x150   :  { %v2699_v57 = vadd.f32 %v389_v61, %v388_v51  ;;  %v4297_v61 = vld [vmem:[#allocation61_spill] sm:$0xff]  ;;  %v4304_v51 = vld [vmem:[#allocation72_spill] sm:$0xff] }
 0x152   :  { %1715 = vtanh.f32 %v2699_v57 }
 0x15f   :  { %v1716_v52 = vpop.eup %1715 }
 0x160   :  { %v392_v59 = vmul.f32 %v1716_v52, %v387_v50  ;;  %v4307_v50 = vld [vmem:[#allocation71_spill] sm:$0xff]  ;;  %v4308_v52 = vld [vmem:[#allocation76_spill] sm:$0xff] }
 0x162   :  { %460 = vmatmul.mubr.f32.vlgmr.msra.gmra.mxu0 %v392_v59  ;;  %531 = vmatmul.mubr.f32.vlgmr.msra.gmra.mxu1 %v392_v59  ;;  %v4309_v59 = vld [vmem:[#allocation73_spill] sm:$0xff] }
 0x163   :  { %558 = vmatpush1.msra.mxu0 %v2173_v1  ;;  %629 = vmatpush1.msra.mxu1 %v2189_v7  ;;  %v4251_v1 = vld [vmem:[#allocation17_spill] sm:$0xff]  ;;  %v4256_v7 = vld [vmem:[#allocation24_spill] sm:$0xff] }
 0x164   :  { %559 = vmatprep.subr.mxu0 %v2175_v2  ;;  %630 = vmatprep.subr.mxu1 %v2191_v8  ;;  %v4252_v2 = vld [vmem:[#allocation20_spill] sm:$0xff]  ;;  %v4257_v8 = vld [vmem:[#allocation21_spill] sm:$0xff] }
 0x165   :  { %560 = vmatpush1.msra.mxu0 %v2178_v3  ;;  %631 = vmatpush1.msra.mxu1 %v2197_v10  ;;  %v4253_v3 = vld [vmem:[#allocation18_spill] sm:$0xff]  ;;  %v4259_v10 = vld [vmem:[#allocation23_spill] sm:$0xff] }
 0x166   :  { %561 = vmatprep.subr.mxu0 %v2181_v4  ;;  %632 = vmatprep.subr.mxu1 %v2203_v12  ;;  %v4254_v4 = vld [vmem:[#allocation22_spill] sm:$0xff]  ;;  %v4261_v12 = vld [vmem:[#allocation25_spill] sm:$0xff] }
 0x167   :  { %562 = vmatpush1.msra.mxu0 %v2186_v6  ;;  %633 = vmatpush1.msra.mxu1 %v2205_v13  ;;  %v4255_v6 = vld [vmem:[#allocation19_spill] sm:$0xff]  ;;  %v4262_v13 = vld [vmem:[#allocation30_spill] sm:$0xff] }
 0x168   :  { %563 = vmatprep.subr.mxu0 %v2194_v9  ;;  %634 = vmatprep.subr.mxu1 %v2211_v15  ;;  %v4258_v9 = vld [vmem:[#allocation26_spill] sm:$0xff]  ;;  %v4264_v15 = vld [vmem:[#allocation32_spill] sm:$0xff] }
 0x169   :  { %564 = vmatpush1.msra.mxu0 %v2200_v11  ;;  %635 = vmatpush1.msra.mxu1 %v2217_v17  ;;  %v4260_v11 = vld [vmem:[#allocation28_spill] sm:$0xff]  ;;  %v4266_v17 = vld [vmem:[#allocation34_spill] sm:$0xff] }
 0x16a   :  { %565 = vmatprep.subr.mxu0 %v2208_v14  ;;  %636 = vmatprep.subr.mxu1 %v2223_v19  ;;  %v4263_v14 = vld [vmem:[#allocation27_spill] sm:$0xff]  ;;  %v4268_v19 = vld [vmem:[#allocation36_spill] sm:$0xff] }
 0x16b   :  { %566 = vmatpush1.msra.mxu0 %v2214_v16  ;;  %637 = vmatpush1.msra.mxu1 %v2229_v21  ;;  %v4265_v16 = vld [vmem:[#allocation29_spill] sm:$0xff]  ;;  %v4270_v21 = vld [vmem:[#allocation38_spill] sm:$0xff] }
 0x16c   :  { %567 = vmatprep.subr.mxu0 %v2220_v18  ;;  %638 = vmatprep.subr.mxu1 %v2235_v23  ;;  %v4267_v18 = vld [vmem:[#allocation31_spill] sm:$0xff]  ;;  %v4272_v23 = vld [vmem:[#allocation40_spill] sm:$0xff] }
 0x16d   :  { %568 = vmatpush1.msra.mxu0 %v2226_v20  ;;  %639 = vmatpush1.msra.mxu1 %v2241_v25  ;;  %v4269_v20 = vld [vmem:[#allocation33_spill] sm:$0xff]  ;;  %v4274_v25 = vld [vmem:[#allocation42_spill] sm:$0xff] }
 0x16e   :  { %569 = vmatprep.subr.mxu0 %v2232_v22  ;;  %640 = vmatprep.subr.mxu1 %v2247_v27  ;;  %v4271_v22 = vld [vmem:[#allocation35_spill] sm:$0xff]  ;;  %v4276_v27 = vld [vmem:[#allocation44_spill] sm:$0xff] }
 0x16f   :  { %570 = vmatpush1.msra.mxu0 %v2238_v24  ;;  %641 = vmatpush1.msra.mxu1 %v2253_v29  ;;  %v4273_v24 = vld [vmem:[#allocation37_spill] sm:$0xff]  ;;  %v4278_v29 = vld [vmem:[#allocation46_spill] sm:$0xff] }
 0x170   :  { %571 = vmatprep.subr.mxu0 %v2244_v26  ;;  %642 = vmatprep.subr.mxu1 %v2259_v31  ;;  %v4275_v26 = vld [vmem:[#allocation39_spill] sm:$0xff]  ;;  %v4280_v31 = vld [vmem:[#allocation48_spill] sm:$0xff] }
 0x171   :  { %572 = vmatpush1.msra.mxu0 %v2250_v28  ;;  %643 = vmatpush1.msra.mxu1 %v2265_v33  ;;  %v4277_v28 = vld [vmem:[#allocation41_spill] sm:$0xff]  ;;  %v4282_v33 = vld [vmem:[#allocation50_spill] sm:$0xff] }
 0x172   :  { %573 = vmatprep.subr.mxu0 %v2256_v30  ;;  %644 = vmatprep.subr.mxu1 %v2271_v35  ;;  %v4279_v30 = vld [vmem:[#allocation43_spill] sm:$0xff]  ;;  %v4284_v35 = vld [vmem:[#allocation52_spill] sm:$0xff] }
 0x173   :  { %574 = vmatpush1.msra.mxu0 %v2262_v32  ;;  %645 = vmatpush1.msra.mxu1 %v2277_v37  ;;  %v4281_v32 = vld [vmem:[#allocation45_spill] sm:$0xff]  ;;  %v4286_v37 = vld [vmem:[#allocation54_spill] sm:$0xff] }
 0x174   :  { %575 = vmatprep.subr.mxu0 %v2268_v34  ;;  %646 = vmatprep.subr.mxu1 %v2283_v39  ;;  %v4283_v34 = vld [vmem:[#allocation47_spill] sm:$0xff]  ;;  %v4288_v39 = vld [vmem:[#allocation56_spill] sm:$0xff] }
 0x175   :  { %576 = vmatpush1.msra.mxu0 %v2274_v36  ;;  %647 = vmatpush1.msra.mxu1 %v2289_v41  ;;  %v4285_v36 = vld [vmem:[#allocation49_spill] sm:$0xff]  ;;  %v4290_v41 = vld [vmem:[#allocation58_spill] sm:$0xff] }
 0x176   :  { %577 = vmatprep.subr.mxu0 %v2280_v38  ;;  %648 = vmatprep.subr.mxu1 %v2295_v43  ;;  %v4287_v38 = vld [vmem:[#allocation51_spill] sm:$0xff]  ;;  %v4292_v43 = vld [vmem:[#allocation60_spill] sm:$0xff] }
 0x177   :  { %578 = vmatpush1.msra.mxu0 %v2286_v40  ;;  %649 = vmatpush1.msra.mxu1 %v2301_v45  ;;  %v4289_v40 = vld [vmem:[#allocation53_spill] sm:$0xff]  ;;  %v4294_v45 = vld [vmem:[#allocation62_spill] sm:$0xff] }
 0x178   :  { %579 = vmatprep.subr.mxu0 %v4251_v1  ;;  %650 = vmatprep.subr.mxu1 %v4252_v2  ;;  %v4310_v1 = vld [vmem:[#allocation78_spill] sm:$0xff]  ;;  %v4311_v2 = vld [vmem:[#allocation75_spill] sm:$0xff] }
 0x179   :  { %580 = vmatpush1.msra.mxu0 %v4253_v3  ;;  %651 = vmatpush1.msra.mxu1 %v4254_v4  ;;  %v4312_v3 = vld [vmem:[#allocation80_spill] sm:$0xff]  ;;  %v4313_v4 = vld [vmem:[#allocation82_spill] sm:$0xff] }
 0x17a   :  { %581 = vmatprep.subr.mxu0 %v4255_v6  ;;  %652 = vmatprep.subr.mxu1 %v4256_v7  ;;  %v4314_v6 = vld [vmem:[#allocation84_spill] sm:$0xff]  ;;  %v4315_v7 = vld [vmem:[#allocation81_spill] sm:$0xff] }
 0x17b   :  { %582 = vmatpush1.msra.mxu0 %v4257_v8  ;;  %653 = vmatpush1.msra.mxu1 %v4258_v9  ;;  %v4316_v8 = vld [vmem:[#allocation86_spill] sm:$0xff]  ;;  %v4317_v9 = vld [vmem:[#allocation83_spill] sm:$0xff] }
 0x17c   :  { %583 = vmatprep.subr.mxu0 %v4259_v10  ;;  %654 = vmatprep.subr.mxu1 %v4260_v11  ;;  %v4318_v10 = vld [vmem:[#allocation88_spill] sm:$0xff]  ;;  %v4319_v11 = vld [vmem:[#allocation85_spill] sm:$0xff] }
 0x17d   :  { %584 = vmatpush1.msra.mxu0 %v4261_v12  ;;  %655 = vmatpush1.msra.mxu1 %v4262_v13  ;;  %v4320_v12 = vld [vmem:[#allocation91_spill] sm:$0xff] }
 0x17e   :  { %585 = vmatprep.subr.mxu0 %v4263_v14  ;;  %656 = vmatprep.subr.mxu1 %v4264_v15  ;;  %v4321_v13 = vld [vmem:[#allocation87_spill] sm:$0xff]  ;;  %v4322_v14 = vld [vmem:[#allocation93_spill] sm:$0xff] }
 0x17f   :  { %586 = vmatpush1.msra.mxu0 %v4265_v16  ;;  %657 = vmatpush1.msra.mxu1 %v4266_v17  ;;  %v4323_v15 = vld [vmem:[#allocation89_spill] sm:$0xff]  ;;  %v4324_v16 = vld [vmem:[#allocation95_spill] sm:$0xff]  ;;  %v4325_v17 = vld [vmem:[#allocation90_spill] sm:$0xff] }
 0x180   :  { %587 = vmatprep.subr.mxu0 %v4267_v18  ;;  %658 = vmatprep.subr.mxu1 %v4268_v19  ;;  %v4326_v18 = vld [vmem:[#allocation97_spill] sm:$0xff]  ;;  %v4327_v19 = vld [vmem:[#allocation92_spill] sm:$0xff] }
 0x181   :  { %588 = vmatpush1.msra.mxu0 %v4269_v20  ;;  %659 = vmatpush1.msra.mxu1 %v4270_v21  ;;  %v4328_v20 = vld [vmem:[#allocation98_spill] sm:$0xff] }
 0x182   :  { %589 = vmatprep.subr.mxu0 %v4271_v22  ;;  %660 = vmatprep.subr.mxu1 %v4272_v23  ;;  %v4329_v21 = vld [vmem:[#allocation94_spill] sm:$0xff]  ;;  %v4330_v22 = vld [vmem:[#allocation99_spill] sm:$0xff]  ;;  %v4331_v23 = vld [vmem:[#allocation96_spill] sm:$0xff] }
 0x183   :  { %590 = vmatpush2.msra.mxu0 %v4273_v24  ;;  %661 = vmatpush2.msra.mxu1 %v4274_v25  ;;  %v4332_v24 = vld [vmem:[#allocation100_spill] sm:$0xff] }
 0x184   :  { %591 = vmatprep.subr.mxu0 %v4275_v26  ;;  %662 = vmatprep.subr.mxu1 %v4276_v27  ;;  %v2828_v25 = vld [vmem:[#allocation7 + $0x1e8] sm:$0xff]  ;;  %v2831_v26 = vld [vmem:[#allocation7 + $0x1f8] sm:$0xff]  ;;  %v556_v27 = vld [vmem:[#allocation4 + $0x10] sm:$0xff] }
 0x185   :  { %592 = vmatpush2.msra.mxu0 %v4277_v28  ;;  %663 = vmatpush2.msra.mxu1 %v4278_v29  ;;  %4333 = vst [vmem:[#allocation17_spill] sm:$0xff] %v2828_v25  ;;  %4334 = vst [vmem:[#allocation20_spill] sm:$0xff] %v2831_v26  ;;  %v4335_v29 = vld [vmem:[#allocation77_spill] sm:$0xff] }
 0x186   :  { %593 = vmatprep.subr.mxu0 %v4279_v30  ;;  %664 = vmatprep.subr.mxu1 %v4280_v31 }
 0x187   :  { %594 = vmatpush2.msra.mxu0 %v4281_v32  ;;  %665 = vmatpush2.msra.mxu1 %v4282_v33  ;;  %v4336_v33 = vld [vmem:[#allocation79_spill] sm:$0xff] }
 0x188   :  { %595 = vmatprep.subr.mxu0 %v4283_v34  ;;  %666 = vmatprep.subr.mxu1 %v4284_v35 }
 0x189   :  { %596 = vmatpush2.msra.mxu0 %v4285_v36  ;;  %667 = vmatpush2.msra.mxu1 %v4286_v37 }
 0x18a   :  { %597 = vmatprep.subr.mxu0 %v4287_v38  ;;  %668 = vmatprep.subr.mxu1 %v4288_v39 }
 0x18b   :  { %598 = vmatpush2.msra.mxu0 %v4289_v40  ;;  %669 = vmatpush2.msra.mxu1 %v4290_v41 }
 0x18c   :  { %599 = vmatprep.subr.mxu0 %v4291_v42  ;;  %670 = vmatprep.subr.mxu1 %v4292_v43 }
 0x18d   :  { %600 = vmatpush2.msra.mxu0 %v4293_v44  ;;  %671 = vmatpush2.msra.mxu1 %v4294_v45 }
 0x18e   :  { %601 = vmatprep.subr.mxu0 %v4295_v47  ;;  %672 = vmatprep.subr.mxu1 %v4296_v55 }
 0x18f   :  { %602 = vmatpush2.msra.mxu0 %v4297_v61  ;;  %673 = vmatpush2.msra.mxu1 %v4298_v60 }
 0x190   :  { %603 = vmatprep.subr.mxu0 %v4299_v58  ;;  %674 = vmatprep.subr.mxu1 %v4300_v56 }
 0x191   :  { %604 = vmatpush2.msra.mxu0 %v4301_v63  ;;  %675 = vmatpush2.msra.mxu1 %v4302_v0 }
 0x192   :  { %605 = vmatprep.subr.mxu0 %v4303_v5  ;;  %676 = vmatprep.subr.mxu1 %v4304_v51 }
 0x193   :  { %606 = vmatpush2.msra.mxu0 %v4305_v46  ;;  %677 = vmatpush2.msra.mxu1 %v4306_v49 }
 0x194   :  { %607 = vmatprep.subr.mxu0 %v4307_v50  ;;  %678 = vmatprep.subr.mxu1 %v4308_v52 }
 0x195   :  { %608 = vmatpush2.msra.mxu0 %v4309_v59  ;;  %679 = vmatpush2.msra.mxu1 %v4310_v1 }
 0x196   :  { %609 = vmatprep.subr.mxu0 %v4311_v2  ;;  %680 = vmatprep.subr.mxu1 %v4312_v3 }
 0x197   :  { %610 = vmatpush2.msra.mxu0 %v4236_v53  ;;  %681 = vmatpush2.msra.mxu1 %v4313_v4 }
 0x198   :  { %611 = vmatprep.subr.mxu0 %v4238_v62  ;;  %682 = vmatprep.subr.mxu1 %v4314_v6 }
 0x199   :  { %612 = vmatpush2.msra.mxu0 %v4315_v7  ;;  %683 = vmatpush2.msra.mxu1 %v4316_v8 }
 0x19a   :  { %613 = vmatprep.subr.mxu0 %v4317_v9  ;;  %684 = vmatprep.subr.mxu1 %v4318_v10 }
 0x19b   :  { %614 = vmatpush2.msra.mxu0 %v4319_v11  ;;  %685 = vmatpush2.msra.mxu1 %v4320_v12 }
 0x19c   :  { %615 = vmatprep.subr.mxu0 %v4321_v13  ;;  %686 = vmatprep.subr.mxu1 %v4322_v14 }
 0x19d   :  { %616 = vmatpush2.msra.mxu0 %v4323_v15  ;;  %687 = vmatpush2.msra.mxu1 %v4324_v16 }
 0x19e   :  { %617 = vmatprep.subr.mxu0 %v4325_v17  ;;  %688 = vmatprep.subr.mxu1 %v4326_v18 }
 0x19f   :  { %618 = vmatpush2.msra.mxu0 %v4327_v19  ;;  %689 = vmatpush2.msra.mxu1 %v4328_v20 }
 0x1a0   :  { %619 = vmatprep.subr.mxu0 %v4329_v21  ;;  %690 = vmatprep.subr.mxu1 %v4330_v22 }
 0x1a1   :  { %620 = vmatpush2.msra.mxu0 %v4331_v23  ;;  %691 = vmatpush2.msra.mxu1 %v4332_v24 }
 0x1a2   :  { %719 = vmatprep.subr.mxu0 %v2828_v25  ;;  %790 = vmatprep.subr.mxu1 %v2831_v26 }
 0x1a3   :  { %621 = vmatprep.mubr.f32.mxu0 %v556_v27  ;;  %692 = vmatprep.mubr.f32.mxu1 %v556_v27 }
 0x222   :  { %v461_v28 = vpop.f32.mrf.mxu0  ;;  %v532_v35 = vpop.f32.mrf.mxu1 }
 0x223   :  { %v462_v30 = vadd.f32 %v461_v28, %v4335_v29  ;;  %v533_v37 = vadd.f32 %v532_v35, %v2692_v48  ;;  %v2854_v35 = vld [vmem:[#allocation7 + $0x1c0] sm:$0xff] }
 0x224   :  { %v463_v31 = vpop.f32.mrf.mxu0  ;;  %v534_v38 = vpop.f32.mrf.mxu1 }
 0x225   :  { %v537_v32 = vmul.f32 0.5, %v462_v30  ;;  %v464_v34 = vadd.f32 %v463_v31, %v4336_v33  ;;  %v535_v39 = vadd.f32 %v534_v38, %v2696_v54  ;;  %v2842_v31 = vld [vmem:[#allocation7 + $0x1e0] sm:$0xff]  ;;  %v2863_v38 = vld [vmem:[#allocation7 + $0x1b8] sm:$0xff] }
 0x227   :  { %1717 = vtanh.f32 %v537_v32  ;;  %v541_v36 = vmul.f32 0.5, %v464_v34  ;;  %v546_v40 = vmul.f32 0.5, %v535_v39  ;;  %v2845_v32 = vld [vmem:[#allocation7 + $0x1f0] sm:$0xff]  ;;  %v2851_v34 = vld [vmem:[#allocation7 + $0x1d8] sm:$0xff]  ;;  %v2866_v39 = vld [vmem:[#allocation7 + $0x1a0] sm:$0xff] }
 0x229   :  { %1719 = vtanh.f32 %v541_v36  ;;  %v2857_v36 = vld [vmem:[#allocation7 + $0x1d0] sm:$0xff] }
 0x22a   :  { %1721 = vtanh.f32 %v533_v37  ;;  %v2860_v37 = vld [vmem:[#allocation7 + $0x1a8] sm:$0xff] }
 0x22b   :  { %1723 = vtanh.f32 %v546_v40  ;;  %v2869_v40 = vld [vmem:[#allocation7 + $0x1b0] sm:$0xff] }
 0x234   :  { %v1718_v41 = vpop.eup %1717 }
 0x235   :  { %v539_v42 = vmul.f32 0.5, %v1718_v41  ;;  %v2872_v41 = vld [vmem:[#allocation7 + $0x188] sm:$0xff] }
 0x236   :  { %v1720_v43 = vpop.eup %1719 }
 0x237   :  { %v540_v44 = vadd.f32 0.5, %v539_v42  ;;  %v543_v45 = vmul.f32 0.5, %v1720_v43  ;;  %v1722_v55 = vpop.eup %1721  ;;  %v2875_v42 = vld [vmem:[#allocation7 + $0x198] sm:$0xff]  ;;  %v2878_v43 = vld [vmem:[#allocation7 + $0x180] sm:$0xff] }
 0x238   :  { %v1724_v5 = vpop.eup %1723 }
 0x239   :  { %v544_v47 = vadd.f32 0.5, %v543_v45  ;;  %v551_v58 = vmul.f32 %v1722_v55, %v540_v44  ;;  %v548_v46 = vmul.f32 0.5, %v1724_v5  ;;  %v2881_v44 = vld [vmem:[#allocation7 + $0x190] sm:$0xff]  ;;  %v2884_v45 = vld [vmem:[#allocation7 + $0x168] sm:$0xff]  ;;  %v2890_v55 = vld [vmem:[#allocation7 + $0x160] sm:$0xff] }
 0x23a   :  { %v2899_v5 = vld [vmem:[#allocation7 + $0x158] sm:$0xff] }
 0x23b   :  { %v550_v61 = vmul.f32 %v544_v47, %v2699_v57  ;;  %v549_v27 = vadd.f32 0.5, %v548_v46  ;;  %v2848_v57 = vld [vmem:[#allocation7 + $0x1c8] sm:$0xff]  ;;  %v2887_v47 = vld [vmem:[#allocation7 + $0x178] sm:$0xff]  ;;  %4338 = vst [vmem:[#allocation22_spill] sm:$0xff] %v2899_v5  ;;  %v2902_v46 = vld [vmem:[#allocation7 + $0x140] sm:$0xff] }
 0x23c   :  { %4339 = vst [vmem:[#allocation19_spill] sm:$0xff] %v2902_v46 }
 0x23d   :  { %v2839_v63 = vadd.f32 %v551_v58, %v550_v61  ;;  %v2893_v61 = vld [vmem:[#allocation7 + $0x170] sm:$0xff]  ;;  %v2896_v58 = vld [vmem:[#allocation7 + $0x148] sm:$0xff] }
 0x23e   :  { %4337 = vst [vmem:[#allocation18_spill] sm:$0xff] %v2896_v58 }
 0x23f   :  { %1725 = vtanh.f32 %v2839_v63 }
 0x24c   :  { %v1726_v28 = vpop.eup %1725 }
 0x24d   :  { %v554_v30 = vmul.f32 %v1726_v28, %v549_v27  ;;  %v2905_v27 = vld [vmem:[#allocation7 + $0x150] sm:$0xff]  ;;  %v2908_v28 = vld [vmem:[#allocation7 + $0x128] sm:$0xff] }
 0x24e   :  { %4340 = vst [vmem:[#allocation24_spill] sm:$0xff] %v2905_v27  ;;  %4341 = vst [vmem:[#allocation21_spill] sm:$0xff] %v2908_v28 }
 0x24f   :  { %622 = vmatmul.mubr.f32.vlgmr.msra.gmra.mxu0 %v554_v30  ;;  %693 = vmatmul.mubr.f32.vlgmr.msra.gmra.mxu1 %v554_v30  ;;  %v2911_v30 = vld [vmem:[#allocation7 + $0x138] sm:$0xff] }
 0x250   :  { %720 = vmatpush1.msra.mxu0 %v2842_v31  ;;  %791 = vmatpush1.msra.mxu1 %v2845_v32  ;;  %4342 = vst [vmem:[#allocation26_spill] sm:$0xff] %v2911_v30 }
 0x251   :  { %721 = vmatprep.subr.mxu0 %v2848_v57  ;;  %792 = vmatprep.subr.mxu1 %v2851_v34 }
 0x252   :  { %722 = vmatpush1.msra.mxu0 %v2854_v35  ;;  %793 = vmatpush1.msra.mxu1 %v2857_v36 }
 0x253   :  { %723 = vmatprep.subr.mxu0 %v2860_v37  ;;  %794 = vmatprep.subr.mxu1 %v2863_v38 }
 0x254   :  { %724 = vmatpush1.msra.mxu0 %v2866_v39  ;;  %795 = vmatpush1.msra.mxu1 %v2869_v40 }
 0x255   :  { %725 = vmatprep.subr.mxu0 %v2872_v41  ;;  %796 = vmatprep.subr.mxu1 %v2875_v42 }
 0x256   :  { %726 = vmatpush1.msra.mxu0 %v2878_v43  ;;  %797 = vmatpush1.msra.mxu1 %v2881_v44 }
 0x257   :  { %727 = vmatprep.subr.mxu0 %v2884_v45  ;;  %798 = vmatprep.subr.mxu1 %v2887_v47 }
 0x258   :  { %728 = vmatpush1.msra.mxu0 %v2890_v55  ;;  %799 = vmatpush1.msra.mxu1 %v2893_v61 }
 0x259   :  { %729 = vmatprep.subr.mxu0 %v2896_v58  ;;  %800 = vmatprep.subr.mxu1 %v2899_v5  ;;  %v2914_v58 = vld [vmem:[#allocation7 + $0x120] sm:$0xff]  ;;  %v2917_v5 = vld [vmem:[#allocation7 + $0x130] sm:$0xff] }
 0x25a   :  { %730 = vmatpush1.msra.mxu0 %v2902_v46  ;;  %801 = vmatpush1.msra.mxu1 %v2905_v27  ;;  %4343 = vst [vmem:[#allocation23_spill] sm:$0xff] %v2914_v58  ;;  %4344 = vst [vmem:[#allocation28_spill] sm:$0xff] %v2917_v5  ;;  %v2920_v46 = vld [vmem:[#allocation7 + $0x108] sm:$0xff]  ;;  %v2923_v27 = vld [vmem:[#allocation7 + $0x118] sm:$0xff] }
 0x25b   :  { %731 = vmatprep.subr.mxu0 %v2908_v28  ;;  %802 = vmatprep.subr.mxu1 %v2911_v30  ;;  %4345 = vst [vmem:[#allocation25_spill] sm:$0xff] %v2920_v46  ;;  %4346 = vst [vmem:[#allocation30_spill] sm:$0xff] %v2923_v27  ;;  %v2926_v28 = vld [vmem:[#allocation7 + $0x100] sm:$0xff]  ;;  %v2929_v30 = vld [vmem:[#allocation7 + $0x110] sm:$0xff] }
 0x25c   :  { %732 = vmatpush1.msra.mxu0 %v2914_v58  ;;  %803 = vmatpush1.msra.mxu1 %v2917_v5  ;;  %4347 = vst [vmem:[#allocation27_spill] sm:$0xff] %v2926_v28  ;;  %4348 = vst [vmem:[#allocation32_spill] sm:$0xff] %v2929_v30  ;;  %v2932_v58 = vld [vmem:[#allocation7 + $0xe8] sm:$0xff]  ;;  %v2935_v5 = vld [vmem:[#allocation7 + $0xf8] sm:$0xff] }
 0x25d   :  { %733 = vmatprep.subr.mxu0 %v2920_v46  ;;  %804 = vmatprep.subr.mxu1 %v2923_v27  ;;  %4349 = vst [vmem:[#allocation29_spill] sm:$0xff] %v2932_v58  ;;  %4350 = vst [vmem:[#allocation34_spill] sm:$0xff] %v2935_v5  ;;  %v2938_v46 = vld [vmem:[#allocation7 + $0xe0] sm:$0xff]  ;;  %v2941_v27 = vld [vmem:[#allocation7 + $0xf0] sm:$0xff] }
 0x25e   :  { %734 = vmatpush1.msra.mxu0 %v2926_v28  ;;  %805 = vmatpush1.msra.mxu1 %v2929_v30  ;;  %4351 = vst [vmem:[#allocation31_spill] sm:$0xff] %v2938_v46  ;;  %4352 = vst [vmem:[#allocation36_spill] sm:$0xff] %v2941_v27  ;;  %v2944_v28 = vld [vmem:[#allocation7 + $0xc8] sm:$0xff]  ;;  %v2947_v30 = vld [vmem:[#allocation7 + $0xd8] sm:$0xff] }
 0x25f   :  { %735 = vmatprep.subr.mxu0 %v2932_v58  ;;  %806 = vmatprep.subr.mxu1 %v2935_v5  ;;  %4353 = vst [vmem:[#allocation33_spill] sm:$0xff] %v2944_v28  ;;  %4354 = vst [vmem:[#allocation38_spill] sm:$0xff] %v2947_v30  ;;  %v2950_v58 = vld [vmem:[#allocation7 + $0xc0] sm:$0xff]  ;;  %v2953_v5 = vld [vmem:[#allocation7 + $0xd0] sm:$0xff] }
 0x260   :  { %736 = vmatpush1.msra.mxu0 %v2938_v46  ;;  %807 = vmatpush1.msra.mxu1 %v2941_v27  ;;  %4355 = vst [vmem:[#allocation35_spill] sm:$0xff] %v2950_v58  ;;  %4356 = vst [vmem:[#allocation40_spill] sm:$0xff] %v2953_v5  ;;  %v2956_v46 = vld [vmem:[#allocation7 + $0xa8] sm:$0xff]  ;;  %v2959_v27 = vld [vmem:[#allocation7 + $0xb8] sm:$0xff] }
 0x261   :  { %737 = vmatprep.subr.mxu0 %v2944_v28  ;;  %808 = vmatprep.subr.mxu1 %v2947_v30  ;;  %4357 = vst [vmem:[#allocation37_spill] sm:$0xff] %v2956_v46  ;;  %4358 = vst [vmem:[#allocation42_spill] sm:$0xff] %v2959_v27  ;;  %v2962_v28 = vld [vmem:[#allocation7 + $0xa0] sm:$0xff]  ;;  %v2965_v30 = vld [vmem:[#allocation7 + $0xb0] sm:$0xff] }
 0x262   :  { %738 = vmatpush1.msra.mxu0 %v2950_v58  ;;  %809 = vmatpush1.msra.mxu1 %v2953_v5  ;;  %4359 = vst [vmem:[#allocation39_spill] sm:$0xff] %v2962_v28  ;;  %4360 = vst [vmem:[#allocation44_spill] sm:$0xff] %v2965_v30  ;;  %v2968_v58 = vld [vmem:[#allocation7 + $0x88] sm:$0xff]  ;;  %v2971_v5 = vld [vmem:[#allocation7 + $0x98] sm:$0xff] }
 0x263   :  { %739 = vmatprep.subr.mxu0 %v2956_v46  ;;  %810 = vmatprep.subr.mxu1 %v2959_v27  ;;  %4361 = vst [vmem:[#allocation41_spill] sm:$0xff] %v2968_v58  ;;  %4362 = vst [vmem:[#allocation46_spill] sm:$0xff] %v2971_v5  ;;  %v2974_v46 = vld [vmem:[#allocation7 + $0x80] sm:$0xff]  ;;  %v2977_v27 = vld [vmem:[#allocation7 + $0x90] sm:$0xff] }
 0x264   :  { %740 = vmatpush1.msra.mxu0 %v2962_v28  ;;  %811 = vmatpush1.msra.mxu1 %v2965_v30  ;;  %4363 = vst [vmem:[#allocation43_spill] sm:$0xff] %v2974_v46  ;;  %4364 = vst [vmem:[#allocation48_spill] sm:$0xff] %v2977_v27  ;;  %v2980_v28 = vld [vmem:[#allocation7 + $0x68] sm:$0xff]  ;;  %v2983_v30 = vld [vmem:[#allocation7 + $0x78] sm:$0xff] }
 0x265   :  { %741 = vmatprep.subr.mxu0 %v2968_v58  ;;  %812 = vmatprep.subr.mxu1 %v2971_v5  ;;  %4365 = vst [vmem:[#allocation45_spill] sm:$0xff] %v2980_v28  ;;  %4366 = vst [vmem:[#allocation50_spill] sm:$0xff] %v2983_v30  ;;  %v2986_v58 = vld [vmem:[#allocation7 + $0x60] sm:$0xff]  ;;  %v2989_v5 = vld [vmem:[#allocation7 + $0x70] sm:$0xff] }
 0x266   :  { %742 = vmatpush1.msra.mxu0 %v2974_v46  ;;  %813 = vmatpush1.msra.mxu1 %v2977_v27  ;;  %4367 = vst [vmem:[#allocation47_spill] sm:$0xff] %v2986_v58  ;;  %4368 = vst [vmem:[#allocation52_spill] sm:$0xff] %v2989_v5  ;;  %v2992_v46 = vld [vmem:[#allocation7 + $0x48] sm:$0xff]  ;;  %v2995_v27 = vld [vmem:[#allocation7 + $0x58] sm:$0xff] }
 0x267   :  { %743 = vmatprep.subr.mxu0 %v2980_v28  ;;  %814 = vmatprep.subr.mxu1 %v2983_v30  ;;  %4369 = vst [vmem:[#allocation49_spill] sm:$0xff] %v2992_v46  ;;  %4370 = vst [vmem:[#allocation54_spill] sm:$0xff] %v2995_v27  ;;  %v2998_v28 = vld [vmem:[#allocation7 + $0x40] sm:$0xff]  ;;  %v3001_v30 = vld [vmem:[#allocation7 + $0x50] sm:$0xff] }
 0x268   :  { %744 = vmatpush1.msra.mxu0 %v2986_v58  ;;  %815 = vmatpush1.msra.mxu1 %v2989_v5  ;;  %4371 = vst [vmem:[#allocation51_spill] sm:$0xff] %v2998_v28  ;;  %4372 = vst [vmem:[#allocation56_spill] sm:$0xff] %v3001_v30  ;;  %v3004_v58 = vld [vmem:[#allocation7 + $0x28] sm:$0xff]  ;;  %v3007_v5 = vld [vmem:[#allocation7 + $0x38] sm:$0xff] }
 0x269   :  { %745 = vmatprep.subr.mxu0 %v2992_v46  ;;  %816 = vmatprep.subr.mxu1 %v2995_v27  ;;  %4373 = vst [vmem:[#allocation53_spill] sm:$0xff] %v3004_v58  ;;  %4374 = vst [vmem:[#allocation58_spill] sm:$0xff] %v3007_v5  ;;  %v3010_v46 = vld [vmem:[#allocation7 + $0x20] sm:$0xff]  ;;  %v3013_v27 = vld [vmem:[#allocation7 + $0x30] sm:$0xff] }
 0x26a   :  { %746 = vmatpush1.msra.mxu0 %v2998_v28  ;;  %817 = vmatpush1.msra.mxu1 %v3001_v30  ;;  %4375 = vst [vmem:[#allocation55_spill] sm:$0xff] %v3010_v46  ;;  %4376 = vst [vmem:[#allocation60_spill] sm:$0xff] %v3013_v27  ;;  %v3016_v28 = vld [vmem:[#allocation7 + $0x8] sm:$0xff]  ;;  %v3019_v30 = vld [vmem:[#allocation7 + $0x18] sm:$0xff] }
 0x26b   :  { %747 = vmatprep.subr.mxu0 %v3004_v58  ;;  %818 = vmatprep.subr.mxu1 %v3007_v5  ;;  %4377 = vst [vmem:[#allocation57_spill] sm:$0xff] %v3016_v28  ;;  %4378 = vst [vmem:[#allocation62_spill] sm:$0xff] %v3019_v30  ;;  %v3022_v58 = vld [vmem:[#allocation7] sm:$0xff]  ;;  %v3025_v5 = vld [vmem:[#allocation7 + $0x10] sm:$0xff] }
 0x26c   :  { %748 = vmatpush1.msra.mxu0 %v3010_v46  ;;  %819 = vmatpush1.msra.mxu1 %v3013_v27  ;;  %4379 = vst [vmem:[#allocation59_spill] sm:$0xff] %v3022_v58  ;;  %4380 = vst [vmem:[#allocation64_spill] sm:$0xff] %v3025_v5  ;;  %v3028_v46 = vld [vmem:[#allocation7 + $0x3e8] sm:$0xff]  ;;  %v3031_v27 = vld [vmem:[#allocation7 + $0x3f8] sm:$0xff] }
 0x26d   :  { %749 = vmatprep.subr.mxu0 %v3016_v28  ;;  %820 = vmatprep.subr.mxu1 %v3019_v30  ;;  %4381 = vst [vmem:[#allocation61_spill] sm:$0xff] %v3028_v46  ;;  %4382 = vst [vmem:[#allocation66_spill] sm:$0xff] %v3031_v27  ;;  %v3034_v28 = vld [vmem:[#allocation7 + $0x3e0] sm:$0xff]  ;;  %v3037_v30 = vld [vmem:[#allocation7 + $0x3f0] sm:$0xff] }
 0x26e   :  { %750 = vmatpush1.msra.mxu0 %v3022_v58  ;;  %821 = vmatpush1.msra.mxu1 %v3025_v5  ;;  %4383 = vst [vmem:[#allocation63_spill] sm:$0xff] %v3034_v28  ;;  %4384 = vst [vmem:[#allocation68_spill] sm:$0xff] %v3037_v30  ;;  %v3040_v58 = vld [vmem:[#allocation7 + $0x3c8] sm:$0xff]  ;;  %v3043_v5 = vld [vmem:[#allocation7 + $0x3d8] sm:$0xff] }
 0x26f   :  { %751 = vmatprep.subr.mxu0 %v3028_v46  ;;  %822 = vmatprep.subr.mxu1 %v3031_v27  ;;  %4385 = vst [vmem:[#allocation65_spill] sm:$0xff] %v3040_v58  ;;  %4386 = vst [vmem:[#allocation70_spill] sm:$0xff] %v3043_v5  ;;  %v3046_v46 = vld [vmem:[#allocation7 + $0x3c0] sm:$0xff]  ;;  %v3049_v27 = vld [vmem:[#allocation7 + $0x3d0] sm:$0xff] }
 0x270   :  { %752 = vmatpush2.msra.mxu0 %v3034_v28  ;;  %823 = vmatpush2.msra.mxu1 %v3037_v30  ;;  %4387 = vst [vmem:[#allocation67_spill] sm:$0xff] %v3046_v46  ;;  %4388 = vst [vmem:[#allocation72_spill] sm:$0xff] %v3049_v27  ;;  %v3052_v28 = vld [vmem:[#allocation7 + $0x3a8] sm:$0xff]  ;;  %v3055_v30 = vld [vmem:[#allocation7 + $0x3b8] sm:$0xff] }
 0x271   :  { %753 = vmatprep.subr.mxu0 %v3040_v58  ;;  %824 = vmatprep.subr.mxu1 %v3043_v5  ;;  %4389 = vst [vmem:[#allocation69_spill] sm:$0xff] %v3052_v28  ;;  %4390 = vst [vmem:[#allocation74_spill] sm:$0xff] %v3055_v30  ;;  %v3058_v58 = vld [vmem:[#allocation7 + $0x3a0] sm:$0xff]  ;;  %v3061_v5 = vld [vmem:[#allocation7 + $0x3b0] sm:$0xff] }
 0x272   :  { %754 = vmatpush2.msra.mxu0 %v3046_v46  ;;  %825 = vmatpush2.msra.mxu1 %v3049_v27  ;;  %4391 = vst [vmem:[#allocation71_spill] sm:$0xff] %v3058_v58  ;;  %4392 = vst [vmem:[#allocation76_spill] sm:$0xff] %v3061_v5  ;;  %v3064_v46 = vld [vmem:[#allocation7 + $0x388] sm:$0xff]  ;;  %v3067_v27 = vld [vmem:[#allocation7 + $0x398] sm:$0xff] }
 0x273   :  { %755 = vmatprep.subr.mxu0 %v3052_v28  ;;  %826 = vmatprep.subr.mxu1 %v3055_v30  ;;  %4393 = vst [vmem:[#allocation73_spill] sm:$0xff] %v3064_v46  ;;  %4394 = vst [vmem:[#allocation78_spill] sm:$0xff] %v3067_v27  ;;  %v3070_v28 = vld [vmem:[#allocation7 + $0x380] sm:$0xff]  ;;  %v3073_v30 = vld [vmem:[#allocation7 + $0x390] sm:$0xff] }
 0x274   :  { %756 = vmatpush2.msra.mxu0 %v3058_v58  ;;  %827 = vmatpush2.msra.mxu1 %v3061_v5  ;;  %4395 = vst [vmem:[#allocation75_spill] sm:$0xff] %v3070_v28  ;;  %4396 = vst [vmem:[#allocation80_spill] sm:$0xff] %v3073_v30  ;;  %v3076_v58 = vld [vmem:[#allocation7 + $0x368] sm:$0xff]  ;;  %v3079_v5 = vld [vmem:[#allocation7 + $0x378] sm:$0xff] }
 0x275   :  { %757 = vmatprep.subr.mxu0 %v3064_v46  ;;  %828 = vmatprep.subr.mxu1 %v3067_v27  ;;  %4397 = vst [vmem:[#allocation82_spill] sm:$0xff] %v3076_v58  ;;  %4398 = vst [vmem:[#allocation84_spill] sm:$0xff] %v3079_v5  ;;  %v3082_v46 = vld [vmem:[#allocation7 + $0x360] sm:$0xff]  ;;  %v3085_v27 = vld [vmem:[#allocation7 + $0x370] sm:$0xff] }
 0x276   :  { %758 = vmatpush2.msra.mxu0 %v3070_v28  ;;  %829 = vmatpush2.msra.mxu1 %v3073_v30  ;;  %4399 = vst [vmem:[#allocation81_spill] sm:$0xff] %v3082_v46  ;;  %4400 = vst [vmem:[#allocation86_spill] sm:$0xff] %v3085_v27  ;;  %v3088_v28 = vld [vmem:[#allocation7 + $0x348] sm:$0xff]  ;;  %v3091_v30 = vld [vmem:[#allocation7 + $0x358] sm:$0xff] }
 0x277   :  { %759 = vmatprep.subr.mxu0 %v3076_v58  ;;  %830 = vmatprep.subr.mxu1 %v3079_v5  ;;  %4401 = vst [vmem:[#allocation83_spill] sm:$0xff] %v3088_v28  ;;  %4402 = vst [vmem:[#allocation88_spill] sm:$0xff] %v3091_v30  ;;  %v3094_v58 = vld [vmem:[#allocation7 + $0x340] sm:$0xff]  ;;  %v3097_v5 = vld [vmem:[#allocation7 + $0x350] sm:$0xff] }
 0x278   :  { %760 = vmatpush2.msra.mxu0 %v3082_v46  ;;  %831 = vmatpush2.msra.mxu1 %v3085_v27  ;;  %4403 = vst [vmem:[#allocation85_spill] sm:$0xff] %v3094_v58  ;;  %4404 = vst [vmem:[#allocation91_spill] sm:$0xff] %v3097_v5  ;;  %v3100_v46 = vld [vmem:[#allocation7 + $0x328] sm:$0xff]  ;;  %v3103_v27 = vld [vmem:[#allocation7 + $0x338] sm:$0xff] }
 0x279   :  { %761 = vmatprep.subr.mxu0 %v3088_v28  ;;  %832 = vmatprep.subr.mxu1 %v3091_v30  ;;  %4405 = vst [vmem:[#allocation87_spill] sm:$0xff] %v3100_v46  ;;  %4406 = vst [vmem:[#allocation93_spill] sm:$0xff] %v3103_v27  ;;  %v3106_v28 = vld [vmem:[#allocation7 + $0x320] sm:$0xff]  ;;  %v3110_v30 = vld [vmem:[#allocation7 + $0x308] sm:$0xff] }
 0x27a   :  { %762 = vmatpush2.msra.mxu0 %v3094_v58  ;;  %833 = vmatpush2.msra.mxu1 %v3097_v5  ;;  %4407 = vst [vmem:[#allocation89_spill] sm:$0xff] %v3106_v28  ;;  %4408 = vst [vmem:[#allocation95_spill] sm:$0xff] %v3110_v30  ;;  %v3114_v5 = vld [vmem:[#allocation7 + $0x300] sm:$0xff] }
 0x27b   :  { %763 = vmatprep.subr.mxu0 %v3100_v46  ;;  %834 = vmatprep.subr.mxu1 %v3103_v27  ;;  %4409 = vst [vmem:[#allocation90_spill] sm:$0xff] %v3114_v5  ;;  %v3118_v46 = vld [vmem:[#allocation7 + $0x2e8] sm:$0xff] }
 0x27c   :  { %764 = vmatpush2.msra.mxu0 %v3106_v28  ;;  %835 = vmatpush2.msra.mxu1 %v4298_v60  ;;  %4410 = vst [vmem:[#allocation97_spill] sm:$0xff] %v3118_v46  ;;  %v3122_v28 = vld [vmem:[#allocation7 + $0x2e0] sm:$0xff] }
 0x27d   :  { %765 = vmatprep.subr.mxu0 %v3110_v30  ;;  %836 = vmatprep.subr.mxu1 %v4300_v56  ;;  %4411 = vst [vmem:[#allocation92_spill] sm:$0xff] %v3122_v28 }
 0x27e   :  { %766 = vmatpush2.msra.mxu0 %v3114_v5  ;;  %837 = vmatpush2.msra.mxu1 %v4302_v0 }
 0x27f   :  { %767 = vmatprep.subr.mxu0 %v3118_v46  ;;  %838 = vmatprep.subr.mxu1 %v4304_v51 }
 0x280   :  { %768 = vmatpush2.msra.mxu0 %v3122_v28  ;;  %839 = vmatpush2.msra.mxu1 %v4306_v49 }
 0x281   :  { %769 = vmatprep.subr.mxu0 %v4307_v50  ;;  %840 = vmatprep.subr.mxu1 %v4308_v52 }
 0x282   :  { %770 = vmatpush2.msra.mxu0 %v4309_v59  ;;  %841 = vmatpush2.msra.mxu1 %v4310_v1 }
 0x283   :  { %771 = vmatprep.subr.mxu0 %v4311_v2  ;;  %842 = vmatprep.subr.mxu1 %v4312_v3 }
 0x284   :  { %772 = vmatpush2.msra.mxu0 %v4236_v53  ;;  %843 = vmatpush2.msra.mxu1 %v4313_v4  ;;  %v718_v53 = vld [vmem:[#allocation4 + $0x18] sm:$0xff] }
 0x285   :  { %773 = vmatprep.subr.mxu0 %v4238_v62  ;;  %844 = vmatprep.subr.mxu1 %v4314_v6 }
 0x286   :  { %774 = vmatpush2.msra.mxu0 %v4315_v7  ;;  %845 = vmatpush2.msra.mxu1 %v4316_v8 }
 0x287   :  { %775 = vmatprep.subr.mxu0 %v4317_v9  ;;  %846 = vmatprep.subr.mxu1 %v4318_v10 }
 0x288   :  { %776 = vmatpush2.msra.mxu0 %v4319_v11  ;;  %847 = vmatpush2.msra.mxu1 %v4320_v12 }
 0x289   :  { %777 = vmatprep.subr.mxu0 %v4321_v13  ;;  %848 = vmatprep.subr.mxu1 %v4322_v14 }
 0x28a   :  { %778 = vmatpush2.msra.mxu0 %v4323_v15  ;;  %849 = vmatpush2.msra.mxu1 %v4324_v16 }
 0x28b   :  { %779 = vmatprep.subr.mxu0 %v4325_v17  ;;  %850 = vmatprep.subr.mxu1 %v4326_v18 }
 0x28c   :  { %780 = vmatpush2.msra.mxu0 %v4327_v19  ;;  %851 = vmatpush2.msra.mxu1 %v4328_v20  ;;  %v4412_v19 = vld [vmem:[#allocation18_spill] sm:$0xff] }
 0x28d   :  { %781 = vmatprep.subr.mxu0 %v4329_v21  ;;  %852 = vmatprep.subr.mxu1 %v4330_v22  ;;  %v4413_v20 = vld [vmem:[#allocation22_spill] sm:$0xff]  ;;  %v4414_v21 = vld [vmem:[#allocation19_spill] sm:$0xff]  ;;  %v4415_v22 = vld [vmem:[#allocation24_spill] sm:$0xff] }
 0x28e   :  { %782 = vmatpush2.msra.mxu0 %v4331_v23  ;;  %853 = vmatpush2.msra.mxu1 %v4332_v24  ;;  %v4416_v23 = vld [vmem:[#allocation21_spill] sm:$0xff]  ;;  %v4417_v24 = vld [vmem:[#allocation26_spill] sm:$0xff] }
 0x28f   :  { %881 = vmatprep.subr.mxu0 %v2828_v25  ;;  %952 = vmatprep.subr.mxu1 %v2831_v26 }
 0x290   :  { %783 = vmatprep.mubr.f32.mxu0 %v718_v53  ;;  %854 = vmatprep.mubr.f32.mxu1 %v718_v53  ;;  %v4419_v53 = vld [vmem:[#allocation28_spill] sm:$0xff] }
 0x30f   :  { %v623_v62 = vpop.f32.mrf.mxu0  ;;  %v694_v49 = vpop.f32.mrf.mxu1 }
 0x310   :  { %v624_v60 = vadd.f32 %v623_v62, %v4335_v29  ;;  %v695_v52 = vadd.f32 %v694_v49, %v2692_v48  ;;  %v4420_v62 = vld [vmem:[#allocation25_spill] sm:$0xff]  ;;  %v4425_v49 = vld [vmem:[#allocation34_spill] sm:$0xff] }
 0x311   :  { %v625_v56 = vpop.f32.mrf.mxu0  ;;  %v696_v59 = vpop.f32.mrf.mxu1 }
 0x312   :  { %v699_v0 = vmul.f32 0.5, %v624_v60  ;;  %v626_v51 = vadd.f32 %v625_v56, %v4336_v33  ;;  %v697_v1 = vadd.f32 %v696_v59, %v2696_v54  ;;  %v4421_v60 = vld [vmem:[#allocation30_spill] sm:$0xff]  ;;  %v4422_v56 = vld [vmem:[#allocation27_spill] sm:$0xff]  ;;  %v4428_v59 = vld [vmem:[#allocation33_spill] sm:$0xff] }
 0x314   :  { %1727 = vtanh.f32 %v699_v0  ;;  %v703_v50 = vmul.f32 0.5, %v626_v51  ;;  %v708_v2 = vmul.f32 0.5, %v697_v1  ;;  %v4423_v0 = vld [vmem:[#allocation32_spill] sm:$0xff]  ;;  %v4424_v51 = vld [vmem:[#allocation29_spill] sm:$0xff]  ;;  %v4429_v1 = vld [vmem:[#allocation38_spill] sm:$0xff] }
 0x316   :  { %1729 = vtanh.f32 %v703_v50  ;;  %v4426_v50 = vld [vmem:[#allocation31_spill] sm:$0xff] }
 0x317   :  { %1731 = vtanh.f32 %v695_v52  ;;  %v4427_v52 = vld [vmem:[#allocation36_spill] sm:$0xff] }
 0x318   :  { %1733 = vtanh.f32 %v708_v2  ;;  %v4430_v2 = vld [vmem:[#allocation35_spill] sm:$0xff] }
 0x321   :  { %v1728_v3 = vpop.eup %1727 }
 0x322   :  { %v701_v4 = vmul.f32 0.5, %v1728_v3  ;;  %v4431_v3 = vld [vmem:[#allocation40_spill] sm:$0xff] }
 0x323   :  { %v1730_v6 = vpop.eup %1729 }
 0x324   :  { %v702_v7 = vadd.f32 0.5, %v701_v4  ;;  %v705_v8 = vmul.f32 0.5, %v1730_v6  ;;  %v1732_v10 = vpop.eup %1731  ;;  %v4432_v4 = vld [vmem:[#allocation37_spill] sm:$0xff]  ;;  %v4433_v6 = vld [vmem:[#allocation42_spill] sm:$0xff] }
 0x325   :  { %v1734_v14 = vpop.eup %1733 }
 0x326   :  { %v706_v9 = vadd.f32 0.5, %v705_v8  ;;  %v713_v12 = vmul.f32 %v1732_v10, %v702_v7  ;;  %v710_v15 = vmul.f32 0.5, %v1734_v14  ;;  %v4434_v7 = vld [vmem:[#allocation39_spill] sm:$0xff]  ;;  %v4435_v8 = vld [vmem:[#allocation44_spill] sm:$0xff]  ;;  %v4437_v10 = vld [vmem:[#allocation46_spill] sm:$0xff] }
 0x327   :  { %v4440_v14 = vld [vmem:[#allocation45_spill] sm:$0xff] }
 0x328   :  { %v712_v11 = vmul.f32 %v706_v9, %v2839_v63  ;;  %v711_v16 = vadd.f32 0.5, %v710_v15  ;;  %v4418_v63 = vld [vmem:[#allocation23_spill] sm:$0xff]  ;;  %v4436_v9 = vld [vmem:[#allocation41_spill] sm:$0xff]  ;;  %v4441_v15 = vld [vmem:[#allocation50_spill] sm:$0xff] }
 0x32a   :  { %v3161_v13 = vadd.f32 %v713_v12, %v712_v11  ;;  %v4438_v11 = vld [vmem:[#allocation43_spill] sm:$0xff]  ;;  %v4439_v12 = vld [vmem:[#allocation48_spill] sm:$0xff] }
 0x32c   :  { %1735 = vtanh.f32 %v3161_v13 }
 0x339   :  { %v1736_v17 = vpop.eup %1735 }
 0x33a   :  { %v716_v18 = vmul.f32 %v1736_v17, %v711_v16  ;;  %v4442_v16 = vld [vmem:[#allocation47_spill] sm:$0xff]  ;;  %v4443_v17 = vld [vmem:[#allocation52_spill] sm:$0xff] }
 0x33c   :  { %784 = vmatmul.mubr.f32.vlgmr.msra.gmra.mxu0 %v716_v18  ;;  %855 = vmatmul.mubr.f32.vlgmr.msra.gmra.mxu1 %v716_v18  ;;  %v4444_v18 = vld [vmem:[#allocation49_spill] sm:$0xff] }
 0x33d   :  { %882 = vmatpush1.msra.mxu0 %v2842_v31  ;;  %953 = vmatpush1.msra.mxu1 %v2845_v32 }
 0x33e   :  { %883 = vmatprep.subr.mxu0 %v2848_v57  ;;  %954 = vmatprep.subr.mxu1 %v2851_v34 }
 0x33f   :  { %884 = vmatpush1.msra.mxu0 %v2854_v35  ;;  %955 = vmatpush1.msra.mxu1 %v2857_v36 }
 0x340   :  { %885 = vmatprep.subr.mxu0 %v2860_v37  ;;  %956 = vmatprep.subr.mxu1 %v2863_v38 }
 0x341   :  { %886 = vmatpush1.msra.mxu0 %v2866_v39  ;;  %957 = vmatpush1.msra.mxu1 %v2869_v40 }
 0x342   :  { %887 = vmatprep.subr.mxu0 %v2872_v41  ;;  %958 = vmatprep.subr.mxu1 %v2875_v42 }
 0x343   :  { %888 = vmatpush1.msra.mxu0 %v2878_v43  ;;  %959 = vmatpush1.msra.mxu1 %v2881_v44 }
 0x344   :  { %889 = vmatprep.subr.mxu0 %v2884_v45  ;;  %960 = vmatprep.subr.mxu1 %v2887_v47 }
 0x345   :  { %890 = vmatpush1.msra.mxu0 %v2890_v55  ;;  %961 = vmatpush1.msra.mxu1 %v2893_v61 }
 0x346   :  { %891 = vmatprep.subr.mxu0 %v4412_v19  ;;  %962 = vmatprep.subr.mxu1 %v4413_v20 }
 0x347   :  { %892 = vmatpush1.msra.mxu0 %v4414_v21  ;;  %963 = vmatpush1.msra.mxu1 %v4415_v22 }
 0x348   :  { %893 = vmatprep.subr.mxu0 %v4416_v23  ;;  %964 = vmatprep.subr.mxu1 %v4417_v24 }
 0x349   :  { %894 = vmatpush1.msra.mxu0 %v4418_v63  ;;  %965 = vmatpush1.msra.mxu1 %v4419_v53 }
 0x34a   :  { %895 = vmatprep.subr.mxu0 %v4420_v62  ;;  %966 = vmatprep.subr.mxu1 %v4421_v60 }
 0x34b   :  { %896 = vmatpush1.msra.mxu0 %v4422_v56  ;;  %967 = vmatpush1.msra.mxu1 %v4423_v0 }
 0x34c   :  { %897 = vmatprep.subr.mxu0 %v4424_v51  ;;  %968 = vmatprep.subr.mxu1 %v4425_v49 }
 0x34d   :  { %898 = vmatpush1.msra.mxu0 %v4426_v50  ;;  %969 = vmatpush1.msra.mxu1 %v4427_v52 }
 0x34e   :  { %899 = vmatprep.subr.mxu0 %v4428_v59  ;;  %970 = vmatprep.subr.mxu1 %v4429_v1 }
 0x34f   :  { %900 = vmatpush1.msra.mxu0 %v4430_v2  ;;  %971 = vmatpush1.msra.mxu1 %v4431_v3 }
 0x350   :  { %901 = vmatprep.subr.mxu0 %v4432_v4  ;;  %972 = vmatprep.subr.mxu1 %v4433_v6 }
 0x351   :  { %902 = vmatpush1.msra.mxu0 %v4434_v7  ;;  %973 = vmatpush1.msra.mxu1 %v4435_v8  ;;  %v4445_v7 = vld [vmem:[#allocation54_spill] sm:$0xff]  ;;  %v4446_v8 = vld [vmem:[#allocation51_spill] sm:$0xff] }
 0x352   :  { %903 = vmatprep.subr.mxu0 %v4436_v9  ;;  %974 = vmatprep.subr.mxu1 %v4437_v10  ;;  %v4447_v9 = vld [vmem:[#allocation56_spill] sm:$0xff]  ;;  %v4448_v10 = vld [vmem:[#allocation53_spill] sm:$0xff] }
 0x353   :  { %904 = vmatpush1.msra.mxu0 %v4438_v11  ;;  %975 = vmatpush1.msra.mxu1 %v4439_v12  ;;  %v4449_v11 = vld [vmem:[#allocation58_spill] sm:$0xff]  ;;  %v4450_v12 = vld [vmem:[#allocation55_spill] sm:$0xff] }
 0x354   :  { %905 = vmatprep.subr.mxu0 %v4440_v14  ;;  %976 = vmatprep.subr.mxu1 %v4441_v15  ;;  %v4451_v14 = vld [vmem:[#allocation60_spill] sm:$0xff]  ;;  %v4452_v15 = vld [vmem:[#allocation57_spill] sm:$0xff] }
 0x355   :  { %906 = vmatpush1.msra.mxu0 %v4442_v16  ;;  %977 = vmatpush1.msra.mxu1 %v4443_v17  ;;  %v4453_v16 = vld [vmem:[#allocation62_spill] sm:$0xff]  ;;  %v4454_v17 = vld [vmem:[#allocation59_spill] sm:$0xff] }
 0x356   :  { %907 = vmatprep.subr.mxu0 %v4444_v18  ;;  %978 = vmatprep.subr.mxu1 %v4445_v7  ;;  %v4455_v18 = vld [vmem:[#allocation64_spill] sm:$0xff]  ;;  %v4456_v7 = vld [vmem:[#allocation61_spill] sm:$0xff] }
 0x357   :  { %908 = vmatpush1.msra.mxu0 %v4446_v8  ;;  %979 = vmatpush1.msra.mxu1 %v4447_v9  ;;  %v4457_v8 = vld [vmem:[#allocation66_spill] sm:$0xff]  ;;  %v4458_v9 = vld [vmem:[#allocation63_spill] sm:$0xff] }
 0x358   :  { %909 = vmatprep.subr.mxu0 %v4448_v10  ;;  %980 = vmatprep.subr.mxu1 %v4449_v11  ;;  %v4459_v10 = vld [vmem:[#allocation68_spill] sm:$0xff]  ;;  %v4460_v11 = vld [vmem:[#allocation65_spill] sm:$0xff] }
 0x359   :  { %910 = vmatpush1.msra.mxu0 %v4450_v12  ;;  %981 = vmatpush1.msra.mxu1 %v4451_v14  ;;  %v4461_v12 = vld [vmem:[#allocation70_spill] sm:$0xff]  ;;  %v4462_v14 = vld [vmem:[#allocation67_spill] sm:$0xff] }
 0x35a   :  { %911 = vmatprep.subr.mxu0 %v4452_v15  ;;  %982 = vmatprep.subr.mxu1 %v4453_v16  ;;  %v4463_v15 = vld [vmem:[#allocation72_spill] sm:$0xff]  ;;  %v4464_v16 = vld [vmem:[#allocation69_spill] sm:$0xff] }
 0x35b   :  { %912 = vmatpush1.msra.mxu0 %v4454_v17  ;;  %983 = vmatpush1.msra.mxu1 %v4455_v18  ;;  %v4465_v17 = vld [vmem:[#allocation74_spill] sm:$0xff]  ;;  %v4466_v18 = vld [vmem:[#allocation71_spill] sm:$0xff] }
 0x35c   :  { %913 = vmatprep.subr.mxu0 %v4456_v7  ;;  %984 = vmatprep.subr.mxu1 %v4457_v8  ;;  %v4467_v7 = vld [vmem:[#allocation76_spill] sm:$0xff]  ;;  %v4468_v8 = vld [vmem:[#allocation73_spill] sm:$0xff] }
 0x35d   :  { %914 = vmatpush2.msra.mxu0 %v4458_v9  ;;  %985 = vmatpush2.msra.mxu1 %v4459_v10  ;;  %v4469_v9 = vld [vmem:[#allocation78_spill] sm:$0xff]  ;;  %v4470_v10 = vld [vmem:[#allocation75_spill] sm:$0xff] }
 0x35e   :  { %915 = vmatprep.subr.mxu0 %v4460_v11  ;;  %986 = vmatprep.subr.mxu1 %v4461_v12  ;;  %v4471_v11 = vld [vmem:[#allocation80_spill] sm:$0xff]  ;;  %v4472_v12 = vld [vmem:[#allocation82_spill] sm:$0xff] }
 0x35f   :  { %916 = vmatpush2.msra.mxu0 %v4462_v14  ;;  %987 = vmatpush2.msra.mxu1 %v4463_v15  ;;  %v4473_v14 = vld [vmem:[#allocation84_spill] sm:$0xff]  ;;  %v4474_v15 = vld [vmem:[#allocation81_spill] sm:$0xff] }
 0x360   :  { %917 = vmatprep.subr.mxu0 %v4464_v16  ;;  %988 = vmatprep.subr.mxu1 %v4465_v17  ;;  %v4475_v16 = vld [vmem:[#allocation86_spill] sm:$0xff]  ;;  %v4476_v17 = vld [vmem:[#allocation83_spill] sm:$0xff] }
 0x361   :  { %918 = vmatpush2.msra.mxu0 %v4466_v18  ;;  %989 = vmatpush2.msra.mxu1 %v4467_v7  ;;  %v4477_v18 = vld [vmem:[#allocation88_spill] sm:$0xff] }
 0x362   :  { %919 = vmatprep.subr.mxu0 %v4468_v8  ;;  %990 = vmatprep.subr.mxu1 %v4469_v9  ;;  %v4478_v8 = vld [vmem:[#allocation91_spill] sm:$0xff] }
 0x363   :  { %920 = vmatpush2.msra.mxu0 %v4470_v10  ;;  %991 = vmatpush2.msra.mxu1 %v4471_v11  ;;  %v4479_v9 = vld [vmem:[#allocation87_spill] sm:$0xff]  ;;  %v4480_v11 = vld [vmem:[#allocation89_spill] sm:$0xff] }
 0x364   :  { %921 = vmatprep.subr.mxu0 %v4472_v12  ;;  %992 = vmatprep.subr.mxu1 %v4473_v14  ;;  %v3253_v12 = vld [vmem:[#allocation7 + $0x330] sm:$0xff] }
 0x365   :  { %922 = vmatpush2.msra.mxu0 %v4474_v15  ;;  %993 = vmatpush2.msra.mxu1 %v4475_v16  ;;  %4481 = vst [vmem:[#allocation98_spill] sm:$0xff] %v3253_v12  ;;  %v3257_v16 = vld [vmem:[#allocation7 + $0x318] sm:$0xff] }
 0x366   :  { %923 = vmatprep.subr.mxu0 %v4476_v17  ;;  %994 = vmatprep.subr.mxu1 %v4477_v18  ;;  %4482 = vst [vmem:[#allocation94_spill] sm:$0xff] %v3257_v16 }
 0x367   :  { %924 = vmatpush2.msra.mxu0 %v3094_v58  ;;  %995 = vmatpush2.msra.mxu1 %v4478_v8  ;;  %v3261_v58 = vld [vmem:[#allocation7 + $0x310] sm:$0xff] }
 0x368   :  { %925 = vmatprep.subr.mxu0 %v4479_v9  ;;  %996 = vmatprep.subr.mxu1 %v3103_v27  ;;  %4483 = vst [vmem:[#allocation99_spill] sm:$0xff] %v3261_v58  ;;  %v3265_v27 = vld [vmem:[#allocation7 + $0x2f8] sm:$0xff] }
 0x369   :  { %926 = vmatpush2.msra.mxu0 %v4480_v11  ;;  %997 = vmatpush2.msra.mxu1 %v3253_v12  ;;  %4484 = vst [vmem:[#allocation96_spill] sm:$0xff] %v3265_v27  ;;  %v3269_v12 = vld [vmem:[#allocation7 + $0x2f0] sm:$0xff] }
 0x36a   :  { %927 = vmatprep.subr.mxu0 %v3110_v30  ;;  %998 = vmatprep.subr.mxu1 %v3257_v16  ;;  %4485 = vst [vmem:[#allocation100_spill] sm:$0xff] %v3269_v12  ;;  %v3272_v30 = vld [vmem:[#allocation7 + $0x2c8] sm:$0xff] }
 0x36b   :  { %928 = vmatpush2.msra.mxu0 %v3114_v5  ;;  %999 = vmatpush2.msra.mxu1 %v3261_v58  ;;  %4486 = vst [vmem:[#allocation79_spill] sm:$0xff] %v3272_v30  ;;  %v3275_v5 = vld [vmem:[#allocation7 + $0x2d8] sm:$0xff]  ;;  %v3278_v58 = vld [vmem:[#allocation7 + $0x2c0] sm:$0xff] }
 0x36c   :  { %929 = vmatprep.subr.mxu0 %v3118_v46  ;;  %1000 = vmatprep.subr.mxu1 %v3265_v27  ;;  %4487 = vst [vmem:[#allocation18_spill] sm:$0xff] %v3275_v5  ;;  %4488 = vst [vmem:[#allocation22_spill] sm:$0xff] %v3278_v58  ;;  %v3281_v46 = vld [vmem:[#allocation7 + $0x2d0] sm:$0xff] }
 0x36d   :  { %930 = vmatpush2.msra.mxu0 %v3122_v28  ;;  %1001 = vmatpush2.msra.mxu1 %v3269_v12  ;;  %4489 = vst [vmem:[#allocation19_spill] sm:$0xff] %v3281_v46  ;;  %v3284_v28 = vld [vmem:[#allocation7 + $0x2a8] sm:$0xff]  ;;  %v3287_v12 = vld [vmem:[#allocation7 + $0x2b8] sm:$0xff] }
 0x36e   :  { %931 = vmatprep.subr.mxu0 %v3272_v30  ;;  %1002 = vmatprep.subr.mxu1 %v3275_v5  ;;  %4490 = vst [vmem:[#allocation24_spill] sm:$0xff] %v3284_v28  ;;  %4491 = vst [vmem:[#allocation21_spill] sm:$0xff] %v3287_v12  ;;  %v3290_v30 = vld [vmem:[#allocation7 + $0x2a0] sm:$0xff]  ;;  %v3293_v5 = vld [vmem:[#allocation7 + $0x2b0] sm:$0xff] }
 0x36f   :  { %932 = vmatpush2.msra.mxu0 %v3278_v58  ;;  %1003 = vmatpush2.msra.mxu1 %v3281_v46  ;;  %4492 = vst [vmem:[#allocation26_spill] sm:$0xff] %v3290_v30  ;;  %4493 = vst [vmem:[#allocation23_spill] sm:$0xff] %v3293_v5  ;;  %v3296_v58 = vld [vmem:[#allocation7 + $0x288] sm:$0xff]  ;;  %v3299_v46 = vld [vmem:[#allocation7 + $0x298] sm:$0xff] }
 0x370   :  { %933 = vmatprep.subr.mxu0 %v3284_v28  ;;  %1004 = vmatprep.subr.mxu1 %v3287_v12  ;;  %4494 = vst [vmem:[#allocation28_spill] sm:$0xff] %v3296_v58  ;;  %4495 = vst [vmem:[#allocation25_spill] sm:$0xff] %v3299_v46  ;;  %v3302_v28 = vld [vmem:[#allocation7 + $0x280] sm:$0xff]  ;;  %v3305_v12 = vld [vmem:[#allocation7 + $0x290] sm:$0xff] }
 0x371   :  { %934 = vmatpush2.msra.mxu0 %v3290_v30  ;;  %1005 = vmatpush2.msra.mxu1 %v3293_v5  ;;  %4496 = vst [vmem:[#allocation30_spill] sm:$0xff] %v3302_v28  ;;  %4497 = vst [vmem:[#allocation27_spill] sm:$0xff] %v3305_v12  ;;  %v3308_v30 = vld [vmem:[#allocation7 + $0x268] sm:$0xff]  ;;  %v3311_v5 = vld [vmem:[#allocation7 + $0x278] sm:$0xff] }
 0x372   :  { %935 = vmatprep.subr.mxu0 %v3296_v58  ;;  %1006 = vmatprep.subr.mxu1 %v3299_v46  ;;  %4498 = vst [vmem:[#allocation32_spill] sm:$0xff] %v3308_v30  ;;  %4499 = vst [vmem:[#allocation29_spill] sm:$0xff] %v3311_v5  ;;  %v3314_v58 = vld [vmem:[#allocation7 + $0x260] sm:$0xff]  ;;  %v3317_v46 = vld [vmem:[#allocation7 + $0x270] sm:$0xff] }
 0x373   :  { %936 = vmatpush2.msra.mxu0 %v3302_v28  ;;  %1007 = vmatpush2.msra.mxu1 %v3305_v12  ;;  %4500 = vst [vmem:[#allocation34_spill] sm:$0xff] %v3314_v58  ;;  %4501 = vst [vmem:[#allocation31_spill] sm:$0xff] %v3317_v46  ;;  %v3320_v28 = vld [vmem:[#allocation7 + $0x248] sm:$0xff]  ;;  %v3323_v12 = vld [vmem:[#allocation7 + $0x258] sm:$0xff] }
 0x374   :  { %937 = vmatprep.subr.mxu0 %v3308_v30  ;;  %1008 = vmatprep.subr.mxu1 %v3311_v5  ;;  %4502 = vst [vmem:[#allocation36_spill] sm:$0xff] %v3320_v28  ;;  %4503 = vst [vmem:[#allocation33_spill] sm:$0xff] %v3323_v12  ;;  %v3326_v30 = vld [vmem:[#allocation7 + $0x240] sm:$0xff]  ;;  %v3329_v5 = vld [vmem:[#allocation7 + $0x250] sm:$0xff] }
 0x375   :  { %938 = vmatpush2.msra.mxu0 %v3314_v58  ;;  %1009 = vmatpush2.msra.mxu1 %v3317_v46  ;;  %4504 = vst [vmem:[#allocation38_spill] sm:$0xff] %v3326_v30  ;;  %4505 = vst [vmem:[#allocation35_spill] sm:$0xff] %v3329_v5  ;;  %v3332_v58 = vld [vmem:[#allocation7 + $0x228] sm:$0xff]  ;;  %v3335_v46 = vld [vmem:[#allocation7 + $0x238] sm:$0xff] }
 0x376   :  { %939 = vmatprep.subr.mxu0 %v3320_v28  ;;  %1010 = vmatprep.subr.mxu1 %v3323_v12  ;;  %4506 = vst [vmem:[#allocation40_spill] sm:$0xff] %v3332_v58  ;;  %4507 = vst [vmem:[#allocation37_spill] sm:$0xff] %v3335_v46  ;;  %v3338_v28 = vld [vmem:[#allocation7 + $0x220] sm:$0xff]  ;;  %v3341_v12 = vld [vmem:[#allocation7 + $0x230] sm:$0xff] }
 0x377   :  { %940 = vmatpush2.msra.mxu0 %v3326_v30  ;;  %1011 = vmatpush2.msra.mxu1 %v3329_v5  ;;  %4508 = vst [vmem:[#allocation42_spill] sm:$0xff] %v3338_v28  ;;  %4509 = vst [vmem:[#allocation101_spill] sm:$0xff] %v3341_v12  ;;  %v3344_v30 = vld [vmem:[#allocation7 + $0x208] sm:$0xff]  ;;  %v3347_v5 = vld [vmem:[#allocation7 + $0x218] sm:$0xff] }
 0x378   :  { %941 = vmatprep.subr.mxu0 %v3332_v58  ;;  %1012 = vmatprep.subr.mxu1 %v3335_v46  ;;  %4510 = vst [vmem:[#allocation102_spill] sm:$0xff] %v3344_v30  ;;  %4511 = vst [vmem:[#allocation103_spill] sm:$0xff] %v3347_v5  ;;  %v3350_v58 = vld [vmem:[#allocation7 + $0x200] sm:$0xff]  ;;  %v3353_v46 = vld [vmem:[#allocation7 + $0x210] sm:$0xff] }
 0x379   :  { %942 = vmatpush2.msra.mxu0 %v3338_v28  ;;  %1013 = vmatpush2.msra.mxu1 %v3341_v12  ;;  %4512 = vst [vmem:[#allocation104_spill] sm:$0xff] %v3350_v58  ;;  %4513 = vst [vmem:[#allocation105_spill] sm:$0xff] %v3353_v46  ;;  %v880_v12 = vld [vmem:[#allocation4 + $0x20] sm:$0xff] }
 0x37a   :  { %943 = vmatprep.subr.mxu0 %v3344_v30  ;;  %1014 = vmatprep.subr.mxu1 %v3347_v5 }
 0x37b   :  { %944 = vmatpush2.msra.mxu0 %v3350_v58  ;;  %1015 = vmatpush2.msra.mxu1 %v3353_v46 }
 0x37c   :  { %1043 = vmatprep.subr.mxu0 %v2828_v25  ;;  %1114 = vmatprep.subr.mxu1 %v2831_v26 }
 0x37d   :  { %945 = vmatprep.mubr.f32.mxu0 %v880_v12  ;;  %1016 = vmatprep.mubr.f32.mxu1 %v880_v12 }
 0x3fc   :  { %v785_v30 = vpop.f32.mrf.mxu0  ;;  %v856_v11 = vpop.f32.mrf.mxu1 }
 0x3fd   :  { %v786_v28 = vadd.f32 %v785_v30, %v4335_v29  ;;  %v857_v9 = vadd.f32 %v856_v11, %v2692_v48 }
 0x3fe   :  { %v787_v27 = vpop.f32.mrf.mxu0  ;;  %v858_v46 = vpop.f32.mrf.mxu1 }
 0x3ff   :  { %v861_v5 = vmul.f32 0.5, %v786_v28  ;;  %v788_v16 = vadd.f32 %v787_v27, %v4336_v33  ;;  %v859_v26 = vadd.f32 %v858_v46, %v2696_v54 }
 0x401   :  { %1737 = vtanh.f32 %v861_v5  ;;  %v865_v58 = vmul.f32 0.5, %v788_v16  ;;  %v870_v25 = vmul.f32 0.5, %v859_v26 }
 0x403   :  { %1739 = vtanh.f32 %v865_v58 }
 0x404   :  { %1741 = vtanh.f32 %v857_v9 }
 0x405   :  { %1743 = vtanh.f32 %v870_v25  ;;  %v4514_v25 = vld [vmem:[#allocation39_spill] sm:$0xff] }
 0x40e   :  { %v1738_v8 = vpop.eup %1737 }
 0x40f   :  { %v863_v12 = vmul.f32 0.5, %v1738_v8  ;;  %v4517_v8 = vld [vmem:[#allocation46_spill] sm:$0xff] }
 0x410   :  { %v1740_v18 = vpop.eup %1739 }
 0x411   :  { %v864_v17 = vadd.f32 0.5, %v863_v12  ;;  %v867_v30 = vmul.f32 0.5, %v1740_v18  ;;  %v1742_v29 = vpop.eup %1741  ;;  %v4519_v18 = vld [vmem:[#allocation48_spill] sm:$0xff]  ;;  %v4520_v12 = vld [vmem:[#allocation45_spill] sm:$0xff] }
 0x412   :  { %v1744_v58 = vpop.eup %1743 }
 0x413   :  { %v868_v28 = vadd.f32 0.5, %v867_v30  ;;  %v875_v5 = vmul.f32 %v1742_v29, %v864_v17  ;;  %v872_v9 = vmul.f32 0.5, %v1744_v58  ;;  %v4515_v29 = vld [vmem:[#allocation44_spill] sm:$0xff]  ;;  %v4518_v17 = vld [vmem:[#allocation43_spill] sm:$0xff]  ;;  %v4521_v30 = vld [vmem:[#allocation50_spill] sm:$0xff] }
 0x414   :  { %v4525_v58 = vld [vmem:[#allocation54_spill] sm:$0xff] }
 0x415   :  { %v874_v27 = vmul.f32 %v868_v28, %v3161_v13  ;;  %v873_v11 = vadd.f32 0.5, %v872_v9  ;;  %v4516_v13 = vld [vmem:[#allocation41_spill] sm:$0xff]  ;;  %v4522_v28 = vld [vmem:[#allocation47_spill] sm:$0xff] }
 0x416   :  { %v4526_v9 = vld [vmem:[#allocation51_spill] sm:$0xff] }
 0x417   :  { %v3363_v16 = vadd.f32 %v875_v5, %v874_v27  ;;  %v4523_v27 = vld [vmem:[#allocation52_spill] sm:$0xff]  ;;  %v4524_v5 = vld [vmem:[#allocation49_spill] sm:$0xff] }
 0x419   :  { %1745 = vtanh.f32 %v3363_v16 }
 0x426   :  { %v1746_v46 = vpop.eup %1745 }
 0x427   :  { %v878_v26 = vmul.f32 %v1746_v46, %v873_v11  ;;  %v4527_v11 = vld [vmem:[#allocation56_spill] sm:$0xff]  ;;  %v4528_v46 = vld [vmem:[#allocation53_spill] sm:$0xff] }
 0x429   :  { %946 = vmatmul.mubr.f32.vlgmr.msra.gmra.mxu0 %v878_v26  ;;  %1017 = vmatmul.mubr.f32.vlgmr.msra.gmra.mxu1 %v878_v26  ;;  %v4529_v26 = vld [vmem:[#allocation58_spill] sm:$0xff] }
 0x42a   :  { %1044 = vmatpush1.msra.mxu0 %v2842_v31  ;;  %1115 = vmatpush1.msra.mxu1 %v2845_v32 }
 0x42b   :  { %1045 = vmatprep.subr.mxu0 %v2848_v57  ;;  %1116 = vmatprep.subr.mxu1 %v2851_v34 }
 0x42c   :  { %1046 = vmatpush1.msra.mxu0 %v2854_v35  ;;  %1117 = vmatpush1.msra.mxu1 %v2857_v36 }
 0x42d   :  { %1047 = vmatprep.subr.mxu0 %v2860_v37  ;;  %1118 = vmatprep.subr.mxu1 %v2863_v38 }
 0x42e   :  { %1048 = vmatpush1.msra.mxu0 %v2866_v39  ;;  %1119 = vmatpush1.msra.mxu1 %v2869_v40 }
 0x42f   :  { %1049 = vmatprep.subr.mxu0 %v2872_v41  ;;  %1120 = vmatprep.subr.mxu1 %v2875_v42 }
 0x430   :  { %1050 = vmatpush1.msra.mxu0 %v2878_v43  ;;  %1121 = vmatpush1.msra.mxu1 %v2881_v44 }
 0x431   :  { %1051 = vmatprep.subr.mxu0 %v2884_v45  ;;  %1122 = vmatprep.subr.mxu1 %v2887_v47 }
 0x432   :  { %1052 = vmatpush1.msra.mxu0 %v2890_v55  ;;  %1123 = vmatpush1.msra.mxu1 %v2893_v61 }
 0x433   :  { %1053 = vmatprep.subr.mxu0 %v4412_v19  ;;  %1124 = vmatprep.subr.mxu1 %v4413_v20 }
 0x434   :  { %1054 = vmatpush1.msra.mxu0 %v4414_v21  ;;  %1125 = vmatpush1.msra.mxu1 %v4415_v22 }
 0x435   :  { %1055 = vmatprep.subr.mxu0 %v4416_v23  ;;  %1126 = vmatprep.subr.mxu1 %v4417_v24 }
 0x436   :  { %1056 = vmatpush1.msra.mxu0 %v4418_v63  ;;  %1127 = vmatpush1.msra.mxu1 %v4419_v53 }
 0x437   :  { %1057 = vmatprep.subr.mxu0 %v4420_v62  ;;  %1128 = vmatprep.subr.mxu1 %v4421_v60 }
 0x438   :  { %1058 = vmatpush1.msra.mxu0 %v4422_v56  ;;  %1129 = vmatpush1.msra.mxu1 %v4423_v0 }
 0x439   :  { %1059 = vmatprep.subr.mxu0 %v4424_v51  ;;  %1130 = vmatprep.subr.mxu1 %v4425_v49 }
 0x43a   :  { %1060 = vmatpush1.msra.mxu0 %v4426_v50  ;;  %1131 = vmatpush1.msra.mxu1 %v4427_v52 }
 0x43b   :  { %1061 = vmatprep.subr.mxu0 %v4428_v59  ;;  %1132 = vmatprep.subr.mxu1 %v4429_v1 }
 0x43c   :  { %1062 = vmatpush1.msra.mxu0 %v4430_v2  ;;  %1133 = vmatpush1.msra.mxu1 %v4431_v3 }
 0x43d   :  { %1063 = vmatprep.subr.mxu0 %v4432_v4  ;;  %1134 = vmatprep.subr.mxu1 %v4433_v6 }
 0x43e   :  { %1064 = vmatpush1.msra.mxu0 %v4514_v25  ;;  %1135 = vmatpush1.msra.mxu1 %v4515_v29 }
 0x43f   :  { %1065 = vmatprep.subr.mxu0 %v4516_v13  ;;  %1136 = vmatprep.subr.mxu1 %v4517_v8 }
 0x440   :  { %1066 = vmatpush1.msra.mxu0 %v4518_v17  ;;  %1137 = vmatpush1.msra.mxu1 %v4519_v18  ;;  %v4530_v18 = vld [vmem:[#allocation55_spill] sm:$0xff] }
 0x441   :  { %1067 = vmatprep.subr.mxu0 %v4520_v12  ;;  %1138 = vmatprep.subr.mxu1 %v4521_v30  ;;  %v4531_v12 = vld [vmem:[#allocation60_spill] sm:$0xff]  ;;  %v4532_v30 = vld [vmem:[#allocation57_spill] sm:$0xff] }
 0x442   :  { %1068 = vmatpush1.msra.mxu0 %v4522_v28  ;;  %1139 = vmatpush1.msra.mxu1 %v4523_v27  ;;  %v4533_v28 = vld [vmem:[#allocation62_spill] sm:$0xff]  ;;  %v4534_v27 = vld [vmem:[#allocation59_spill] sm:$0xff] }
 0x443   :  { %1069 = vmatprep.subr.mxu0 %v4524_v5  ;;  %1140 = vmatprep.subr.mxu1 %v4525_v58  ;;  %v4535_v5 = vld [vmem:[#allocation64_spill] sm:$0xff]  ;;  %v4536_v58 = vld [vmem:[#allocation61_spill] sm:$0xff] }
 0x444   :  { %1070 = vmatpush1.msra.mxu0 %v4526_v9  ;;  %1141 = vmatpush1.msra.mxu1 %v4527_v11  ;;  %v4537_v9 = vld [vmem:[#allocation66_spill] sm:$0xff]  ;;  %v4538_v11 = vld [vmem:[#allocation63_spill] sm:$0xff] }
 0x445   :  { %1071 = vmatprep.subr.mxu0 %v4528_v46  ;;  %1142 = vmatprep.subr.mxu1 %v4529_v26  ;;  %v4539_v46 = vld [vmem:[#allocation68_spill] sm:$0xff]  ;;  %v4540_v26 = vld [vmem:[#allocation65_spill] sm:$0xff] }
 0x446   :  { %1072 = vmatpush1.msra.mxu0 %v4530_v18  ;;  %1143 = vmatpush1.msra.mxu1 %v4531_v12  ;;  %v4541_v18 = vld [vmem:[#allocation70_spill] sm:$0xff]  ;;  %v4542_v12 = vld [vmem:[#allocation67_spill] sm:$0xff] }
 0x447   :  { %1073 = vmatprep.subr.mxu0 %v4532_v30  ;;  %1144 = vmatprep.subr.mxu1 %v4533_v28  ;;  %v4543_v30 = vld [vmem:[#allocation72_spill] sm:$0xff]  ;;  %v4544_v28 = vld [vmem:[#allocation69_spill] sm:$0xff] }
 0x448   :  { %1074 = vmatpush1.msra.mxu0 %v4534_v27  ;;  %1145 = vmatpush1.msra.mxu1 %v4535_v5  ;;  %v4545_v27 = vld [vmem:[#allocation74_spill] sm:$0xff]  ;;  %v4546_v5 = vld [vmem:[#allocation71_spill] sm:$0xff] }
 0x449   :  { %1075 = vmatprep.subr.mxu0 %v4536_v58  ;;  %1146 = vmatprep.subr.mxu1 %v4537_v9  ;;  %v4547_v9 = vld [vmem:[#allocation73_spill] sm:$0xff] }
 0x44a   :  { %1076 = vmatpush2.msra.mxu0 %v4538_v11  ;;  %1147 = vmatpush2.msra.mxu1 %v4539_v46  ;;  %v4548_v11 = vld [vmem:[#allocation78_spill] sm:$0xff] }
 0x44b   :  { %1077 = vmatprep.subr.mxu0 %v4540_v26  ;;  %1148 = vmatprep.subr.mxu1 %v4541_v18  ;;  %v4549_v26 = vld [vmem:[#allocation80_spill] sm:$0xff]  ;;  %v4550_v18 = vld [vmem:[#allocation82_spill] sm:$0xff] }
 0x44c   :  { %1078 = vmatpush2.msra.mxu0 %v4542_v12  ;;  %1149 = vmatpush2.msra.mxu1 %v4543_v30 }
 0x44d   :  { %1079 = vmatprep.subr.mxu0 %v4544_v28  ;;  %1150 = vmatprep.subr.mxu1 %v4545_v27  ;;  %v4551_v28 = vld [vmem:[#allocation86_spill] sm:$0xff]  ;;  %v4552_v27 = vld [vmem:[#allocation83_spill] sm:$0xff] }
 0x44e   :  { %1080 = vmatpush2.msra.mxu0 %v4546_v5  ;;  %1151 = vmatpush2.msra.mxu1 %v4467_v7  ;;  %v4553_v5 = vld [vmem:[#allocation88_spill] sm:$0xff]  ;;  %v4554_v7 = vld [vmem:[#allocation85_spill] sm:$0xff] }
 0x44f   :  { %1081 = vmatprep.subr.mxu0 %v4547_v9  ;;  %1152 = vmatprep.subr.mxu1 %v4548_v11  ;;  %v4555_v9 = vld [vmem:[#allocation91_spill] sm:$0xff] }
 0x450   :  { %1082 = vmatpush2.msra.mxu0 %v4470_v10  ;;  %1153 = vmatpush2.msra.mxu1 %v4549_v26  ;;  %v4556_v11 = vld [vmem:[#allocation87_spill] sm:$0xff]  ;;  %v4557_v10 = vld [vmem:[#allocation93_spill] sm:$0xff] }
 0x451   :  { %1083 = vmatprep.subr.mxu0 %v4550_v18  ;;  %1154 = vmatprep.subr.mxu1 %v4473_v14  ;;  %v4558_v26 = vld [vmem:[#allocation89_spill] sm:$0xff]  ;;  %v4559_v18 = vld [vmem:[#allocation98_spill] sm:$0xff]  ;;  %v4560_v14 = vld [vmem:[#allocation95_spill] sm:$0xff] }
 0x452   :  { %1084 = vmatpush2.msra.mxu0 %v4474_v15  ;;  %1155 = vmatpush2.msra.mxu1 %v4551_v28  ;;  %v4561_v15 = vld [vmem:[#allocation94_spill] sm:$0xff] }
 0x453   :  { %1085 = vmatprep.subr.mxu0 %v4552_v27  ;;  %1156 = vmatprep.subr.mxu1 %v4553_v5  ;;  %v4562_v28 = vld [vmem:[#allocation90_spill] sm:$0xff]  ;;  %v4563_v27 = vld [vmem:[#allocation99_spill] sm:$0xff]  ;;  %v4564_v5 = vld [vmem:[#allocation97_spill] sm:$0xff] }
 0x454   :  { %1086 = vmatpush2.msra.mxu0 %v4554_v7  ;;  %1157 = vmatpush2.msra.mxu1 %v4555_v9  ;;  %v4565_v7 = vld [vmem:[#allocation96_spill] sm:$0xff] }
 0x455   :  { %1087 = vmatprep.subr.mxu0 %v4556_v11  ;;  %1158 = vmatprep.subr.mxu1 %v4557_v10  ;;  %v4566_v9 = vld [vmem:[#allocation92_spill] sm:$0xff]  ;;  %v4568_v10 = vld [vmem:[#allocation79_spill] sm:$0xff] }
 0x456   :  { %1088 = vmatpush2.msra.mxu0 %v4558_v26  ;;  %1159 = vmatpush2.msra.mxu1 %v4559_v18  ;;  %v4567_v11 = vld [vmem:[#allocation100_spill] sm:$0xff]  ;;  %v4569_v26 = vld [vmem:[#allocation18_spill] sm:$0xff] }
 0x457   :  { %1089 = vmatprep.subr.mxu0 %v4560_v14  ;;  %1160 = vmatprep.subr.mxu1 %v4561_v15  ;;  %v4570_v18 = vld [vmem:[#allocation22_spill] sm:$0xff]  ;;  %v4571_v14 = vld [vmem:[#allocation19_spill] sm:$0xff]  ;;  %v4572_v15 = vld [vmem:[#allocation24_spill] sm:$0xff] }
 0x458   :  { %1090 = vmatpush2.msra.mxu0 %v4562_v28  ;;  %1161 = vmatpush2.msra.mxu1 %v4563_v27  ;;  %v4573_v28 = vld [vmem:[#allocation21_spill] sm:$0xff]  ;;  %v4574_v27 = vld [vmem:[#allocation26_spill] sm:$0xff] }
 0x459   :  { %1091 = vmatprep.subr.mxu0 %v4564_v5  ;;  %1162 = vmatprep.subr.mxu1 %v4565_v7  ;;  %v4575_v5 = vld [vmem:[#allocation23_spill] sm:$0xff]  ;;  %v4576_v7 = vld [vmem:[#allocation28_spill] sm:$0xff] }
 0x45a   :  { %1092 = vmatpush2.msra.mxu0 %v4566_v9  ;;  %1163 = vmatpush2.msra.mxu1 %v4567_v11  ;;  %v4577_v9 = vld [vmem:[#allocation25_spill] sm:$0xff]  ;;  %v4578_v11 = vld [vmem:[#allocation30_spill] sm:$0xff] }
 0x45b   :  { %1093 = vmatprep.subr.mxu0 %v4568_v10  ;;  %1164 = vmatprep.subr.mxu1 %v4569_v26  ;;  %v4579_v10 = vld [vmem:[#allocation27_spill] sm:$0xff]  ;;  %v4580_v26 = vld [vmem:[#allocation32_spill] sm:$0xff] }
 0x45c   :  { %1094 = vmatpush2.msra.mxu0 %v4570_v18  ;;  %1165 = vmatpush2.msra.mxu1 %v4571_v14  ;;  %v4581_v18 = vld [vmem:[#allocation29_spill] sm:$0xff]  ;;  %v4582_v14 = vld [vmem:[#allocation34_spill] sm:$0xff] }
 0x45d   :  { %1095 = vmatprep.subr.mxu0 %v4572_v15  ;;  %1166 = vmatprep.subr.mxu1 %v4573_v28  ;;  %v4583_v15 = vld [vmem:[#allocation31_spill] sm:$0xff]  ;;  %v4584_v28 = vld [vmem:[#allocation36_spill] sm:$0xff] }
 0x45e   :  { %1096 = vmatpush2.msra.mxu0 %v4574_v27  ;;  %1167 = vmatpush2.msra.mxu1 %v4575_v5  ;;  %v4585_v27 = vld [vmem:[#allocation33_spill] sm:$0xff]  ;;  %v4586_v5 = vld [vmem:[#allocation38_spill] sm:$0xff] }
 0x45f   :  { %1097 = vmatprep.subr.mxu0 %v4576_v7  ;;  %1168 = vmatprep.subr.mxu1 %v4577_v9  ;;  %v4587_v7 = vld [vmem:[#allocation35_spill] sm:$0xff]  ;;  %v4588_v9 = vld [vmem:[#allocation40_spill] sm:$0xff] }
 0x460   :  { %1098 = vmatpush2.msra.mxu0 %v4578_v11  ;;  %1169 = vmatpush2.msra.mxu1 %v4579_v10  ;;  %v4589_v11 = vld [vmem:[#allocation37_spill] sm:$0xff]  ;;  %v4590_v10 = vld [vmem:[#allocation42_spill] sm:$0xff] }
 0x461   :  { %1099 = vmatprep.subr.mxu0 %v4580_v26  ;;  %1170 = vmatprep.subr.mxu1 %v4581_v18  ;;  %v4591_v26 = vld [vmem:[#allocation101_spill] sm:$0xff]  ;;  %v4592_v18 = vld [vmem:[#allocation102_spill] sm:$0xff] }
 0x462   :  { %1100 = vmatpush2.msra.mxu0 %v4582_v14  ;;  %1171 = vmatpush2.msra.mxu1 %v4583_v15  ;;  %v4593_v14 = vld [vmem:[#allocation103_spill] sm:$0xff]  ;;  %v4594_v15 = vld [vmem:[#allocation104_spill] sm:$0xff] }
 0x463   :  { %1101 = vmatprep.subr.mxu0 %v4584_v28  ;;  %1172 = vmatprep.subr.mxu1 %v4585_v27  ;;  %v4595_v28 = vld [vmem:[#allocation105_spill] sm:$0xff] }
 0x464   :  { %1102 = vmatpush2.msra.mxu0 %v4586_v5  ;;  %1173 = vmatpush2.msra.mxu1 %v4587_v7  ;;  %v4596_v27 = vld [vmem:[#allocation17_spill] sm:$0xff]  ;;  %v4597_v5 = vld [vmem:[#allocation20_spill] sm:$0xff] }
 0x465   :  { %1103 = vmatprep.subr.mxu0 %v4588_v9  ;;  %1174 = vmatprep.subr.mxu1 %v4589_v11  ;;  %v1042_v7 = vld [vmem:[#allocation4 + $0x28] sm:$0xff] }
 0x466   :  { %1104 = vmatpush2.msra.mxu0 %v4590_v10  ;;  %1175 = vmatpush2.msra.mxu1 %v4591_v26  ;;  %v4598_v9 = vld [vmem:[#allocation77_spill] sm:$0xff] }
 0x467   :  { %1105 = vmatprep.subr.mxu0 %v4592_v18  ;;  %1176 = vmatprep.subr.mxu1 %v4593_v14 }
 0x468   :  { %1106 = vmatpush2.msra.mxu0 %v4594_v15  ;;  %1177 = vmatpush2.msra.mxu1 %v4595_v28 }
 0x469   :  { %1205 = vmatprep.subr.mxu0 %v4596_v27  ;;  %1276 = vmatprep.subr.mxu1 %v4597_v5 }
 0x46a   :  { %1107 = vmatprep.mubr.f32.mxu0 %v1042_v7  ;;  %1178 = vmatprep.mubr.f32.mxu1 %v1042_v7 }
 0x4e9   :  { %v947_v11 = vpop.f32.mrf.mxu0  ;;  %v1018_v12 = vpop.f32.mrf.mxu1 }
 0x4ea   :  { %v948_v10 = vadd.f32 %v947_v11, %v4598_v9  ;;  %v1019_v15 = vadd.f32 %v1018_v12, %v2692_v48 }
 0x4eb   :  { %v949_v30 = vpop.f32.mrf.mxu0  ;;  %v1020_v28 = vpop.f32.mrf.mxu1 }
 0x4ec   :  { %v1023_v26 = vmul.f32 0.5, %v948_v10  ;;  %v950_v18 = vadd.f32 %v949_v30, %v4336_v33  ;;  %v1021_v27 = vadd.f32 %v1020_v28, %v2696_v54 }
 0x4ee   :  { %1747 = vtanh.f32 %v1023_v26  ;;  %v1027_v14 = vmul.f32 0.5, %v950_v18  ;;  %v1032_v5 = vmul.f32 0.5, %v1021_v27 }
 0x4f0   :  { %1749 = vtanh.f32 %v1027_v14 }
 0x4f1   :  { %1751 = vtanh.f32 %v1019_v15 }
 0x4f2   :  { %1753 = vtanh.f32 %v1032_v5  ;;  %v4648_v5 = vld [vmem:[#allocation99_spill] sm:$0xff] }
 0x4fb   :  { %v1748_v46 = vpop.eup %1747 }
 0x4fc   :  { %v1025_v7 = vmul.f32 0.5, %v1748_v46  ;;  %v4647_v46 = vld [vmem:[#allocation90_spill] sm:$0xff] }
 0x4fd   :  { %v1750_v58 = vpop.eup %1749 }
 0x4fe   :  { %v1026_v17 = vadd.f32 0.5, %v1025_v7  ;;  %v1029_v11 = vmul.f32 0.5, %v1750_v58  ;;  %v1752_v9 = vpop.eup %1751  ;;  %v4645_v58 = vld [vmem:[#allocation95_spill] sm:$0xff]  ;;  %v4649_v7 = vld [vmem:[#allocation97_spill] sm:$0xff] }
 0x4ff   :  { %v1754_v14 = vpop.eup %1753 }
 0x500   :  { %v1030_v10 = vadd.f32 0.5, %v1029_v11  ;;  %v1037_v26 = vmul.f32 %v1752_v9, %v1026_v17  ;;  %v1034_v15 = vmul.f32 0.5, %v1754_v14  ;;  %v4644_v17 = vld [vmem:[#allocation98_spill] sm:$0xff]  ;;  %v4650_v11 = vld [vmem:[#allocation96_spill] sm:$0xff] }
 0x501   :  { %v4646_v9 = vld [vmem:[#allocation94_spill] sm:$0xff] }
 0x502   :  { %v1036_v30 = vmul.f32 %v1030_v10, %v3363_v16  ;;  %v1035_v12 = vadd.f32 0.5, %v1034_v15  ;;  %v4639_v16 = vld [vmem:[#allocation85_spill] sm:$0xff]  ;;  %v4651_v10 = vld [vmem:[#allocation92_spill] sm:$0xff]  ;;  %v4654_v14 = vld [vmem:[#allocation18_spill] sm:$0xff] }
 0x503   :  { %v4655_v15 = vld [vmem:[#allocation22_spill] sm:$0xff] }
 0x504   :  { %v3499_v18 = vadd.f32 %v1037_v26, %v1036_v30  ;;  %v4652_v30 = vld [vmem:[#allocation100_spill] sm:$0xff]  ;;  %v4653_v26 = vld [vmem:[#allocation79_spill] sm:$0xff] }
 0x506   :  { %1755 = vtanh.f32 %v3499_v18 }
 0x513   :  { %v1756_v28 = vpop.eup %1755 }
 0x514   :  { %v1040_v27 = vmul.f32 %v1756_v28, %v1035_v12  ;;  %v4656_v12 = vld [vmem:[#allocation19_spill] sm:$0xff]  ;;  %v4657_v28 = vld [vmem:[#allocation24_spill] sm:$0xff] }
 0x516   :  { %1108 = vmatmul.mubr.f32.vlgmr.msra.gmra.mxu0 %v1040_v27  ;;  %1179 = vmatmul.mubr.f32.vlgmr.msra.gmra.mxu1 %v1040_v27  ;;  %v4658_v27 = vld [vmem:[#allocation21_spill] sm:$0xff] }
 0x517   :  { %1206 = vmatpush1.msra.mxu0 %v2842_v31  ;;  %1277 = vmatpush1.msra.mxu1 %v2845_v32  ;;  %v4599_v31 = vld [vmem:[#allocation43_spill] sm:$0xff]  ;;  %v4600_v32 = vld [vmem:[#allocation48_spill] sm:$0xff] }
 0x518   :  { %1207 = vmatprep.subr.mxu0 %v2848_v57  ;;  %1278 = vmatprep.subr.mxu1 %v2851_v34  ;;  %v4601_v57 = vld [vmem:[#allocation45_spill] sm:$0xff]  ;;  %v4602_v34 = vld [vmem:[#allocation50_spill] sm:$0xff] }
 0x519   :  { %1208 = vmatpush1.msra.mxu0 %v2854_v35  ;;  %1279 = vmatpush1.msra.mxu1 %v2857_v36  ;;  %v4603_v35 = vld [vmem:[#allocation47_spill] sm:$0xff]  ;;  %v4604_v36 = vld [vmem:[#allocation52_spill] sm:$0xff] }
 0x51a   :  { %1209 = vmatprep.subr.mxu0 %v2860_v37  ;;  %1280 = vmatprep.subr.mxu1 %v2863_v38  ;;  %v4605_v37 = vld [vmem:[#allocation49_spill] sm:$0xff]  ;;  %v4606_v38 = vld [vmem:[#allocation54_spill] sm:$0xff] }
 0x51b   :  { %1210 = vmatpush1.msra.mxu0 %v2866_v39  ;;  %1281 = vmatpush1.msra.mxu1 %v2869_v40  ;;  %v4607_v39 = vld [vmem:[#allocation51_spill] sm:$0xff]  ;;  %v4608_v40 = vld [vmem:[#allocation56_spill] sm:$0xff] }
 0x51c   :  { %1211 = vmatprep.subr.mxu0 %v2872_v41  ;;  %1282 = vmatprep.subr.mxu1 %v2875_v42  ;;  %v4609_v41 = vld [vmem:[#allocation53_spill] sm:$0xff]  ;;  %v4610_v42 = vld [vmem:[#allocation58_spill] sm:$0xff] }
 0x51d   :  { %1212 = vmatpush1.msra.mxu0 %v2878_v43  ;;  %1283 = vmatpush1.msra.mxu1 %v2881_v44  ;;  %v4611_v43 = vld [vmem:[#allocation55_spill] sm:$0xff]  ;;  %v4612_v44 = vld [vmem:[#allocation60_spill] sm:$0xff] }
 0x51e   :  { %1213 = vmatprep.subr.mxu0 %v2884_v45  ;;  %1284 = vmatprep.subr.mxu1 %v2887_v47  ;;  %v4613_v45 = vld [vmem:[#allocation57_spill] sm:$0xff]  ;;  %v4614_v47 = vld [vmem:[#allocation62_spill] sm:$0xff] }
 0x51f   :  { %1214 = vmatpush1.msra.mxu0 %v2890_v55  ;;  %1285 = vmatpush1.msra.mxu1 %v2893_v61  ;;  %v4615_v55 = vld [vmem:[#allocation59_spill] sm:$0xff]  ;;  %v4616_v61 = vld [vmem:[#allocation64_spill] sm:$0xff] }
 0x520   :  { %1215 = vmatprep.subr.mxu0 %v4412_v19  ;;  %1286 = vmatprep.subr.mxu1 %v4413_v20  ;;  %v4617_v19 = vld [vmem:[#allocation61_spill] sm:$0xff]  ;;  %v4618_v20 = vld [vmem:[#allocation66_spill] sm:$0xff] }
 0x521   :  { %1216 = vmatpush1.msra.mxu0 %v4414_v21  ;;  %1287 = vmatpush1.msra.mxu1 %v4415_v22  ;;  %v4619_v21 = vld [vmem:[#allocation63_spill] sm:$0xff]  ;;  %v4620_v22 = vld [vmem:[#allocation68_spill] sm:$0xff] }
 0x522   :  { %1217 = vmatprep.subr.mxu0 %v4416_v23  ;;  %1288 = vmatprep.subr.mxu1 %v4417_v24  ;;  %v4621_v23 = vld [vmem:[#allocation65_spill] sm:$0xff]  ;;  %v4622_v24 = vld [vmem:[#allocation70_spill] sm:$0xff] }
 0x523   :  { %1218 = vmatpush1.msra.mxu0 %v4418_v63  ;;  %1289 = vmatpush1.msra.mxu1 %v4419_v53  ;;  %v4623_v63 = vld [vmem:[#allocation67_spill] sm:$0xff]  ;;  %v4624_v53 = vld [vmem:[#allocation72_spill] sm:$0xff] }
 0x524   :  { %1219 = vmatprep.subr.mxu0 %v4420_v62  ;;  %1290 = vmatprep.subr.mxu1 %v4421_v60  ;;  %v4625_v62 = vld [vmem:[#allocation69_spill] sm:$0xff]  ;;  %v4626_v60 = vld [vmem:[#allocation74_spill] sm:$0xff] }
 0x525   :  { %1220 = vmatpush1.msra.mxu0 %v4422_v56  ;;  %1291 = vmatpush1.msra.mxu1 %v4423_v0  ;;  %v4627_v56 = vld [vmem:[#allocation71_spill] sm:$0xff]  ;;  %v4628_v0 = vld [vmem:[#allocation76_spill] sm:$0xff] }
 0x526   :  { %1221 = vmatprep.subr.mxu0 %v4424_v51  ;;  %1292 = vmatprep.subr.mxu1 %v4425_v49  ;;  %v4629_v51 = vld [vmem:[#allocation73_spill] sm:$0xff]  ;;  %v4630_v49 = vld [vmem:[#allocation78_spill] sm:$0xff] }
 0x527   :  { %1222 = vmatpush1.msra.mxu0 %v4426_v50  ;;  %1293 = vmatpush1.msra.mxu1 %v4427_v52  ;;  %v4631_v50 = vld [vmem:[#allocation75_spill] sm:$0xff]  ;;  %v4632_v52 = vld [vmem:[#allocation80_spill] sm:$0xff] }
 0x528   :  { %1223 = vmatprep.subr.mxu0 %v4428_v59  ;;  %1294 = vmatprep.subr.mxu1 %v4429_v1  ;;  %v4633_v59 = vld [vmem:[#allocation82_spill] sm:$0xff]  ;;  %v4634_v1 = vld [vmem:[#allocation84_spill] sm:$0xff] }
 0x529   :  { %1224 = vmatpush1.msra.mxu0 %v4430_v2  ;;  %1295 = vmatpush1.msra.mxu1 %v4431_v3  ;;  %v4635_v2 = vld [vmem:[#allocation81_spill] sm:$0xff]  ;;  %v4636_v3 = vld [vmem:[#allocation86_spill] sm:$0xff] }
 0x52a   :  { %1225 = vmatprep.subr.mxu0 %v4432_v4  ;;  %1296 = vmatprep.subr.mxu1 %v4433_v6  ;;  %v4637_v4 = vld [vmem:[#allocation83_spill] sm:$0xff]  ;;  %v4638_v6 = vld [vmem:[#allocation88_spill] sm:$0xff] }
 0x52b   :  { %1226 = vmatpush1.msra.mxu0 %v4514_v25  ;;  %1297 = vmatpush1.msra.mxu1 %v4515_v29  ;;  %v4640_v25 = vld [vmem:[#allocation91_spill] sm:$0xff] }
 0x52c   :  { %1227 = vmatprep.subr.mxu0 %v4516_v13  ;;  %1298 = vmatprep.subr.mxu1 %v4517_v8  ;;  %v4641_v29 = vld [vmem:[#allocation87_spill] sm:$0xff]  ;;  %v4642_v13 = vld [vmem:[#allocation93_spill] sm:$0xff] }
 0x52d   :  { %1228 = vmatpush1.msra.mxu0 %v4599_v31  ;;  %1299 = vmatpush1.msra.mxu1 %v4600_v32  ;;  %v4643_v8 = vld [vmem:[#allocation89_spill] sm:$0xff]  ;;  %v4659_v31 = vld [vmem:[#allocation26_spill] sm:$0xff]  ;;  %v4660_v32 = vld [vmem:[#allocation23_spill] sm:$0xff] }
 0x52e   :  { %1229 = vmatprep.subr.mxu0 %v4601_v57  ;;  %1300 = vmatprep.subr.mxu1 %v4602_v34  ;;  %v4661_v57 = vld [vmem:[#allocation28_spill] sm:$0xff]  ;;  %v4662_v34 = vld [vmem:[#allocation25_spill] sm:$0xff] }
 0x52f   :  { %1230 = vmatpush1.msra.mxu0 %v4603_v35  ;;  %1301 = vmatpush1.msra.mxu1 %v4604_v36  ;;  %v4663_v35 = vld [vmem:[#allocation30_spill] sm:$0xff]  ;;  %v4664_v36 = vld [vmem:[#allocation27_spill] sm:$0xff] }
 0x530   :  { %1231 = vmatprep.subr.mxu0 %v4605_v37  ;;  %1302 = vmatprep.subr.mxu1 %v4606_v38  ;;  %v4665_v37 = vld [vmem:[#allocation32_spill] sm:$0xff]  ;;  %v4666_v38 = vld [vmem:[#allocation29_spill] sm:$0xff] }
 0x531   :  { %1232 = vmatpush1.msra.mxu0 %v4607_v39  ;;  %1303 = vmatpush1.msra.mxu1 %v4608_v40  ;;  %v4667_v39 = vld [vmem:[#allocation34_spill] sm:$0xff]  ;;  %v4668_v40 = vld [vmem:[#allocation31_spill] sm:$0xff] }
 0x532   :  { %1233 = vmatprep.subr.mxu0 %v4609_v41  ;;  %1304 = vmatprep.subr.mxu1 %v4610_v42  ;;  %v4669_v41 = vld [vmem:[#allocation36_spill] sm:$0xff]  ;;  %v4670_v42 = vld [vmem:[#allocation33_spill] sm:$0xff] }
 0x533   :  { %1234 = vmatpush1.msra.mxu0 %v4611_v43  ;;  %1305 = vmatpush1.msra.mxu1 %v4612_v44  ;;  %v4671_v43 = vld [vmem:[#allocation38_spill] sm:$0xff]  ;;  %v4672_v44 = vld [vmem:[#allocation35_spill] sm:$0xff] }
 0x534   :  { %1235 = vmatprep.subr.mxu0 %v4613_v45  ;;  %1306 = vmatprep.subr.mxu1 %v4614_v47  ;;  %v4673_v45 = vld [vmem:[#allocation40_spill] sm:$0xff]  ;;  %v4674_v47 = vld [vmem:[#allocation37_spill] sm:$0xff] }
 0x535   :  { %1236 = vmatpush1.msra.mxu0 %v4615_v55  ;;  %1307 = vmatpush1.msra.mxu1 %v4616_v61  ;;  %v4675_v55 = vld [vmem:[#allocation42_spill] sm:$0xff]  ;;  %v4676_v61 = vld [vmem:[#allocation101_spill] sm:$0xff] }
 0x536   :  { %1237 = vmatprep.subr.mxu0 %v4617_v19  ;;  %1308 = vmatprep.subr.mxu1 %v4618_v20  ;;  %v4677_v19 = vld [vmem:[#allocation102_spill] sm:$0xff]  ;;  %v4678_v20 = vld [vmem:[#allocation103_spill] sm:$0xff] }
 0x537   :  { %1238 = vmatpush2.msra.mxu0 %v4619_v21  ;;  %1309 = vmatpush2.msra.mxu1 %v4620_v22  ;;  %v4679_v21 = vld [vmem:[#allocation104_spill] sm:$0xff]  ;;  %v4680_v22 = vld [vmem:[#allocation105_spill] sm:$0xff] }
 0x538   :  { %1239 = vmatprep.subr.mxu0 %v4621_v23  ;;  %1310 = vmatprep.subr.mxu1 %v4622_v24  ;;  %v1915_v23 = vld [vmem:[#allocation7 + $0x1e8] sm:$0xff]  ;;  %v1916_v24 = vld [vmem:[#allocation7 + $0x1f8] sm:$0xff] }
 0x539   :  { %1240 = vmatpush2.msra.mxu0 %v4623_v63  ;;  %1311 = vmatpush2.msra.mxu1 %v4624_v53  ;;  %v1204_v63 = vld [vmem:[#allocation4 + $0x30] sm:$0xff] }
 0x53a   :  { %1241 = vmatprep.subr.mxu0 %v4625_v62  ;;  %1312 = vmatprep.subr.mxu1 %v4626_v60  ;;  %v4681_v62 = vld [vmem:[#allocation77_spill] sm:$0xff] }
 0x53b   :  { %1242 = vmatpush2.msra.mxu0 %v4627_v56  ;;  %1313 = vmatpush2.msra.mxu1 %v4628_v0 }
 0x53c   :  { %1243 = vmatprep.subr.mxu0 %v4629_v51  ;;  %1314 = vmatprep.subr.mxu1 %v4630_v49 }
 0x53d   :  { %1244 = vmatpush2.msra.mxu0 %v4631_v50  ;;  %1315 = vmatpush2.msra.mxu1 %v4632_v52 }
 0x53e   :  { %1245 = vmatprep.subr.mxu0 %v4633_v59  ;;  %1316 = vmatprep.subr.mxu1 %v4634_v1 }
 0x53f   :  { %1246 = vmatpush2.msra.mxu0 %v4635_v2  ;;  %1317 = vmatpush2.msra.mxu1 %v4636_v3 }
 0x540   :  { %1247 = vmatprep.subr.mxu0 %v4637_v4  ;;  %1318 = vmatprep.subr.mxu1 %v4638_v6 }
 0x541   :  { %1248 = vmatpush2.msra.mxu0 %v4639_v16  ;;  %1319 = vmatpush2.msra.mxu1 %v4640_v25 }
 0x542   :  { %1249 = vmatprep.subr.mxu0 %v4641_v29  ;;  %1320 = vmatprep.subr.mxu1 %v4642_v13 }
 0x543   :  { %1250 = vmatpush2.msra.mxu0 %v4643_v8  ;;  %1321 = vmatpush2.msra.mxu1 %v4644_v17 }
 0x544   :  { %1251 = vmatprep.subr.mxu0 %v4645_v58  ;;  %1322 = vmatprep.subr.mxu1 %v4646_v9 }
 0x545   :  { %1252 = vmatpush2.msra.mxu0 %v4647_v46  ;;  %1323 = vmatpush2.msra.mxu1 %v4648_v5 }
 0x546   :  { %1253 = vmatprep.subr.mxu0 %v4649_v7  ;;  %1324 = vmatprep.subr.mxu1 %v4650_v11 }
 0x547   :  { %1254 = vmatpush2.msra.mxu0 %v4651_v10  ;;  %1325 = vmatpush2.msra.mxu1 %v4652_v30 }
 0x548   :  { %1255 = vmatprep.subr.mxu0 %v4653_v26  ;;  %1326 = vmatprep.subr.mxu1 %v4654_v14 }
 0x549   :  { %1256 = vmatpush2.msra.mxu0 %v4655_v15  ;;  %1327 = vmatpush2.msra.mxu1 %v4656_v12 }
 0x54a   :  { %1257 = vmatprep.subr.mxu0 %v4657_v28  ;;  %1328 = vmatprep.subr.mxu1 %v4658_v27 }
 0x54b   :  { %1258 = vmatpush2.msra.mxu0 %v4659_v31  ;;  %1329 = vmatpush2.msra.mxu1 %v4660_v32 }
 0x54c   :  { %1259 = vmatprep.subr.mxu0 %v4661_v57  ;;  %1330 = vmatprep.subr.mxu1 %v4662_v34 }
 0x54d   :  { %1260 = vmatpush2.msra.mxu0 %v4663_v35  ;;  %1331 = vmatpush2.msra.mxu1 %v4664_v36 }
 0x54e   :  { %1261 = vmatprep.subr.mxu0 %v4665_v37  ;;  %1332 = vmatprep.subr.mxu1 %v4666_v38 }
 0x54f   :  { %1262 = vmatpush2.msra.mxu0 %v4667_v39  ;;  %1333 = vmatpush2.msra.mxu1 %v4668_v40 }
 0x550   :  { %1263 = vmatprep.subr.mxu0 %v4669_v41  ;;  %1334 = vmatprep.subr.mxu1 %v4670_v42 }
 0x551   :  { %1264 = vmatpush2.msra.mxu0 %v4671_v43  ;;  %1335 = vmatpush2.msra.mxu1 %v4672_v44 }
 0x552   :  { %1265 = vmatprep.subr.mxu0 %v4673_v45  ;;  %1336 = vmatprep.subr.mxu1 %v4674_v47 }
 0x553   :  { %1266 = vmatpush2.msra.mxu0 %v4675_v55  ;;  %1337 = vmatpush2.msra.mxu1 %v4676_v61 }
 0x554   :  { %1267 = vmatprep.subr.mxu0 %v4677_v19  ;;  %1338 = vmatprep.subr.mxu1 %v4678_v20 }
 0x555   :  { %1268 = vmatpush2.msra.mxu0 %v4679_v21  ;;  %1339 = vmatpush2.msra.mxu1 %v4680_v22 }
 0x556   :  { %1367 = vmatprep.subr.mxu0 %v1915_v23  ;;  %1438 = vmatprep.subr.mxu1 %v1916_v24 }
 0x557   :  { %1269 = vmatprep.mubr.f32.mxu0 %v1204_v63  ;;  %1340 = vmatprep.mubr.f32.mxu1 %v1204_v63 }
 0x5d6   :  { %v1109_v53 = vpop.f32.mrf.mxu0  ;;  %v1180_v49 = vpop.f32.mrf.mxu1 }
 0x5d7   :  { %v1110_v60 = vadd.f32 %v1109_v53, %v4681_v62  ;;  %v1181_v52 = vadd.f32 %v1180_v49, %v2692_v48  ;;  %v1917_v53 = vld [vmem:[#allocation7 + $0x1e0] sm:$0xff]  ;;  %v1923_v49 = vld [vmem:[#allocation7 + $0x1a8] sm:$0xff] }
 0x5d8   :  { %v1111_v56 = vpop.f32.mrf.mxu0  ;;  %v1182_v59 = vpop.f32.mrf.mxu1 }
 0x5d9   :  { %v1185_v0 = vmul.f32 0.5, %v1110_v60  ;;  %v1112_v51 = vadd.f32 %v1111_v56, %v4336_v33  ;;  %v1183_v1 = vadd.f32 %v1182_v59, %v2696_v54  ;;  %v1918_v60 = vld [vmem:[#allocation7 + $0x1f0] sm:$0xff]  ;;  %v1919_v56 = vld [vmem:[#allocation7 + $0x1c8] sm:$0xff] }
 0x5da   :  { %v1926_v59 = vld [vmem:[#allocation7 + $0x1b0] sm:$0xff] }
 0x5db   :  { %1757 = vtanh.f32 %v1185_v0  ;;  %v1189_v50 = vmul.f32 0.5, %v1112_v51  ;;  %v1194_v2 = vmul.f32 0.5, %v1183_v1  ;;  %v1920_v0 = vld [vmem:[#allocation7 + $0x1d8] sm:$0xff]  ;;  %v1922_v51 = vld [vmem:[#allocation7 + $0x1d0] sm:$0xff]  ;;  %v1927_v1 = vld [vmem:[#allocation7 + $0x188] sm:$0xff] }
 0x5dd   :  { %1759 = vtanh.f32 %v1189_v50  ;;  %v1924_v50 = vld [vmem:[#allocation7 + $0x1b8] sm:$0xff] }
 0x5de   :  { %1761 = vtanh.f32 %v1181_v52  ;;  %v1925_v52 = vld [vmem:[#allocation7 + $0x1a0] sm:$0xff] }
 0x5df   :  { %1763 = vtanh.f32 %v1194_v2  ;;  %v1928_v2 = vld [vmem:[#allocation7 + $0x198] sm:$0xff] }
 0x5e8   :  { %v1758_v3 = vpop.eup %1757 }
 0x5e9   :  { %v1187_v4 = vmul.f32 0.5, %v1758_v3  ;;  %v1929_v3 = vld [vmem:[#allocation7 + $0x180] sm:$0xff] }
 0x5ea   :  { %v1760_v6 = vpop.eup %1759 }
 0x5eb   :  { %v1188_v16 = vadd.f32 0.5, %v1187_v4  ;;  %v1191_v25 = vmul.f32 0.5, %v1760_v6  ;;  %v1762_v13 = vpop.eup %1761  ;;  %v1930_v4 = vld [vmem:[#allocation7 + $0x190] sm:$0xff]  ;;  %v1931_v6 = vld [vmem:[#allocation7 + $0x168] sm:$0xff] }
 0x5ec   :  { %v1764_v7 = vpop.eup %1763 }
 0x5ed   :  { %v1192_v29 = vadd.f32 0.5, %v1191_v25  ;;  %v1199_v58 = vmul.f32 %v1762_v13, %v1188_v16  ;;  %v1196_v10 = vmul.f32 0.5, %v1764_v7  ;;  %v1932_v16 = vld [vmem:[#allocation7 + $0x178] sm:$0xff]  ;;  %v1933_v25 = vld [vmem:[#allocation7 + $0x160] sm:$0xff]  ;;  %v1935_v13 = vld [vmem:[#allocation7 + $0x148] sm:$0xff] }
 0x5ee   :  { %v1938_v7 = vld [vmem:[#allocation7 + $0x150] sm:$0xff] }
 0x5ef   :  { %v1198_v8 = vmul.f32 %v1192_v29, %v3499_v18  ;;  %v1197_v23 = vadd.f32 0.5, %v1196_v10  ;;  %v1921_v18 = vld [vmem:[#allocation7 + $0x1c0] sm:$0xff]  ;;  %v1934_v29 = vld [vmem:[#allocation7 + $0x170] sm:$0xff]  ;;  %v1939_v10 = vld [vmem:[#allocation7 + $0x128] sm:$0xff] }
 0x5f1   :  { %v3633_v46 = vadd.f32 %v1199_v58, %v1198_v8  ;;  %v1936_v8 = vld [vmem:[#allocation7 + $0x158] sm:$0xff]  ;;  %v1937_v58 = vld [vmem:[#allocation7 + $0x140] sm:$0xff] }
 0x5f3   :  { %1765 = vtanh.f32 %v3633_v46 }
 0x600   :  { %v1766_v24 = vpop.eup %1765 }
 0x601   :  { %v1202_v63 = vmul.f32 %v1766_v24, %v1197_v23  ;;  %v1940_v23 = vld [vmem:[#allocation7 + $0x138] sm:$0xff]  ;;  %v1941_v24 = vld [vmem:[#allocation7 + $0x120] sm:$0xff] }
 0x603   :  { %1270 = vmatmul.mubr.f32.vlgmr.msra.gmra.mxu0 %v1202_v63  ;;  %1341 = vmatmul.mubr.f32.vlgmr.msra.gmra.mxu1 %v1202_v63  ;;  %v1942_v63 = vld [vmem:[#allocation7 + $0x130] sm:$0xff] }
 0x604   :  { %1368 = vmatpush1.msra.mxu0 %v1917_v53  ;;  %1439 = vmatpush1.msra.mxu1 %v1918_v60  ;;  %v1943_v53 = vld [vmem:[#allocation7 + $0x108] sm:$0xff]  ;;  %v1944_v60 = vld [vmem:[#allocation7 + $0x118] sm:$0xff] }
 0x605   :  { %1369 = vmatprep.subr.mxu0 %v1919_v56  ;;  %1440 = vmatprep.subr.mxu1 %v1920_v0  ;;  %v1945_v56 = vld [vmem:[#allocation7 + $0x100] sm:$0xff]  ;;  %v1946_v0 = vld [vmem:[#allocation7 + $0x110] sm:$0xff] }
 0x606   :  { %1370 = vmatpush1.msra.mxu0 %v1921_v18  ;;  %1441 = vmatpush1.msra.mxu1 %v1922_v51  ;;  %v1947_v18 = vld [vmem:[#allocation7 + $0xe8] sm:$0xff]  ;;  %v1948_v51 = vld [vmem:[#allocation7 + $0xf8] sm:$0xff] }
 0x607   :  { %1371 = vmatprep.subr.mxu0 %v1923_v49  ;;  %1442 = vmatprep.subr.mxu1 %v1924_v50  ;;  %v1949_v49 = vld [vmem:[#allocation7 + $0xe0] sm:$0xff]  ;;  %v1950_v50 = vld [vmem:[#allocation7 + $0xf0] sm:$0xff] }
 0x608   :  { %1372 = vmatpush1.msra.mxu0 %v1925_v52  ;;  %1443 = vmatpush1.msra.mxu1 %v1926_v59  ;;  %v1951_v52 = vld [vmem:[#allocation7 + $0xc8] sm:$0xff]  ;;  %v1952_v59 = vld [vmem:[#allocation7 + $0xd8] sm:$0xff] }
 0x609   :  { %1373 = vmatprep.subr.mxu0 %v1927_v1  ;;  %1444 = vmatprep.subr.mxu1 %v1928_v2  ;;  %v1953_v1 = vld [vmem:[#allocation7 + $0xc0] sm:$0xff]  ;;  %v1954_v2 = vld [vmem:[#allocation7 + $0xd0] sm:$0xff] }
 0x60a   :  { %1374 = vmatpush1.msra.mxu0 %v1929_v3  ;;  %1445 = vmatpush1.msra.mxu1 %v1930_v4  ;;  %v1955_v3 = vld [vmem:[#allocation7 + $0xa8] sm:$0xff]  ;;  %v1956_v4 = vld [vmem:[#allocation7 + $0xb8] sm:$0xff] }
 0x60b   :  { %1375 = vmatprep.subr.mxu0 %v1931_v6  ;;  %1446 = vmatprep.subr.mxu1 %v1932_v16  ;;  %v1957_v6 = vld [vmem:[#allocation7 + $0xa0] sm:$0xff]  ;;  %v1958_v16 = vld [vmem:[#allocation7 + $0xb0] sm:$0xff] }
 0x60c   :  { %1376 = vmatpush1.msra.mxu0 %v1933_v25  ;;  %1447 = vmatpush1.msra.mxu1 %v1934_v29  ;;  %v1959_v25 = vld [vmem:[#allocation7 + $0x88] sm:$0xff]  ;;  %v1960_v29 = vld [vmem:[#allocation7 + $0x98] sm:$0xff] }
 0x60d   :  { %1377 = vmatprep.subr.mxu0 %v1935_v13  ;;  %1448 = vmatprep.subr.mxu1 %v1936_v8  ;;  %v1961_v13 = vld [vmem:[#allocation7 + $0x80] sm:$0xff]  ;;  %v1962_v8 = vld [vmem:[#allocation7 + $0x90] sm:$0xff] }
 0x60e   :  { %1378 = vmatpush1.msra.mxu0 %v1937_v58  ;;  %1449 = vmatpush1.msra.mxu1 %v1938_v7  ;;  %v1963_v58 = vld [vmem:[#allocation7 + $0x68] sm:$0xff]  ;;  %v1964_v7 = vld [vmem:[#allocation7 + $0x78] sm:$0xff] }
 0x60f   :  { %1379 = vmatprep.subr.mxu0 %v1939_v10  ;;  %1450 = vmatprep.subr.mxu1 %v1940_v23  ;;  %v1965_v10 = vld [vmem:[#allocation7 + $0x60] sm:$0xff]  ;;  %v1966_v23 = vld [vmem:[#allocation7 + $0x70] sm:$0xff] }
 0x610   :  { %1380 = vmatpush1.msra.mxu0 %v1941_v24  ;;  %1451 = vmatpush1.msra.mxu1 %v1942_v63  ;;  %v1967_v24 = vld [vmem:[#allocation7 + $0x48] sm:$0xff]  ;;  %v1968_v63 = vld [vmem:[#allocation7 + $0x58] sm:$0xff] }
 0x611   :  { %1381 = vmatprep.subr.mxu0 %v1943_v53  ;;  %1452 = vmatprep.subr.mxu1 %v1944_v60  ;;  %v1969_v53 = vld [vmem:[#allocation7 + $0x40] sm:$0xff]  ;;  %v1970_v60 = vld [vmem:[#allocation7 + $0x50] sm:$0xff] }
 0x612   :  { %1382 = vmatpush1.msra.mxu0 %v1945_v56  ;;  %1453 = vmatpush1.msra.mxu1 %v1946_v0  ;;  %v1971_v56 = vld [vmem:[#allocation7 + $0x28] sm:$0xff]  ;;  %v1972_v0 = vld [vmem:[#allocation7 + $0x38] sm:$0xff] }
 0x613   :  { %1383 = vmatprep.subr.mxu0 %v1947_v18  ;;  %1454 = vmatprep.subr.mxu1 %v1948_v51  ;;  %v1973_v18 = vld [vmem:[#allocation7 + $0x20] sm:$0xff]  ;;  %v1974_v51 = vld [vmem:[#allocation7 + $0x30] sm:$0xff] }
 0x614   :  { %1384 = vmatpush1.msra.mxu0 %v1949_v49  ;;  %1455 = vmatpush1.msra.mxu1 %v1950_v50  ;;  %v1975_v49 = vld [vmem:[#allocation7 + $0x8] sm:$0xff]  ;;  %v1976_v50 = vld [vmem:[#allocation7 + $0x18] sm:$0xff] }
 0x615   :  { %1385 = vmatprep.subr.mxu0 %v1951_v52  ;;  %1456 = vmatprep.subr.mxu1 %v1952_v59  ;;  %v1977_v52 = vld [vmem:[#allocation7] sm:$0xff]  ;;  %v1978_v59 = vld [vmem:[#allocation7 + $0x10] sm:$0xff] }
 0x616   :  { %1386 = vmatpush1.msra.mxu0 %v1953_v1  ;;  %1457 = vmatpush1.msra.mxu1 %v1954_v2  ;;  %v1979_v1 = vld [vmem:[#allocation7 + $0x3e8] sm:$0xff]  ;;  %v1980_v2 = vld [vmem:[#allocation7 + $0x3f8] sm:$0xff] }
 0x617   :  { %1387 = vmatprep.subr.mxu0 %v1955_v3  ;;  %1458 = vmatprep.subr.mxu1 %v1956_v4  ;;  %v1981_v3 = vld [vmem:[#allocation7 + $0x3e0] sm:$0xff]  ;;  %v1982_v4 = vld [vmem:[#allocation7 + $0x3f0] sm:$0xff] }
 0x618   :  { %1388 = vmatpush1.msra.mxu0 %v1957_v6  ;;  %1459 = vmatpush1.msra.mxu1 %v1958_v16  ;;  %v1983_v6 = vld [vmem:[#allocation7 + $0x3c8] sm:$0xff]  ;;  %v1984_v16 = vld [vmem:[#allocation7 + $0x3d8] sm:$0xff] }
 0x619   :  { %1389 = vmatprep.subr.mxu0 %v1959_v25  ;;  %1460 = vmatprep.subr.mxu1 %v1960_v29  ;;  %v1985_v25 = vld [vmem:[#allocation7 + $0x3c0] sm:$0xff]  ;;  %v1986_v29 = vld [vmem:[#allocation7 + $0x3d0] sm:$0xff] }
 0x61a   :  { %1390 = vmatpush1.msra.mxu0 %v1961_v13  ;;  %1461 = vmatpush1.msra.mxu1 %v1962_v8  ;;  %v1987_v13 = vld [vmem:[#allocation7 + $0x3a8] sm:$0xff]  ;;  %v1988_v8 = vld [vmem:[#allocation7 + $0x3b8] sm:$0xff] }
 0x61b   :  { %1391 = vmatprep.subr.mxu0 %v1963_v58  ;;  %1462 = vmatprep.subr.mxu1 %v1964_v7  ;;  %v1989_v58 = vld [vmem:[#allocation7 + $0x3a0] sm:$0xff]  ;;  %v1990_v7 = vld [vmem:[#allocation7 + $0x3b0] sm:$0xff] }
 0x61c   :  { %1392 = vmatpush1.msra.mxu0 %v1965_v10  ;;  %1463 = vmatpush1.msra.mxu1 %v1966_v23  ;;  %v1991_v10 = vld [vmem:[#allocation7 + $0x388] sm:$0xff]  ;;  %v1992_v23 = vld [vmem:[#allocation7 + $0x398] sm:$0xff] }
 0x61d   :  { %1393 = vmatprep.subr.mxu0 %v1967_v24  ;;  %1464 = vmatprep.subr.mxu1 %v1968_v63  ;;  %v1993_v24 = vld [vmem:[#allocation7 + $0x380] sm:$0xff]  ;;  %v1994_v63 = vld [vmem:[#allocation7 + $0x390] sm:$0xff] }
 0x61e   :  { %1394 = vmatpush1.msra.mxu0 %v1969_v53  ;;  %1465 = vmatpush1.msra.mxu1 %v1970_v60  ;;  %v1995_v53 = vld [vmem:[#allocation7 + $0x368] sm:$0xff]  ;;  %v1996_v60 = vld [vmem:[#allocation7 + $0x378] sm:$0xff] }
 0x61f   :  { %1395 = vmatprep.subr.mxu0 %v1971_v56  ;;  %1466 = vmatprep.subr.mxu1 %v1972_v0  ;;  %v1997_v56 = vld [vmem:[#allocation7 + $0x360] sm:$0xff]  ;;  %v1998_v0 = vld [vmem:[#allocation7 + $0x370] sm:$0xff] }
 0x620   :  { %1396 = vmatpush1.msra.mxu0 %v1973_v18  ;;  %1467 = vmatpush1.msra.mxu1 %v1974_v51  ;;  %v1999_v18 = vld [vmem:[#allocation7 + $0x348] sm:$0xff]  ;;  %v2000_v51 = vld [vmem:[#allocation7 + $0x358] sm:$0xff] }
 0x621   :  { %1397 = vmatprep.subr.mxu0 %v1975_v49  ;;  %1468 = vmatprep.subr.mxu1 %v1976_v50  ;;  %v2001_v49 = vld [vmem:[#allocation7 + $0x340] sm:$0xff]  ;;  %v2002_v50 = vld [vmem:[#allocation7 + $0x350] sm:$0xff] }
 0x622   :  { %1398 = vmatpush1.msra.mxu0 %v1977_v52  ;;  %1469 = vmatpush1.msra.mxu1 %v1978_v59  ;;  %v2003_v52 = vld [vmem:[#allocation7 + $0x328] sm:$0xff]  ;;  %v2004_v59 = vld [vmem:[#allocation7 + $0x338] sm:$0xff] }
 0x623   :  { %1399 = vmatprep.subr.mxu0 %v1979_v1  ;;  %1470 = vmatprep.subr.mxu1 %v1980_v2  ;;  %v2005_v1 = vld [vmem:[#allocation7 + $0x320] sm:$0xff]  ;;  %v2006_v2 = vld [vmem:[#allocation7 + $0x308] sm:$0xff] }
 0x624   :  { %1400 = vmatpush2.msra.mxu0 %v1981_v3  ;;  %1471 = vmatpush2.msra.mxu1 %v1982_v4  ;;  %v2007_v3 = vld [vmem:[#allocation7 + $0x300] sm:$0xff]  ;;  %v2008_v4 = vld [vmem:[#allocation7 + $0x2e8] sm:$0xff] }
 0x625   :  { %1401 = vmatprep.subr.mxu0 %v1983_v6  ;;  %1472 = vmatprep.subr.mxu1 %v1984_v16  ;;  %v2009_v6 = vld [vmem:[#allocation7 + $0x2e0] sm:$0xff]  ;;  %v1541_v16 = vld [vmem:[#allocation10 + $0x48] sm:$0xff] }
 0x626   :  { %1402 = vmatpush2.msra.mxu0 %v1985_v25  ;;  %1473 = vmatpush2.msra.mxu1 %v1986_v29  ;;  %v1540_v25 = vld [vmem:[#allocation10 + $0x40] sm:$0xff]  ;;  %v1539_v29 = vld [vmem:[#allocation10 + $0x38] sm:$0xff] }
 0x627   :  { %1403 = vmatprep.subr.mxu0 %v1987_v13  ;;  %1474 = vmatprep.subr.mxu1 %v1988_v8  ;;  %v1538_v13 = vld [vmem:[#allocation10 + $0x30] sm:$0xff]  ;;  %v1537_v8 = vld [vmem:[#allocation10 + $0x28] sm:$0xff] }
 0x628   :  { %1404 = vmatpush2.msra.mxu0 %v1989_v58  ;;  %1475 = vmatpush2.msra.mxu1 %v1990_v7  ;;  %v1536_v58 = vld [vmem:[#allocation10 + $0x20] sm:$0xff]  ;;  %v1535_v7 = vld [vmem:[#allocation10 + $0x18] sm:$0xff] }
 0x629   :  { %1405 = vmatprep.subr.mxu0 %v1991_v10  ;;  %1476 = vmatprep.subr.mxu1 %v1992_v23  ;;  %v1534_v10 = vld [vmem:[#allocation10 + $0x10] sm:$0xff]  ;;  %v1533_v23 = vld [vmem:[#allocation10 + $0x8] sm:$0xff] }
 0x62a   :  { %1406 = vmatpush2.msra.mxu0 %v1993_v24  ;;  %1477 = vmatpush2.msra.mxu1 %v1994_v63  ;;  %v1532_v24 = vld [vmem:[#allocation10] sm:$0xff] }
 0x62b   :  { %1407 = vmatprep.subr.mxu0 %v1995_v53  ;;  %1478 = vmatprep.subr.mxu1 %v1996_v60 }
 0x62c   :  { %1408 = vmatpush2.msra.mxu0 %v1997_v56  ;;  %1479 = vmatpush2.msra.mxu1 %v1998_v0 }
 0x62d   :  { %1409 = vmatprep.subr.mxu0 %v1999_v18  ;;  %1480 = vmatprep.subr.mxu1 %v2000_v51 }
 0x62e   :  { %1410 = vmatpush2.msra.mxu0 %v2001_v49  ;;  %1481 = vmatpush2.msra.mxu1 %v2002_v50 }
 0x62f   :  { %1411 = vmatprep.subr.mxu0 %v2003_v52  ;;  %1482 = vmatprep.subr.mxu1 %v2004_v59 }
 0x630   :  { %1412 = vmatpush2.msra.mxu0 %v2005_v1  ;;  %1483 = vmatpush2.msra.mxu1 %v4644_v17  ;;  %v4682_v17 = vmov 0.0  }
 0x631   :  { %1413 = vmatprep.subr.mxu0 %v2006_v2  ;;  %1484 = vmatprep.subr.mxu1 %v4646_v9  ;;  %v1366_v9 = vld [vmem:[#allocation4 + $0x38] sm:$0xff] }
 0x632   :  { %1414 = vmatpush2.msra.mxu0 %v2007_v3  ;;  %1485 = vmatpush2.msra.mxu1 %v4648_v5 }
 0x633   :  { %1415 = vmatprep.subr.mxu0 %v2008_v4  ;;  %1486 = vmatprep.subr.mxu1 %v4650_v11 }
 0x634   :  { %1416 = vmatpush2.msra.mxu0 %v2009_v6  ;;  %1487 = vmatpush2.msra.mxu1 %v4652_v30 }
 0x635   :  { %1417 = vmatprep.subr.mxu0 %v4653_v26  ;;  %1488 = vmatprep.subr.mxu1 %v4654_v14 }
 0x636   :  { %1418 = vmatpush2.msra.mxu0 %v4655_v15  ;;  %1489 = vmatpush2.msra.mxu1 %v4656_v12 }
 0x637   :  { %1419 = vmatprep.subr.mxu0 %v4657_v28  ;;  %1490 = vmatprep.subr.mxu1 %v4658_v27 }
 0x638   :  { %1420 = vmatpush2.msra.mxu0 %v4659_v31  ;;  %1491 = vmatpush2.msra.mxu1 %v4660_v32 }
 0x639   :  { %1421 = vmatprep.subr.mxu0 %v4661_v57  ;;  %1492 = vmatprep.subr.mxu1 %v4662_v34 }
 0x63a   :  { %1422 = vmatpush2.msra.mxu0 %v4663_v35  ;;  %1493 = vmatpush2.msra.mxu1 %v4664_v36 }
 0x63b   :  { %1423 = vmatprep.subr.mxu0 %v4665_v37  ;;  %1494 = vmatprep.subr.mxu1 %v4666_v38 }
 0x63c   :  { %1424 = vmatpush2.msra.mxu0 %v4667_v39  ;;  %1495 = vmatpush2.msra.mxu1 %v4668_v40 }
 0x63d   :  { %1425 = vmatprep.subr.mxu0 %v4669_v41  ;;  %1496 = vmatprep.subr.mxu1 %v4670_v42 }
 0x63e   :  { %1426 = vmatpush2.msra.mxu0 %v4671_v43  ;;  %1497 = vmatpush2.msra.mxu1 %v4672_v44 }
 0x63f   :  { %1427 = vmatprep.subr.mxu0 %v4673_v45  ;;  %1498 = vmatprep.subr.mxu1 %v4674_v47 }
 0x640   :  { %1428 = vmatpush2.msra.mxu0 %v4675_v55  ;;  %1499 = vmatpush2.msra.mxu1 %v4676_v61  ;;  %v1547_v61 = vld [vmem:[#allocation10 + $0x78] sm:$0xff] }
 0x641   :  { %1429 = vmatprep.subr.mxu0 %v4677_v19  ;;  %1500 = vmatprep.subr.mxu1 %v4678_v20  ;;  %v1546_v19 = vld [vmem:[#allocation10 + $0x70] sm:$0xff]  ;;  %v1545_v20 = vld [vmem:[#allocation10 + $0x68] sm:$0xff] }
 0x642   :  { %1430 = vmatpush2.msra.mxu0 %v4679_v21  ;;  %1501 = vmatpush2.msra.mxu1 %v4680_v22  ;;  %v1544_v21 = vld [vmem:[#allocation10 + $0x60] sm:$0xff]  ;;  %v1543_v22 = vld [vmem:[#allocation10 + $0x58] sm:$0xff] }
 0x643   :  { %1661 = vmatprep.subr.mxu0 %v4682_v17  ;;  %1431 = vmatprep.mubr.f32.mxu0 %v1366_v9 }
 0x644   :  { %1502 = vmatprep.mubr.f32.mxu1 %v1366_v9 }
 0x6c3   :  { %v1271_v5 = vpop.f32.mrf.mxu0  ;;  %v1342_v15 = vpop.f32.mrf.mxu1 }
 0x6c4   :  { %v1272_v11 = vadd.f32 %v1271_v5, %v4681_v62  ;;  %v1343_v28 = vadd.f32 %v1342_v15, %v2692_v48 }
 0x6c5   :  { %v1273_v30 = vpop.f32.mrf.mxu0  ;;  %v1344_v27 = vpop.f32.mrf.mxu1 }
 0x6c6   :  { %v1347_v26 = vmul.f32 0.5, %v1272_v11  ;;  %v1274_v14 = vadd.f32 %v1273_v30, %v4336_v33  ;;  %v1345_v31 = vadd.f32 %v1344_v27, %v2696_v54 }
 0x6c8   :  { %1767 = vtanh.f32 %v1347_v26  ;;  %v1351_v12 = vmul.f32 0.5, %v1274_v14  ;;  %v1356_v32 = vmul.f32 0.5, %v1345_v31 }
 0x6ca   :  { %1769 = vtanh.f32 %v1351_v12 }
 0x6cb   :  { %1771 = vtanh.f32 %v1343_v28 }
 0x6cc   :  { %1773 = vtanh.f32 %v1356_v32 }
 0x6d5   :  { %v1768_v57 = vpop.eup %1767 }
 0x6d6   :  { %v1349_v34 = vmul.f32 0.5, %v1768_v57 }
 0x6d7   :  { %v1770_v35 = vpop.eup %1769 }
 0x6d8   :  { %v1350_v36 = vadd.f32 0.5, %v1349_v34  ;;  %v1353_v37 = vmul.f32 0.5, %v1770_v35  ;;  %v1772_v39 = vpop.eup %1771 }
 0x6d9   :  { %v1774_v43 = vpop.eup %1773 }
 0x6da   :  { %v1354_v38 = vadd.f32 0.5, %v1353_v37  ;;  %v1361_v41 = vmul.f32 %v1772_v39, %v1350_v36  ;;  %v1358_v44 = vmul.f32 0.5, %v1774_v43 }
 0x6dc   :  { %v1360_v40 = vmul.f32 %v1354_v38, %v3633_v46  ;;  %v1359_v45 = vadd.f32 0.5, %v1358_v44  ;;  %v1542_v46 = vld [vmem:[#allocation10 + $0x50] sm:$0xff] }
 0x6de   :  { %v3675_v42 = vadd.f32 %v1361_v41, %v1360_v40 }
 0x6e0   :  { %1775 = vtanh.f32 %v3675_v42 }
 0x6ed   :  { %v1776_v47 = vpop.eup %1775 }
 0x6ee   :  { %v1364_v55 = vmul.f32 %v1776_v47, %v1359_v45 }
 0x6f0   :  { %1432 = vmatmul.mubr.f32.vlgmr.msra.gmra.mxu0 %v1364_v55  ;;  %1503 = vmatmul.mubr.f32.vlgmr.msra.gmra.mxu1 %v1364_v55 }
 0x6f1   :  { %1662 = vmatpush3.msra.mxu0 %v1547_v61  ;;  %1693 = vmatprep.mubr.msk.f32.mxu0 %vm2127_vm0, %v4682_v17 }
 0x6f2   :  { %1663 = vmatprep.subr.mxu0 %v4682_v17 }
 0x6f3   :  { %1664 = vmatpush3.msra.mxu0 %v1546_v19 }
 0x6f4   :  { %1665 = vmatprep.subr.mxu0 %v4682_v17 }
 0x6f5   :  { %1666 = vmatpush3.msra.mxu0 %v1545_v20 }
 0x6f6   :  { %1667 = vmatprep.subr.mxu0 %v4682_v17 }
 0x6f7   :  { %1668 = vmatpush3.msra.mxu0 %v1544_v21 }
 0x6f8   :  { %1669 = vmatprep.subr.mxu0 %v4682_v17 }
 0x6f9   :  { %1670 = vmatpush3.msra.mxu0 %v1543_v22 }
 0x6fa   :  { %1671 = vmatprep.subr.mxu0 %v4682_v17 }
 0x6fb   :  { %1672 = vmatpush3.msra.mxu0 %v1542_v46 }
 0x6fc   :  { %1673 = vmatprep.subr.mxu0 %v4682_v17 }
 0x6fd   :  { %1674 = vmatpush3.msra.mxu0 %v1541_v16 }
 0x6fe   :  { %1675 = vmatprep.subr.mxu0 %v4682_v17 }
 0x6ff   :  { %1676 = vmatpush3.msra.mxu0 %v1540_v25 }
 0x700   :  { %1677 = vmatprep.subr.mxu0 %v4682_v17 }
 0x701   :  { %1678 = vmatpush3.msra.mxu0 %v1539_v29 }
 0x702   :  { %1679 = vmatprep.subr.mxu0 %v4682_v17 }
 0x703   :  { %1680 = vmatpush3.msra.mxu0 %v1538_v13 }
 0x704   :  { %1681 = vmatprep.subr.mxu0 %v4682_v17 }
 0x705   :  { %1682 = vmatpush3.msra.mxu0 %v1537_v8 }
 0x706   :  { %1683 = vmatprep.subr.mxu0 %v4682_v17 }
 0x707   :  { %1684 = vmatpush3.msra.mxu0 %v1536_v58 }
 0x708   :  { %1685 = vmatprep.subr.mxu0 %v4682_v17 }
 0x709   :  { %1686 = vmatpush3.msra.mxu0 %v1535_v7 }
 0x70a   :  { %1687 = vmatprep.subr.mxu0 %v4682_v17 }
 0x70b   :  { %1688 = vmatpush3.msra.mxu0 %v1534_v10 }
 0x70c   :  { %1689 = vmatprep.subr.mxu0 %v4682_v17 }
 0x70d   :  { %1690 = vmatpush3.msra.mxu0 %v1533_v23 }
 0x70e   :  { %1691 = vmatprep.subr.mxu0 %v4682_v17 }
 0x70f   :  { %1692 = vmatpush3.msra.mxu0 %v1532_v24 }
 0x7b0   :  { %v1433_v63 = vpop.f32.mrf.mxu0  ;;  %v1504_v18 = vpop.f32.mrf.mxu1 }
 0x7b1   :  { %v1434_v53 = vadd.f32 %v1433_v63, %v4681_v62  ;;  %v1505_v49 = vadd.f32 %v1504_v18, %v2692_v48 }
 0x7b2   :  { %v1435_v60 = vpop.f32.mrf.mxu0  ;;  %v1506_v50 = vpop.f32.mrf.mxu1 }
 0x7b3   :  { %v1509_v56 = vmul.f32 0.5, %v1434_v53  ;;  %v1436_v0 = vadd.f32 %v1435_v60, %v4336_v33  ;;  %v1507_v52 = vadd.f32 %v1506_v50, %v2696_v54  ;;  %v1643_v54 = vld [vmem:[%s3709_s4] ss:$0 sm:$0xff] }
 0x7b5   :  { %1777 = vtanh.f32 %v1509_v56  ;;  %v1513_v51 = vmul.f32 0.5, %v1436_v0  ;;  %v1518_v59 = vmul.f32 0.5, %v1507_v52 }
 0x7b7   :  { %1779 = vtanh.f32 %v1513_v51 }
 0x7b8   :  { %1781 = vtanh.f32 %v1505_v49 }
 0x7b9   :  { %1783 = vtanh.f32 %v1518_v59 }
 0x7c2   :  { %v1778_v1 = vpop.eup %1777 }
 0x7c3   :  { %v1511_v2 = vmul.f32 0.5, %v1778_v1 }
 0x7c4   :  { %v1780_v3 = vpop.eup %1779 }
 0x7c5   :  { %v1512_v4 = vadd.f32 0.5, %v1511_v2  ;;  %v1515_v62 = vmul.f32 0.5, %v1780_v3  ;;  %v1782_v17 = vpop.eup %1781 }
 0x7c6   :  { %v1784_v48 = vpop.eup %1783 }
 0x7c7   :  { %v1516_v6 = vadd.f32 0.5, %v1515_v62  ;;  %v1523_v9 = vmul.f32 %v1782_v17, %v1512_v4  ;;  %v1520_v11 = vmul.f32 0.5, %v1784_v48 }
 0x7c9   :  { %v1522_v33 = vmul.f32 %v1516_v6, %v3675_v42  ;;  %v1521_v30 = vadd.f32 0.5, %v1520_v11 }
 0x7cb   :  { %v1524_v5 = vadd.f32 %v1523_v9, %v1522_v33 }
 0x7cd   :  { %1785 = vtanh.f32 %v1524_v5 }
 0x7da   :  { %v1786_v26 = vpop.eup %1785 }
 0x7db   :  { %v1526_v14 = vmul.f32 %v1786_v26, %v1521_v30 }
 0x7dd   :  { %1694 = vmatmul.mubr.f32.vlgmr.msra.gmra.mxu0 %v1526_v14 }
 0x89d   :  { %v1621_v15 = vpop.f32.mrf.mxu0 }
 0x89e   :  { %v1622_v12 = vadd.f32 %v1643_v54, %v1621_v15 }
 0x89f   :  { %v1695_v28 = vpop.f32.mrf.mxu0 }
 0x8a0   :  { %1625 = vst [vmem:[#allocation12] sm:$0xff] %v1622_v12 }
 0x8a1   :  { %2101 = shalt.err (!%p2098_p10)
}
 0x8a2   :  { %1635 = dma.vmem_to_hbm [thread:$0]  %s1633_s16, 128, %s3710_s5, [#allocation6]  }
 0x8a3   :  { %2116 = dma.done.wait [#allocation6], 128  }
 0x8a4   :  { %2117 = vsyncadd [#allocation6], 4294967168 }
 0x8a5   :  { %1639 = vsyncpa [#allocation5], 1 }
 0x8a6   :  { %1640 = vsyncpa [#allocation8], 1 }
 0x8a7   :  { %1641 = vsyncpa [#allocation11], 1 }
 0x8a8   :  { %1642 = vsyncpa [#allocation6], 1 }

</bundles_post_ra>
